<compile_context>
chip_gen: v6e
topology: v6e:2x2x1
jax: 0.10.0
libtpu: 0.0.40
codegen_flags: <defaults>
</compile_context>

<pallas_src>
import functools

import jax
import jax.numpy as jnp
import numpy as np
from jax import lax
from jax.experimental import pallas as pl
from jax.experimental.pallas import tpu as pltpu


# ----------------------------------------------------------------------------
# Fused Fire kernel
# ----------------------------------------------------------------------------
def _fire_kernel(*refs, tile_h, w, wp8, s1, has_halo, m_chunk, n_chunks):
    # Ref order: inputs..., output, scratch.
    if has_halo:
        (xm_ref, xt_ref, xb_ref, ws_ref, bs_ref, we_ref, be_ref,
         o_ref, sqp_ref) = refs
    else:
        xm_ref, ws_ref, bs_ref, we_ref, be_ref, o_ref, sqp_ref = refs
        xt_ref = xb_ref = None

    # xm_ref : (1, tile_h*wp8, Cin)   flattened (row, padded-col) input rows
    # xt_ref : (1, wp8, Cin)          row above the tile (only when has_halo)
    # xb_ref : (1, wp8, Cin)          row below the tile (only when has_halo)
    # ws_ref : (Cin, S1)              squeeze weights (compute dtype)
    # bs_ref : (1, S1)                squeeze bias (f32)
    # we_ref : (3, 3*S1, CE)          dy-major expand weights, dx packed in K,
    #                                 1x1 branch folded into (dy,dx)=(1,1)
    # be_ref : (1, CE)                expand bias [b_e1 | b_e3] (f32)
    # o_ref  : (1, tile_h*wp8, CE)    output tile (cols >= W are junk, dropped)
    # sqp_ref: ((tile_h+2)*wp8, 3*S1) dx-packed padded squeeze scratch
    n_mid = tile_h * wp8
    n_pad = (tile_h + 2) * wp8          # rows of the padded squeeze map P

    ws = ws_ref[...]
    bs = bs_ref[...]

    def squeeze(x2d):                    # (L, Cin) -> (L, S1), ReLU, f32
        y = jnp.dot(x2d, ws, preferred_element_type=jnp.float32)
        return jnp.maximum(y + bs, 0.0)

    # Width mask: padded column px holds real data iff 1 <= px <= W.  The 3x3
    # branch needs exact zeros (not relu(bias)) at spatially padded positions.
    col_m = lax.broadcasted_iota(jnp.int32, (n_mid, 1), 0) % wp8
    mask_m = (col_m >= 1) & (col_m <= w)
    col_1 = lax.broadcasted_iota(jnp.int32, (wp8, 1), 0)
    mask_1 = (col_1 >= 1) & (col_1 <= w)

    # ---- phase 1: squeeze (+ halo rows) and dx-pack into the K axis -------
    s_mid = jnp.where(mask_m, squeeze(xm_ref[0]), 0.0)
    if has_halo:
        h_id = pl.program_id(1)
        last = pl.num_programs(1) - 1
        s_top = jnp.where(mask_1 & (h_id != 0), squeeze(xt_ref[0]), 0.0)
        s_bot = jnp.where(mask_1 & (h_id != last), squeeze(xb_ref[0]), 0.0)
    else:
        # Whole-height tile: the halo rows are the image's zero padding.
        s_top = jnp.zeros((wp8, s1), jnp.float32)
        s_bot = jnp.zeros((wp8, s1), jnp.float32)

    # Padded squeeze map P (flat rows) + 8 zero rows so the +1/+2 shifted
    # views below stay in range; the dx-pack is built ONCE here and then read
    # three times (dy=0,1,2) by the expand, all at aligned offsets.
    p_full = jnp.concatenate(
        [s_top, s_mid, s_bot, jnp.zeros((8, s1), jnp.float32)], axis=0)
    packed = jnp.concatenate(
        [p_full[0:n_pad], p_full[1:n_pad + 1], p_full[2:n_pad + 2]], axis=1)
    sqp_ref[...] = packed.astype(sqp_ref.dtype)      # single aligned store

    # ---- phase 2: expand = 3 matmuls with K = 3*S1, register accumulation -
    def expand_chunk(j0):
        a0 = sqp_ref[pl.ds(j0, m_chunk), :]
        a1 = sqp_ref[pl.ds(j0 + wp8, m_chunk), :]
        a2 = sqp_ref[pl.ds(j0 + 2 * wp8, m_chunk), :]
        acc = jnp.dot(a0, we_ref[0], preferred_element_type=jnp.float32)
        acc = acc + jnp.dot(a1, we_ref[1], preferred_element_type=jnp.float32)
        acc = acc + jnp.dot(a2, we_ref[2], preferred_element_type=jnp.float32)
        y = jnp.maximum(acc + be_ref[...], 0.0)       # fused bias + ReLU
        o_ref[0, pl.ds(j0, m_chunk), :] = y.astype(o_ref.dtype)

    if n_chunks <= 2:
        for c in range(n_chunks):                     # static, fully unrolled
            expand_chunk(c * m_chunk)
    else:
        def body(c, carry):
            expand_chunk(pl.multiple_of(c * m_chunk, 8))
            return carry
        lax.fori_loop(0, n_chunks, body, 0)


# ----------------------------------------------------------------------------
# Tiling heuristics (VMEM-budgeted, portable across v5e / v6e / v7x)
# ----------------------------------------------------------------------------
def _step_vmem_bytes(tile_h, wp8, cin, s1, ce, db):
    n_mid = tile_h * wp8
    n_pad = (tile_h + 2) * wp8
    blk_in = 2 * n_mid * cin * db                 # double-buffered input tile
    blk_out = 2 * n_mid * ce * db                 # double-buffered output tile
    scratch = n_pad * 3 * s1 * db                 # packed squeeze scratch
    temps = n_pad * s1 * 4 + n_pad * 3 * s1 * (4 + db) + n_mid * cin * db
    weights = 2 * (cin * s1 + 9 * s1 * ce) * db
    halo = 4 * wp8 * cin * db
    return blk_in + blk_out + scratch + temps + weights + halo


def _choose_tile_h(n, h, wp8, cin, s1, ce, db, budget):
    divisors = [d for d in range(1, h + 1) if h % d == 0]
    fits = [d for d in divisors
            if _step_vmem_bytes(d, wp8, cin, s1, ce, db) <= budget]
    if not fits:
        fits = [1]
    if n == 1:
        # v7x has 2 TensorCores: keep >= 2 parallel grid steps when batch=1.
        split = [d for d in fits if h // d >= 2]
        if split:
            fits = split
    return max(fits)


def _choose_m_chunk(tile_h, wp8, ce):
    # Register-resident f32 accumulator of ~<=128 KiB (16-32 vregs for CE>=128).
    target = max(wp8, ((128 * 1024) // (max(ce, 1) * 4)) // 8 * 8)
    r = 1
    for d in range(1, tile_h + 1):
        if tile_h % d == 0 and d * wp8 <= target:
            r = d
    return r * wp8


# ----------------------------------------------------------------------------
# Fire forward wrapper (layout plumbing + weight packing)
# ----------------------------------------------------------------------------
def fire_forward(x_nchw, params, *, compute_dtype=jnp.bfloat16):
    ws, bs = params["s1_w"], params["s1_b"]      # (S1, Cin, 1, 1), (S1,)
    w1, b1 = params["e1_w"], params["e1_b"]      # (E1, S1, 1, 1), (E1,)
    w3, b3 = params["e3_w"], params["e3_b"]      # (E3, S1, 3, 3), (E3,)

    n, cin, h, w = x_nchw.shape
    s1 = ws.shape[0]
    e1 = w1.shape[0]
    e3 = w3.shape[0]
    ce = e1 + e3
    db = jnp.dtype(compute_dtype).itemsize

    wp8 = ((w + 2 + 7) // 8) * 8                 # padded width, multiple of 8

    # VMEM budget: v7x has 64 MiB physical VMEM, v5e/v6e 128 MiB.
    try:
        info = pltpu.get_tpu_info()
        phys_vmem = int(getattr(info, "vmem_capacity_bytes", 0)) or (64 << 20)
    except Exception:
        phys_vmem = 64 << 20                     # conservative (v7x) fallback
    budget = min(phys_vmem // 3, 24 << 20)
    vmem_limit = min(3 * phys_vmem // 4, 96 << 20)

    tile_h = _choose_tile_h(n, h, wp8, cin, s1, ce, db, budget)
    ht = h // tile_h
    has_halo = ht > 1
    m_chunk = _choose_m_chunk(tile_h, wp8, ce)
    n_chunks = (tile_h * wp8) // m_chunk

    # NCHW -> NHWC, pad width to wp8 (1 col left), cast.  XLA fuses these into
    # one pass; the pad columns are re-masked in-kernel anyway.
    xp = jnp.transpose(x_nchw, (0, 2, 3, 1))
    xp = jnp.pad(xp, ((0, 0), (0, 0), (1, wp8 - w - 1), (0, 0)))
    xp = xp.astype(compute_dtype)
    x_flat = xp.reshape(n, h * wp8, cin)

    inputs = [x_flat]
    in_specs = [pl.BlockSpec((1, tile_h * wp8, cin), lambda i, j: (i, j, 0))]
    if has_halo:
        # Halo rows per H-tile (recomputed squeeze keeps the grid parallel).
        zrow = jnp.zeros((n, 1, wp8, cin), compute_dtype)
        x_top = jnp.concatenate([zrow, xp[:, tile_h - 1:h - 1:tile_h]], axis=1)
        x_bot = jnp.concatenate([xp[:, tile_h:h:tile_h], zrow], axis=1)
        inputs += [x_top.reshape(n, ht * wp8, cin),
                   x_bot.reshape(n, ht * wp8, cin)]
        in_specs += [pl.BlockSpec((1, wp8, cin), lambda i, j: (i, j, 0)),
                     pl.BlockSpec((1, wp8, cin), lambda i, j: (i, j, 0))]

    # Squeeze weights: (S1, Cin, 1, 1) -> (Cin, S1).
    ws_mat = jnp.transpose(ws[:, :, 0, 0], (1, 0)).astype(compute_dtype)
    bs_vec = bs.reshape(1, s1).astype(jnp.float32)

    # Packed expand weights: Wpk[dy][dx*S1 + c, :] with CE = [E1 | E3]; the
    # 1x1 expand lives only in the centre tap (dy, dx) = (1, 1).
    w3_taps = jnp.transpose(w3, (2, 3, 1, 0)).reshape(3, 3 * s1, e3)
    w1_mat = jnp.transpose(w1[:, :, 0, 0], (1, 0))               # (S1, E1)
    wpk_e1 = jnp.zeros((3, 3 * s1, e1), w1.dtype)
    wpk_e1 = wpk_e1.at[1, s1:2 * s1, :].set(w1_mat)
    wpk = jnp.concatenate([wpk_e1, w3_taps], axis=-1).astype(compute_dtype)
    be_vec = jnp.concatenate([b1, b3]).reshape(1, ce).astype(jnp.float32)

    inputs += [ws_mat, bs_vec, wpk, be_vec]
    in_specs += [
        pl.BlockSpec((cin, s1), lambda i, j: (0, 0)),
        pl.BlockSpec((1, s1), lambda i, j: (0, 0)),
        pl.BlockSpec((3, 3 * s1, ce), lambda i, j: (0, 0, 0)),
        pl.BlockSpec((1, ce), lambda i, j: (0, 0)),
    ]

    kern = functools.partial(
        _fire_kernel, tile_h=tile_h, w=w, wp8=wp8, s1=s1,
        has_halo=has_halo, m_chunk=m_chunk, n_chunks=n_chunks)

    flops = 2 * n * h * w * s1 * (cin + e1 + 9 * e3)
    bytes_accessed = db * (n * h * wp8 * (cin + ce) + cin * s1 + 9 * s1 * ce)

    out = pl.pallas_call(
        kern,
        out_shape=jax.ShapeDtypeStruct((n, h * wp8, ce), compute_dtype),
        grid_spec=pltpu.PrefetchScalarGridSpec(
            num_scalar_prefetch=0,
            grid=(n, ht),
            in_specs=in_specs,
            out_specs=pl.BlockSpec((1, tile_h * wp8, ce),
                                   lambda i, j: (i, j, 0)),
            scratch_shapes=[
                pltpu.VMEM(((tile_h + 2) * wp8, 3 * s1), compute_dtype)]),
        compiler_params=pltpu.CompilerParams(
            dimension_semantics=("parallel", "parallel"),
            vmem_limit_bytes=int(vmem_limit)),
        cost_estimate=pl.CostEstimate(flops=int(flops), transcendentals=0,
                                      bytes_accessed=int(bytes_accessed)),
    )(*inputs)

    # Drop the width padding and go back to NCHW f32 (one fused XLA pass).
    # TODO(synk): if the consumer accepts NHWC / compute_dtype, return `out`
    # reshaped directly and skip this extra transpose + cast pass.
    out = out.reshape(n, h, wp8, ce)[:, :, :w, :]
    return jnp.transpose(out, (0, 3, 1, 2)).astype(x_nchw.dtype)


# ----------------------------------------------------------------------------
# Pure-JAX reference (mirrors PyTorch Conv2d semantics, NCHW / OIHW)
# ----------------------------------------------------------------------------
def fire_reference(x, params):
    def conv(inp, wt, b, pad):
        y = lax.conv_general_dilated(
            inp, wt, window_strides=(1, 1), padding=[(pad, pad), (pad, pad)],
            dimension_numbers=("NCHW", "OIHW", "NCHW"))
        return y + b.reshape(1, -1, 1, 1)

    s = jax.nn.relu(conv(x, params["s1_w"], params["s1_b"], 0))
    y1 = conv(s, params["e1_w"], params["e1_b"], 0)
    y2 = conv(s, params["e3_w"], params["e3_b"], 1)
    return jax.nn.relu(jnp.concatenate([y1, y2], axis=1))


def init_fire_params(key, cin, s1, e1, e3):
    ks = jax.random.split(key, 6)

    def u(k, shape, fan_in):
        bound = 1.0 / np.sqrt(fan_in)
        return jax.random.uniform(k, shape, jnp.float32, -bound, bound)

    return {
        "s1_w": u(ks[0], (s1, cin, 1, 1), cin),
        "s1_b": u(ks[1], (s1,), cin),
        "e1_w": u(ks[2], (e1, s1, 1, 1), s1),
        "e1_b": u(ks[3], (e1,), s1),
        "e3_w": u(ks[4], (e3, s1, 3, 3), s1 * 9),
        "e3_b": u(ks[5], (e3,), s1 * 9),
    }


if __name__ == "__main__":
    key = jax.random.PRNGKey(0)
    k1, k2, k3, k4, k5, k6 = jax.random.split(key, 6)

    fwd_f32 = jax.jit(functools.partial(fire_forward,
                                        compute_dtype=jnp.float32))
    fwd_bf16 = jax.jit(functools.partial(fire_forward,
                                         compute_dtype=jnp.bfloat16))

    # --- Config A: toy shape, whole-image tile, f32 + bf16 paths ------------
    N, CIN, H, W = 2, 4, 16, 16
    S1, E1, E3 = 8, 8, 8
    x = jax.random.normal(k1, (N, CIN, H, W), jnp.float32)
    params = init_fire_params(k2, CIN, S1, E1, E3)
    ref = jax.block_until_ready(fire_reference(x, params))

    out_f32 = jax.block_until_ready(fwd_f32(x, params))
    assert out_f32.shape == (N, E1 + E3, H, W), out_f32.shape
    np.testing.assert_allclose(np.asarray(out_f32), np.asarray(ref),
                               rtol=1e-4, atol=1e-4)

    out_bf16 = jax.block_until_ready(fwd_bf16(x, params))
    np.testing.assert_allclose(np.asarray(out_bf16), np.asarray(ref),
                               rtol=8e-2, atol=8e-2)

    # --- Config B: batch=1 forces an H split (2 parallel steps) + halo path -
    N2, CIN2, H2, W2 = 1, 16, 14, 14
    S12, E12, E32 = 16, 32, 32
    x2 = jax.random.normal(k3, (N2, CIN2, H2, W2), jnp.float32)
    params2 = init_fire_params(k4, CIN2, S12, E12, E32)
    ref2 = jax.block_until_ready(fire_reference(x2, params2))
    out2 = jax.block_until_ready(fwd_bf16(x2, params2))
    np.testing.assert_allclose(np.asarray(out2), np.asarray(ref2),
                               rtol=8e-2, atol=8e-2)

    # --- Config C: wider channels, exercises the fori_loop M-chunk path -----
    N3, CIN3, H3, W3 = 2, 16, 32, 32
    S13, E13, E33 = 16, 64, 64
    x3 = jax.random.normal(k5, (N3, CIN3, H3, W3), jnp.float32)
    params3 = init_fire_params(k6, CIN3, S13, E13, E33)
    ref3 = jax.block_until_ready(fire_reference(x3, params3))
    out3 = jax.block_until_ready(fwd_bf16(x3, params3))
    np.testing.assert_allclose(np.asarray(out3), np.asarray(ref3),
                               rtol=8e-2, atol=8e-2)

    print("KERNEL_OK")
</pallas_src>

<mosaic_0001>
module attributes {stable_mosaic.version = 11 : i64} {
  func.func @_fire_kernel(%arg0: i32, %arg1: i32, %arg2: memref<1x384x4xf32, #tpu.memory_space<vmem>>, %arg3: memref<4x8xf32, #tpu.memory_space<vmem>>, %arg4: memref<1x8xf32, #tpu.memory_space<vmem>>, %arg5: memref<3x24x16xf32, #tpu.memory_space<vmem>>, %arg6: memref<1x16xf32, #tpu.memory_space<vmem>>, %arg7: memref<1x384x16xf32, #tpu.memory_space<vmem>>, %arg8: memref<432x24xf32, #tpu.memory_space<vmem>>) attributes {dimension_semantics = [#tpu.dimension_semantics<parallel>, #tpu.dimension_semantics<parallel>], iteration_bounds = array<i64: 2, 1>, scalar_prefetch = 0 : i64, scratch_operands = 1 : i64, tpu.core_type = #tpu.core_type<tc>, window_params = [{transform_indices = @transform_0, window_bounds = array<i64: 1, 384, 4>}, {pipeline_mode = #tpu.pipeline_mode<synchronous>, transform_indices = @transform_1, window_bounds = array<i64: 4, 8>}, {pipeline_mode = #tpu.pipeline_mode<synchronous>, transform_indices = @transform_2, window_bounds = array<i64: 1, 8>}, {pipeline_mode = #tpu.pipeline_mode<synchronous>, transform_indices = @transform_3, window_bounds = array<i64: 3, 24, 16>}, {pipeline_mode = #tpu.pipeline_mode<synchronous>, transform_indices = @transform_4, window_bounds = array<i64: 1, 16>}, {transform_indices = @transform_5, window_bounds = array<i64: 1, 384, 16>}]} {
    %c0 = arith.constant 0 : index
    %c0_0 = arith.constant 0 : index
    %0 = vector.load %arg3[%c0, %c0_0] : memref<4x8xf32, #tpu.memory_space<vmem>>, vector<4x8xf32>
    %c0_1 = arith.constant 0 : index
    %c0_2 = arith.constant 0 : index
    %1 = vector.load %arg4[%c0_1, %c0_2] : memref<1x8xf32, #tpu.memory_space<vmem>>, vector<1x8xf32>
    %2 = tpu.iota {dimensions = array<i32: 0>} : vector<384x1xi32>
    %c24_i32 = arith.constant 24 : i32
    %c0_i32 = arith.constant 0 : i32
    %3 = arith.cmpi eq, %c24_i32, %c0_i32 : i32
    %c1_i32 = arith.constant 1 : i32
    %4 = arith.select %3, %c1_i32, %c24_i32 : i32
    %5 = vector.broadcast %4 : i32 to vector<384x1xi32>
    %6 = arith.remsi %2, %5 : vector<384x1xi32>
    %c0_i32_3 = arith.constant 0 : i32
    %7 = vector.broadcast %c0_i32_3 : i32 to vector<384x1xi32>
    %8 = arith.cmpi ne, %6, %7 : vector<384x1xi32>
    %c0_i32_4 = arith.constant 0 : i32
    %9 = vector.broadcast %c0_i32_4 : i32 to vector<384x1xi32>
    %10 = arith.cmpi slt, %6, %9 : vector<384x1xi32>
    %c0_i32_5 = arith.constant 0 : i32
    %11 = arith.cmpi slt, %4, %c0_i32_5 : i32
    %12 = vector.broadcast %11 : i1 to vector<384x1xi1>
    %13 = vector.broadcast %12 : vector<384x1xi1> to vector<384x1xi1>
    %14 = arith.xori %10, %13 : vector<384x1xi1>
    %15 = arith.andi %14, %8 : vector<384x1xi1>
    %16 = vector.broadcast %4 : i32 to vector<384x1xi32>
    %17 = arith.addi %6, %16 : vector<384x1xi32>
    %18 = arith.select %15, %17, %6 : vector<384x1xi1>, vector<384x1xi32>
    %c1_i32_6 = arith.constant 1 : i32
    %19 = vector.broadcast %c1_i32_6 : i32 to vector<384x1xi32>
    %20 = arith.cmpi sge, %18, %19 : vector<384x1xi32>
    %c16_i32 = arith.constant 16 : i32
    %21 = vector.broadcast %c16_i32 : i32 to vector<384x1xi32>
    %22 = arith.cmpi sle, %18, %21 : vector<384x1xi32>
    %23 = arith.andi %20, %22 : vector<384x1xi1>
    %c0_7 = arith.constant 0 : index
    %c0_8 = arith.constant 0 : index
    %c0_9 = arith.constant 0 : index
    %24 = vector.load %arg2[%c0_7, %c0_8, %c0_9] : memref<1x384x4xf32, #tpu.memory_space<vmem>>, vector<1x384x4xf32>
    %25 = vector.shape_cast %24 : vector<1x384x4xf32> to vector<384x4xf32>
    %cst = arith.constant dense<0.000000e+00> : vector<384x8xf32>
    %26 = tpu.matmul %25, %0, %cst {dimension_numbers = #tpu.dot_dimension_numbers<[1], [0], [0], [1], [0, 0, 1, 1], [], []>} : vector<384x4xf32>, vector<4x8xf32>, vector<384x8xf32> -> vector<384x8xf32>
    %27 = vector.broadcast %1 : vector<1x8xf32> to vector<384x8xf32>
    %28 = arith.addf %26, %27 : vector<384x8xf32>
    %cst_10 = arith.constant 0.000000e+00 : f32
    %29 = vector.broadcast %cst_10 : f32 to vector<384x8xf32>
    %30 = arith.maximumf %28, %29 : vector<384x8xf32>
    %cst_11 = arith.constant 0.000000e+00 : f32
    %31 = vector.shape_cast %23 : vector<384x1xi1> to vector<384x1xi1>
    %32 = vector.broadcast %31 : vector<384x1xi1> to vector<384x8xi1>
    %33 = vector.broadcast %cst_11 : f32 to vector<384x8xf32>
    %34 = arith.select %32, %30, %33 : vector<384x8xi1>, vector<384x8xf32>
    %cst_12 = arith.constant 0.000000e+00 : f32
    %35 = vector.broadcast %cst_12 : f32 to vector<24x8xf32>
    %cst_13 = arith.constant 0.000000e+00 : f32
    %36 = vector.broadcast %cst_13 : f32 to vector<24x8xf32>
    %cst_14 = arith.constant 0.000000e+00 : f32
    %37 = vector.broadcast %cst_14 : f32 to vector<8x8xf32>
    %38 = tpu.concatenate %35, %34, %36, %37 in 0 : vector<24x8xf32>, vector<384x8xf32>, vector<24x8xf32>, vector<8x8xf32> -> vector<440x8xf32>
    %39 = vector.extract_strided_slice %38 {offsets = [0, 0], sizes = [432, 8], strides = [1, 1]} : vector<440x8xf32> to vector<432x8xf32>
    %40 = vector.extract_strided_slice %38 {offsets = [1, 0], sizes = [432, 8], strides = [1, 1]} : vector<440x8xf32> to vector<432x8xf32>
    %41 = vector.extract_strided_slice %38 {offsets = [2, 0], sizes = [432, 8], strides = [1, 1]} : vector<440x8xf32> to vector<432x8xf32>
    %42 = tpu.concatenate %39, %40, %41 in 1 : vector<432x8xf32>, vector<432x8xf32>, vector<432x8xf32> -> vector<432x24xf32>
    %c0_15 = arith.constant 0 : index
    %c0_16 = arith.constant 0 : index
    %43 = vector.load %arg8[%c0_15, %c0_16] : memref<432x24xf32, #tpu.memory_space<vmem>>, vector<432x24xf32>
    tpu.vector_store %arg8[%c0_15, %c0_16], %42 {strides = array<i32>} : memref<432x24xf32, #tpu.memory_space<vmem>>, vector<432x24xf32>,
    %c0_17 = arith.constant 0 : index
    %c0_18 = arith.constant 0 : index
    %44 = vector.load %arg8[%c0_17, %c0_18] : memref<432x24xf32, #tpu.memory_space<vmem>>, vector<384x24xf32>
    %c24 = arith.constant 24 : index
    %c0_19 = arith.constant 0 : index
    %45 = vector.load %arg8[%c24, %c0_19] : memref<432x24xf32, #tpu.memory_space<vmem>>, vector<384x24xf32>
    %c48 = arith.constant 48 : index
    %c0_20 = arith.constant 0 : index
    %46 = vector.load %arg8[%c48, %c0_20] : memref<432x24xf32, #tpu.memory_space<vmem>>, vector<384x24xf32>
    %c0_21 = arith.constant 0 : index
    %c0_22 = arith.constant 0 : index
    %c0_23 = arith.constant 0 : index
    %47 = vector.load %arg5[%c0_21, %c0_22, %c0_23] : memref<3x24x16xf32, #tpu.memory_space<vmem>>, vector<1x24x16xf32>
    %48 = vector.shape_cast %47 : vector<1x24x16xf32> to vector<24x16xf32>
    %cst_24 = arith.constant dense<0.000000e+00> : vector<384x16xf32>
    %49 = tpu.matmul %44, %48, %cst_24 {dimension_numbers = #tpu.dot_dimension_numbers<[1], [0], [0], [1], [0, 0, 1, 1], [], []>} : vector<384x24xf32>, vector<24x16xf32>, vector<384x16xf32> -> vector<384x16xf32>
    %c1 = arith.constant 1 : index
    %c0_25 = arith.constant 0 : index
    %c0_26 = arith.constant 0 : index
    %50 = vector.load %arg5[%c1, %c0_25, %c0_26] : memref<3x24x16xf32, #tpu.memory_space<vmem>>, vector<1x24x16xf32>
    %51 = vector.shape_cast %50 : vector<1x24x16xf32> to vector<24x16xf32>
    %cst_27 = arith.constant dense<0.000000e+00> : vector<384x16xf32>
    %52 = tpu.matmul %45, %51, %cst_27 {dimension_numbers = #tpu.dot_dimension_numbers<[1], [0], [0], [1], [0, 0, 1, 1], [], []>} : vector<384x24xf32>, vector<24x16xf32>, vector<384x16xf32> -> vector<384x16xf32>
    %53 = arith.addf %49, %52 : vector<384x16xf32>
    %c2 = arith.constant 2 : index
    %c0_28 = arith.constant 0 : index
    %c0_29 = arith.constant 0 : index
    %54 = vector.load %arg5[%c2, %c0_28, %c0_29] : memref<3x24x16xf32, #tpu.memory_space<vmem>>, vector<1x24x16xf32>
    %55 = vector.shape_cast %54 : vector<1x24x16xf32> to vector<24x16xf32>
    %cst_30 = arith.constant dense<0.000000e+00> : vector<384x16xf32>
    %56 = tpu.matmul %46, %55, %cst_30 {dimension_numbers = #tpu.dot_dimension_numbers<[1], [0], [0], [1], [0, 0, 1, 1], [], []>} : vector<384x24xf32>, vector<24x16xf32>, vector<384x16xf32> -> vector<384x16xf32>
    %57 = arith.addf %53, %56 : vector<384x16xf32>
    %c0_31 = arith.constant 0 : index
    %c0_32 = arith.constant 0 : index
    %58 = vector.load %arg6[%c0_31, %c0_32] : memref<1x16xf32, #tpu.memory_space<vmem>>, vector<1x16xf32>
    %59 = vector.broadcast %58 : vector<1x16xf32> to vector<384x16xf32>
    %60 = arith.addf %57, %59 : vector<384x16xf32>
    %cst_33 = arith.constant 0.000000e+00 : f32
    %61 = vector.broadcast %cst_33 : f32 to vector<384x16xf32>
    %62 = arith.maximumf %60, %61 : vector<384x16xf32>
    %c0_34 = arith.constant 0 : index
    %c0_35 = arith.constant 0 : index
    %c0_36 = arith.constant 0 : index
    %63 = vector.load %arg7[%c0_34, %c0_35, %c0_36] : memref<1x384x16xf32, #tpu.memory_space<vmem>>, vector<1x384x16xf32>
    %64 = vector.shape_cast %63 : vector<1x384x16xf32> to vector<384x16xf32>
    %65 = vector.shape_cast %62 : vector<384x16xf32> to vector<1x384x16xf32>
    tpu.vector_store %arg7[%c0_34, %c0_35, %c0_36], %65 {strides = array<i32>} : memref<1x384x16xf32, #tpu.memory_space<vmem>>, vector<1x384x16xf32>,
    return
  }
  func.func @transform_0(%arg0: i32, %arg1: i32) -> (i32, i32, i32) {
    %c0_i32 = arith.constant 0 : i32
    %c0_i32_0 = arith.constant 0 : i32
    return %arg0, %arg1, %c0_i32 : i32, i32, i32
  }
  func.func @transform_1(%arg0: i32, %arg1: i32) -> (i32, i32) {
    %c0_i32 = arith.constant 0 : i32
    %c0_i32_0 = arith.constant 0 : i32
    %c0_i32_1 = arith.constant 0 : i32
    return %c0_i32, %c0_i32_0 : i32, i32
  }
  func.func @transform_2(%arg0: i32, %arg1: i32) -> (i32, i32) {
    %c0_i32 = arith.constant 0 : i32
    %c0_i32_0 = arith.constant 0 : i32
    %c0_i32_1 = arith.constant 0 : i32
    return %c0_i32, %c0_i32_0 : i32, i32
  }
  func.func @transform_3(%arg0: i32, %arg1: i32) -> (i32, i32, i32) {
    %c0_i32 = arith.constant 0 : i32
    %c0_i32_0 = arith.constant 0 : i32
    %c0_i32_1 = arith.constant 0 : i32
    %c0_i32_2 = arith.constant 0 : i32
    return %c0_i32, %c0_i32_0, %c0_i32_1 : i32, i32, i32
  }
  func.func @transform_4(%arg0: i32, %arg1: i32) -> (i32, i32) {
    %c0_i32 = arith.constant 0 : i32
    %c0_i32_0 = arith.constant 0 : i32
    %c0_i32_1 = arith.constant 0 : i32
    return %c0_i32, %c0_i32_0 : i32, i32
  }
  func.func @transform_5(%arg0: i32, %arg1: i32) -> (i32, i32, i32) {
    %c0_i32 = arith.constant 0 : i32
    %c0_i32_0 = arith.constant 0 : i32
    return %arg0, %arg1, %c0_i32 : i32, i32, i32
  }
}

</mosaic_0001>

<bundles_post_ra>
// kernel: fire_forward.1
= control target key start
LH: loop header
LB: loop body
LE: loop exit
PB: predicated region body
PF: predicated region fallthrough
CT: control target
= control target key end

     0   :  { %s4968_s18 = smov 0   ;;  %s4970_s19 = smov 0   ;;  %s8329_s0 = inlined_call_operand.vmem [shape: f32[2,384,4], index: 0, kind: input, shape index: {}]   ;;  %s8330_s1 = inlined_call_operand.vmem [shape: f32[4,8], index: 1, kind: input, shape index: {}]   ;;  %s8331_s2 = inlined_call_operand.vmem [shape: f32[1,8], index: 2, kind: input, shape index: {}]   ;;  %s8332_s3 = inlined_call_operand.vmem [shape: f32[3,24,16], index: 3, kind: input, shape index: {}]   ;;  %s8333_s4 = inlined_call_operand.vmem [shape: f32[1,16], index: 4, kind: input, shape index: {}]   ;;  %s8334_s5 = inlined_call_operand.vmem [shape: f32[2,384,16], index: 5, kind: output, shape index: {}]  }
   0x1   :  { %s4972_s20 = smov 0  }
   0x2 LB: > { %s27_s21 = sadd.s32 1, %s4929_s19  ;;  %p4065_p0 = scmp.ge.s32.totalorder %s4933_s20, 1  ;;  %s4933_s20 = sphi %s4972_s20, %s15_s20   ;;  %s4929_s19 = sphi %s4970_s19, %s8820_s19   ;;  %s4925_s18 = sphi %s4968_s18, %s8819_s18  }
   0x3   : > { %p29_p1 = scmp.ge.s32.totalorder %s27_s21, 2  ;;  %p208_p2 = scmp.lt.s32.totalorder %s4933_s20, 3 }
   0x5   : > { %s8822_s21 = smov (%p29_p1, %s27_s21), 0  ;;  %p209_p3 = pnand %p4065_p0, %p208_p2 }
   0x7   : > { %212 = sbr.rel (%p209_p3) target bundleno = 861 (0x35d), region = 40 }
   0xc   : > { %v264_v0 = vld [vmem:[%s8330_s1] sm:$0xf]  ;;  %vm1426_vm0 = vcmask 1043456   ;;  %p245_p4 = scmp.lt.s32.totalorder %s4925_s18, 1  ;;  %vm1281_vm1 = vcmask 31744   ;;  %v266_v49 = vlaneseq  ;;  %s4935_s9 = smov 16  }
   0xd   : > { %4473 = vmatprep.subr.msk.mxu0 %vm1426_vm0, %v264_v0  ;;  %s4936_s10 = smov 8  }
   0xe   : > { %4474 = vmatpush3.msk.msra.mxu0 %vm1426_vm0, %v264_v0  ;;  %s8824_s18 = smov (!%p245_p4, %s4925_s18), 1  ;;  %v5095_v50 = vshrl.u32 %v266_v49, 7 }
   0xf   : > { %s4781_s24 = smul.u32 384, %s8824_s18 }
  0x10   : > { %v268_v51 = vadd.s32 8, %v5095_v50  ;;  %v270_v54 = vadd.s32 24, %v5095_v50  ;;  %v269_v55 = vadd.s32 16, %v5095_v50  ;;  %v271_v60 = vadd.s32 32, %v5095_v50 }
  0x11   : > { %s4997_s27 = scalar_lea.vmem %s8329_s0, %s4781_s24  ;;  %v5104_v56 = vmul.u32.u64.low 2863311531, %v5095_v50  ;;  %v5105_v57 = vmul.u32.u64.high 2863311531, %v5095_v50, %v5104_v56  ;;  %s8130_s13 = scalar_lea.vmem %s8334_s5, %s4781_s24 }
  0x12   : > { %v1227_v1 = vld [vmem:[%s4997_s27] sm:$0xff]  ;;  %v1228_v2 = vld [vmem:[%s4997_s27 + $0x8] sm:$0xff]  ;;  %v1229_v3 = vld [vmem:[%s4997_s27 + $0x10] sm:$0xff]  ;;  %v5098_v52 = vmul.u32.u64.low 2863311531, %v268_v51  ;;  %v5099_v53 = vmul.u32.u64.high 2863311531, %v268_v51, %v5098_v52 }
  0x13   : > { %4475 = vmatprep.mubr.msk.f32.mxu0 %vm1281_vm1, %v1227_v1  ;;  %v1230_v4 = vld [vmem:[%s4997_s27 + $0x18] sm:$0xff]  ;;  %v1231_v5 = vld [vmem:[%s4997_s27 + $0x20] sm:$0xff]  ;;  %v1232_v6 = vld [vmem:[%s4997_s27 + $0x28] sm:$0xff]  ;;  %v5107_v58 = vmul.u32.u64.low 2863311531, %v270_v54  ;;  %v5108_v59 = vmul.u32.u64.high 2863311531, %v270_v54, %v5107_v58  ;;  %v5194_v52 = vadd.s32 112, %v5095_v50 }
  0x14   : > { %4476 = vmatmul.mubr.msk.f32.vlgmr.msra.gmra.mxu0 %vm1281_vm1, %v1228_v2  ;;  %v1233_v7 = vld [vmem:[%s4997_s27 + $0x30] sm:$0xff]  ;;  %v1234_v8 = vld [vmem:[%s4997_s27 + $0x38] sm:$0xff]  ;;  %v1235_v9 = vld [vmem:[%s4997_s27 + $0x40] sm:$0xff]  ;;  %v5111_v61 = vmul.u32.u64.low 2863311531, %v269_v55  ;;  %v5112_v62 = vmul.u32.u64.high 2863311531, %v269_v55, %v5111_v61  ;;  %v332_v63 = vshrl.u32 %v5099_v53, 4 }
  0x15   : > { %4478 = vmatprep.mubr.msk.f32.mxu0 %vm1281_vm1, %v1229_v3  ;;  %v1236_v10 = vld [vmem:[%s4997_s27 + $0x48] sm:$0xff]  ;;  %v1237_v11 = vld [vmem:[%s4997_s27 + $0x50] sm:$0xff]  ;;  %v1238_v12 = vld [vmem:[%s4997_s27 + $0x58] sm:$0xff]  ;;  %v5115_v0 = vmul.u32.u64.low 2863311531, %v271_v60  ;;  %v5116_v1 = vmul.u32.u64.high 2863311531, %v271_v60, %v5115_v0  ;;  %v5119_v2 = vadd.s32 40, %v5095_v50 }
  0x16   : > { %v1239_v13 = vld [vmem:[%s4997_s27 + $0x60] sm:$0xff]  ;;  %v1240_v14 = vld [vmem:[%s4997_s27 + $0x68] sm:$0xff]  ;;  %v1241_v15 = vld [vmem:[%s4997_s27 + $0x70] sm:$0xff]  ;;  %v333_v3 = vmul.u32 24, %v332_v63  ;;  %v5216_v0 = vadd.s32 120, %v5095_v50 }
  0x17   : > { %v1242_v16 = vld [vmem:[%s4997_s27 + $0x78] sm:$0xff]  ;;  %v1243_v17 = vld [vmem:[%s4997_s27 + $0x80] sm:$0xff]  ;;  %v1244_v18 = vld [vmem:[%s4997_s27 + $0x88] sm:$0xff] }
  0x18   : > { %4479 = vmatmul.mubr.msk.f32.gmra.mxu0 %vm1281_vm1, %v1230_v4  ;;  %v1245_v19 = vld [vmem:[%s4997_s27 + $0x90] sm:$0xff]  ;;  %v1246_v20 = vld [vmem:[%s4997_s27 + $0x98] sm:$0xff]  ;;  %v1247_v21 = vld [vmem:[%s4997_s27 + $0xa0] sm:$0xff]  ;;  %v321_v4 = vshrl.u32 %v5105_v57, 4 }
  0x19   : > { %4481 = vmatprep.mubr.msk.f32.mxu0 %vm1281_vm1, %v1231_v5  ;;  %v1248_v22 = vld [vmem:[%s4997_s27 + $0xa8] sm:$0xff]  ;;  %v1249_v23 = vld [vmem:[%s4997_s27 + $0xb0] sm:$0xff]  ;;  %v1250_v24 = vld [vmem:[%s4997_s27 + $0xb8] sm:$0xff]  ;;  %v354_v5 = vshrl.u32 %v5108_v59, 4 }
  0x1a   : > { %v1251_v25 = vld [vmem:[%s4997_s27 + $0xc0] sm:$0xff]  ;;  %v1252_v26 = vld [vmem:[%s4997_s27 + $0xc8] sm:$0xff]  ;;  %v1253_v27 = vld [vmem:[%s4997_s27 + $0xd0] sm:$0xff] }
  0x1b   : > { %v1254_v28 = vld [vmem:[%s4997_s27 + $0xd8] sm:$0xff]  ;;  %v1255_v29 = vld [vmem:[%s4997_s27 + $0xe0] sm:$0xff]  ;;  %v1256_v30 = vld [vmem:[%s4997_s27 + $0xe8] sm:$0xff] }
  0x1c   : > { %4482 = vmatmul.mubr.msk.f32.gmra.mxu0 %vm1281_vm1, %v1232_v6  ;;  %v1257_v31 = vld [vmem:[%s4997_s27 + $0xf0] sm:$0xff]  ;;  %v1258_v32 = vld [vmem:[%s4997_s27 + $0xf8] sm:$0xff]  ;;  %v1259_v33 = vld [vmem:[%s4997_s27 + $0x100] sm:$0xff]  ;;  %v5124_v6 = vadd.s32 56, %v5095_v50 }
  0x1d   : > { %4484 = vmatprep.mubr.msk.f32.mxu0 %vm1281_vm1, %v1233_v7  ;;  %v1260_v34 = vld [vmem:[%s4997_s27 + $0x108] sm:$0xff]  ;;  %v1261_v35 = vld [vmem:[%s4997_s27 + $0x110] sm:$0xff]  ;;  %v1262_v36 = vld [vmem:[%s4997_s27 + $0x118] sm:$0xff]  ;;  %v343_v7 = vshrl.u32 %v5112_v62, 4 }
  0x1e   : > { %v1263_v37 = vld [vmem:[%s4997_s27 + $0x120] sm:$0xff]  ;;  %v1264_v38 = vld [vmem:[%s4997_s27 + $0x128] sm:$0xff]  ;;  %v1265_v39 = vld [vmem:[%s4997_s27 + $0x130] sm:$0xff] }
  0x1f   : > { %v1266_v40 = vld [vmem:[%s4997_s27 + $0x138] sm:$0xff]  ;;  %v1267_v41 = vld [vmem:[%s4997_s27 + $0x140] sm:$0xff]  ;;  %v1268_v42 = vld [vmem:[%s4997_s27 + $0x148] sm:$0xff] }
  0x20   : > { %4485 = vmatmul.mubr.msk.f32.gmra.mxu0 %vm1281_vm1, %v1234_v8  ;;  %v1269_v43 = vld [vmem:[%s4997_s27 + $0x150] sm:$0xff]  ;;  %v1270_v44 = vld [vmem:[%s4997_s27 + $0x158] sm:$0xff]  ;;  %v1271_v45 = vld [vmem:[%s4997_s27 + $0x160] sm:$0xff]  ;;  %v5128_v8 = vadd.s32 48, %v5095_v50 }
  0x21   : > { %4487 = vmatprep.mubr.msk.f32.mxu0 %vm1281_vm1, %v1235_v9  ;;  %v1272_v46 = vld [vmem:[%s4997_s27 + $0x168] sm:$0xff]  ;;  %v1273_v47 = vld [vmem:[%s4997_s27 + $0x170] sm:$0xff]  ;;  %v1274_v48 = vld [vmem:[%s4997_s27 + $0x178] sm:$0xff] }
  0x24   : > { %4488 = vmatmul.mubr.msk.f32.gmra.mxu0 %vm1281_vm1, %v1236_v10  ;;  %v5131_v9 = vmul.u32.u64.low 2863311531, %v5119_v2  ;;  %v5132_v10 = vmul.u32.u64.high 2863311531, %v5119_v2, %v5131_v9 }
  0x25   : > { %4490 = vmatprep.mubr.msk.f32.mxu0 %vm1281_vm1, %v1237_v11  ;;  %v5135_v11 = vadd.s32 72, %v5095_v50 }
  0x28   : > { %4491 = vmatmul.mubr.msk.f32.gmra.mxu0 %vm1281_vm1, %v1238_v12  ;;  %v5138_v12 = vadd.s32 64, %v5095_v50 }
  0x29   : > { %4493 = vmatprep.mubr.msk.f32.mxu0 %vm1281_vm1, %v1239_v13  ;;  %v334_v13 = vsub.s32 %v268_v51, %v333_v3 }
  0x2b   : > { %vm844_vm2 = vcmp.ne.s32.totalorder %v334_v13, 0  ;;  %vm892_vm3 = vcmp.lt.s32.totalorder %v334_v13, 0 }
  0x2c   : > { %4494 = vmatmul.mubr.msk.f32.gmra.mxu0 %vm1281_vm1, %v1240_v14  ;;  %v322_v14 = vmul.u32 24, %v321_v4  ;;  %vm5185_vm9 = vmand %vm892_vm3, %vm844_vm2 }
  0x2d   : > { %4496 = vmatprep.mubr.msk.f32.mxu0 %vm1281_vm1, %v1241_v15  ;;  %v355_v15 = vmul.u32 24, %v354_v5  ;;  %v5226_v4 = vmul.u32.u64.low 2863311531, %v5194_v52  ;;  %v5227_v5 = vmul.u32.u64.high 2863311531, %v5194_v52, %v5226_v4 }
  0x30   : > { %4497 = vmatmul.mubr.msk.f32.gmra.mxu0 %vm1281_vm1, %v1242_v16  ;;  %v365_v16 = vshrl.u32 %v5116_v1, 4 }
  0x31   : > { %4499 = vmatprep.mubr.msk.f32.mxu0 %vm1281_vm1, %v1243_v17 }
  0x34   : > { %4500 = vmatmul.mubr.msk.f32.gmra.mxu0 %vm1281_vm1, %v1244_v18  ;;  %v5142_v17 = vmul.u32.u64.low 2863311531, %v5124_v6  ;;  %v5143_v18 = vmul.u32.u64.high 2863311531, %v5124_v6, %v5142_v17 }
  0x35   : > { %4502 = vmatprep.mubr.msk.f32.mxu0 %vm1281_vm1, %v1245_v19  ;;  %v5146_v19 = vadd.s32 80, %v5095_v50 }
  0x38   : > { %4503 = vmatmul.mubr.msk.f32.gmra.mxu0 %vm1281_vm1, %v1246_v20  ;;  %v344_v20 = vmul.u32 24, %v343_v7 }
  0x39   : > { %4505 = vmatprep.mubr.msk.f32.mxu0 %vm1281_vm1, %v1247_v21 }
  0x3c   : > { %4506 = vmatmul.mubr.msk.f32.gmra.mxu0 %vm1281_vm1, %v1248_v22  ;;  %v5149_v21 = vmul.u32.u64.low 2863311531, %v5128_v8  ;;  %v5150_v22 = vmul.u32.u64.high 2863311531, %v5128_v8, %v5149_v21 }
  0x3d   : > { %4508 = vmatprep.mubr.msk.f32.mxu0 %vm1281_vm1, %v1249_v23  ;;  %v5153_v23 = vadd.s32 88, %v5095_v50 }
  0x40   : > { %4509 = vmatmul.mubr.msk.f32.gmra.mxu0 %vm1281_vm1, %v1250_v24 }
  0x41   : > { %4511 = vmatprep.mubr.msk.f32.mxu0 %vm1281_vm1, %v1251_v25  ;;  %v5156_v24 = vmul.u32.u64.low 2863311531, %v5135_v11  ;;  %v5157_v25 = vmul.u32.u64.high 2863311531, %v5135_v11, %v5156_v24 }
  0x44   : > { %4512 = vmatmul.mubr.msk.f32.gmra.mxu0 %vm1281_vm1, %v1252_v26 }
  0x45   : > { %4514 = vmatprep.mubr.msk.f32.mxu0 %vm1281_vm1, %v1253_v27  ;;  %v5160_v26 = vmul.u32.u64.low 2863311531, %v5138_v12  ;;  %v5161_v27 = vmul.u32.u64.high 2863311531, %v5138_v12, %v5160_v26 }
  0x48   : > { %4515 = vmatmul.mubr.msk.f32.gmra.mxu0 %vm1281_vm1, %v1254_v28  ;;  %v323_v28 = vsub.s32 %v5095_v50, %v322_v14 }
  0x49   : > { %4517 = vmatprep.mubr.msk.f32.mxu0 %vm1281_vm1, %v1255_v29  ;;  %v356_v29 = vsub.s32 %v270_v54, %v355_v15 }
  0x4a   : > { %vm843_vm4 = vcmp.ne.s32.totalorder %v323_v28, 0  ;;  %vm891_vm5 = vcmp.lt.s32.totalorder %v323_v28, 0 }
  0x4b   : > { %vm846_vm6 = vcmp.ne.s32.totalorder %v356_v29, 0  ;;  %vm894_vm7 = vcmp.lt.s32.totalorder %v356_v29, 0  ;;  %vm5198_vm11 = vmand %vm891_vm5, %vm843_vm4 }
  0x4c   : > { %4518 = vmatmul.mubr.msk.f32.gmra.mxu0 %vm1281_vm1, %v1256_v30  ;;  %v366_v30 = vmul.u32 24, %v365_v16  ;;  %vm5205_vm13 = vmand %vm894_vm7, %vm846_vm6 }
  0x4d   : > { %4520 = vmatprep.mubr.msk.f32.mxu0 %vm1281_vm1, %v1257_v31 }
  0x50   : > { %4521 = vmatmul.mubr.msk.f32.gmra.mxu0 %vm1281_vm1, %v1258_v32  ;;  %v5165_v31 = vmul.u32.u64.low 2863311531, %v5146_v19  ;;  %v5166_v32 = vmul.u32.u64.high 2863311531, %v5146_v19, %v5165_v31 }
  0x51   : > { %4523 = vmatprep.mubr.msk.f32.mxu0 %vm1281_vm1, %v1259_v33 }
  0x52   : > { %v431_v56 = vshrl.u32 %v5166_v32, 4 }
  0x54   : > { %4524 = vmatmul.mubr.msk.f32.gmra.mxu0 %vm1281_vm1, %v1260_v34  ;;  %v5169_v33 = vmul.u32.u64.low 2863311531, %v5153_v23  ;;  %v5170_v34 = vmul.u32.u64.high 2863311531, %v5153_v23, %v5169_v33  ;;  %v432_v14 = vmul.u32 24, %v431_v56 }
  0x55   : > { %4526 = vmatprep.mubr.msk.f32.mxu0 %vm1281_vm1, %v1261_v35  ;;  %v345_v35 = vsub.s32 %v269_v55, %v344_v20 }
  0x56   : > { %v442_v59 = vshrl.u32 %v5170_v34, 4 }
  0x57   : > { %vm845_vm8 = vcmp.ne.s32.totalorder %v345_v35, 0  ;;  %vm893_vm10 = vcmp.lt.s32.totalorder %v345_v35, 0  ;;  %v989_v54 = vadd.s32 24, %v345_v35 }
  0x58   : > { %4527 = vmatmul.mubr.msk.f32.gmra.mxu0 %vm1281_vm1, %v1262_v36  ;;  %v376_v36 = vshrl.u32 %v5132_v10, 4  ;;  %vm941_vm14 = vmand %vm893_vm10, %vm845_vm8  ;;  %v443_v16 = vmul.u32 24, %v442_v59 }
  0x59   : > { %4529 = vmatprep.mubr.msk.f32.mxu0 %vm1281_vm1, %v1263_v37  ;;  %v988_v37 = vadd.s32 24, %v334_v13  ;;  %v5240_v15 = vsel %vm941_vm14, %v989_v54, %v345_v35 }
  0x5b   : > { %v5220_v1 = vsel %vm5185_vm9, %v988_v37, %v334_v13 }
  0x5c   : > { %4530 = vmatmul.mubr.msk.f32.gmra.mxu0 %vm1281_vm1, %v1264_v38  ;;  %v5174_v38 = vadd.s32 96, %v5095_v50  ;;  %vm1084_vm3 = vcmp.ge.s32.totalorder %v5220_v1, 1  ;;  %vm1132_vm4 = vcmp.le.s32.totalorder %v5220_v1, 16  ;;  %v5399_v1 = vadd.s32 144, %v5095_v50 }
  0x5d   : > { %4532 = vmatprep.mubr.msk.f32.mxu0 %vm1281_vm1, %v1265_v39  ;;  %v987_v39 = vadd.s32 24, %v323_v28 }
  0x5e   : > { %v5190_v49 = vmul.u32.u64.low 2863311531, %v5174_v38  ;;  %v5191_v51 = vmul.u32.u64.high 2863311531, %v5174_v38, %v5190_v49 }
  0x5f   : > { %v5231_v7 = vsel %vm5198_vm11, %v987_v39, %v323_v28  ;;  %v5294_v28 = vadd.s32 128, %v5095_v50 }
  0x60   : > { %4533 = vmatmul.mubr.msk.f32.gmra.mxu0 %vm1281_vm1, %v1266_v40  ;;  %v367_v40 = vsub.s32 %v271_v60, %v366_v30 }
  0x61   : > { %4535 = vmatprep.mubr.msk.f32.mxu0 %vm1281_vm1, %v1267_v41  ;;  %v398_v41 = vshrl.u32 %v5143_v18, 4 }
  0x62   : > { %vm847_vm12 = vcmp.ne.s32.totalorder %v367_v40, 0  ;;  %vm895_vm15 = vcmp.lt.s32.totalorder %v367_v40, 0  ;;  %v991_v9 = vadd.s32 24, %v367_v40 }
  0x63   : > { %v399_v55 = vmul.u32 24, %v398_v41  ;;  %vm943_vm0 = vmand %vm895_vm15, %vm847_vm12  ;;  %v5324_v41 = vld [vmem:[%s8331_s2] ss:$0 sm:$0xff] }
  0x64   : > { %4536 = vmatmul.mubr.msk.f32.gmra.mxu0 %vm1281_vm1, %v1268_v42  ;;  %v990_v42 = vadd.s32 24, %v356_v29 }
  0x65   : > { %4538 = vmatprep.mubr.msk.f32.mxu0 %vm1281_vm1, %v1269_v43  ;;  %v387_v43 = vshrl.u32 %v5150_v22, 4  ;;  %v5234_v10 = vsub.s32 %v5124_v6, %v399_v55  ;;  %v5253_v6 = vmul.u32.u64.low 2863311531, %v5216_v0  ;;  %v5254_v20 = vmul.u32.u64.high 2863311531, %v5216_v0, %v5253_v6 }
  0x66   : > { %v5238_v13 = vsel %vm5205_vm13, %v990_v42, %v356_v29  ;;  %v444_v22 = vsub.s32 %v5153_v23, %v443_v16 }
  0x67   : > { %v388_v58 = vmul.u32 24, %v387_v43  ;;  %vm850_vm5 = vcmp.ne.s32.totalorder %v5234_v10, 0  ;;  %vm898_vm6 = vcmp.lt.s32.totalorder %v5234_v10, 0  ;;  %v486_v39 = vshrl.u32 %v5254_v20, 4 }
  0x68   : > { %4539 = vmatmul.mubr.msk.f32.gmra.mxu0 %vm1281_vm1, %v1270_v44  ;;  %v5179_v44 = vadd.s32 104, %v5095_v50  ;;  %vm5287_vm15 = vmand %vm898_vm6, %vm850_vm5  ;;  %vm854_vm9 = vcmp.ne.s32.totalorder %v444_v22, 0  ;;  %vm902_vm10 = vcmp.lt.s32.totalorder %v444_v22, 0 }
  0x69   : > { %4541 = vmatprep.mubr.msk.f32.mxu0 %vm1281_vm1, %v1271_v45  ;;  %v377_v45 = vmul.u32 24, %v376_v36  ;;  %v998_v36 = vadd.s32 24, %v444_v22  ;;  %v487_v57 = vmul.u32 24, %v486_v39 }
  0x6a   : > { %v5211_v60 = vmul.u32.u64.low 2863311531, %v5179_v44  ;;  %v5212_v61 = vmul.u32.u64.high 2863311531, %v5179_v44, %v5211_v60 }
  0x6b   : > { %v5223_v3 = vsub.s32 %v5119_v2, %v377_v45  ;;  %v5244_v2 = vsub.s32 %v5128_v8, %v388_v58  ;;  %v453_v8 = vshrl.u32 %v5191_v51, 4  ;;  %v5423_v16 = vsub.s32 %v5216_v0, %v487_v57  ;;  %v4120_v0 = vld [vmem:[%s8332_s3 + $0x28] sm:$0xff] }
  0x6c   : > { %4542 = vmatmul.mubr.msk.f32.gmra.mxu0 %vm1281_vm1, %v1272_v46  ;;  %v420_v46 = vshrl.u32 %v5157_v25, 4  ;;  %v464_v24 = vshrl.u32 %v5212_v61, 4  ;;  %4547 = vmatprep.subr.mxu1 %v4120_v0  ;;  %v4119_v25 = vld [vmem:[%s8332_s3 + $0x20] sm:$0xff] }
  0x6d   : > { %4544 = vmatprep.mubr.msk.f32.mxu0 %vm1281_vm1, %v1273_v47  ;;  %v409_v47 = vshrl.u32 %v5161_v27, 4  ;;  %vm896_vm2 = vcmp.lt.s32.totalorder %v5223_v3, 0  ;;  %v992_v21 = vadd.s32 24, %v5223_v3  ;;  %vm849_vm7 = vcmp.ne.s32.totalorder %v5244_v2, 0  ;;  %4548 = vmatpush3.msra.mxu1 %v4120_v0 }
  0x6e   : > { %v421_v62 = vmul.u32 24, %v420_v46  ;;  %vm897_vm8 = vcmp.lt.s32.totalorder %v5244_v2, 0  ;;  %v454_v26 = vmul.u32 24, %v453_v8  ;;  %v475_v27 = vshrl.u32 %v5227_v5, 4  ;;  %4549 = vmatprep.subr.mxu1 %v4119_v25 }
  0x6f   : > { %v410_v63 = vmul.u32 24, %v409_v47  ;;  %v993_v30 = vadd.s32 24, %v5244_v2  ;;  %v465_v34 = vmul.u32 24, %v464_v24  ;;  %4550 = vmatpush3.msra.mxu1 %v4119_v25 }
  0x70   : > { %4545 = vmatmul.mubr.msk.f32.gmra.mxu0 %vm1281_vm1, %v1274_v48  ;;  %v5247_v17 = vsub.s32 %v5135_v11, %v421_v62  ;;  %vm848_vm1 = vcmp.ne.s32.totalorder %v5223_v3, 0  ;;  %v5262_v11 = vsel %vm943_vm0, %v991_v9, %v367_v40  ;;  %v5319_v40 = vadd.s32 136, %v5095_v50 }
  0x71   : > { %v5250_v18 = vsub.s32 %v5138_v12, %v410_v63  ;;  %v433_v12 = vsub.s32 %v5146_v19, %v432_v14  ;;  %vm5277_vm11 = vmand %vm896_vm2, %vm848_vm1  ;;  %v994_v19 = vadd.s32 24, %v5234_v10  ;;  %v5331_v43 = vsub.s32 %v5174_v38, %v454_v26 }
  0x72   : > { %vm852_vm12 = vcmp.ne.s32.totalorder %v5247_v17, 0  ;;  %vm900_vm0 = vcmp.lt.s32.totalorder %v5247_v17, 0  ;;  %vm5300_vm1 = vmand %vm897_vm8, %vm849_vm7  ;;  %v996_v32 = vadd.s32 24, %v5247_v17  ;;  %v476_v45 = vmul.u32 24, %v475_v27 }
  0x73   : > { %vm851_vm13 = vcmp.ne.s32.totalorder %v5250_v18, 0  ;;  %vm899_vm14 = vcmp.lt.s32.totalorder %v5250_v18, 0  ;;  %v995_v31 = vadd.s32 24, %v5250_v18  ;;  %vm853_vm2 = vcmp.ne.s32.totalorder %v433_v12, 0  ;;  %vm5313_vm7 = vmand %vm900_vm0, %vm852_vm12 }
  0x74   : > { %vm901_vm5 = vcmp.lt.s32.totalorder %v433_v12, 0  ;;  %vm5307_vm6 = vmand %vm899_vm14, %vm851_vm13  ;;  %v997_v37 = vadd.s32 24, %v433_v12  ;;  %v5334_v46 = vmul.u32.u64.low 2863311531, %v5294_v28  ;;  %v5335_v47 = vmul.u32.u64.high 2863311531, %v5294_v28, %v5334_v46 }
  0x75   : > { %vm5326_vm8 = vmand %vm901_vm5, %vm853_vm2  ;;  %vm1134_vm13 = vcmp.le.s32.totalorder %v5238_v13, 16  ;;  %vm1085_vm14 = vcmp.ge.s32.totalorder %v5240_v15, 1  ;;  %vm1133_vm0 = vcmp.le.s32.totalorder %v5240_v15, 16  ;;  %v5344_v48 = vsel %vm5277_vm11, %v992_v21, %v5223_v3 }
  0x76   : > { %vm2226_vm2 = vcmask 1045504   ;;  %vm8335_vm5 = vcmask 1046528   ;;  %v5349_v38 = vsel %vm5287_vm15, %v994_v19, %v5234_v10  ;;  %vm950_vm12 = vmand %vm902_vm10, %vm854_vm9  ;;  %v5356_v51 = vsel %vm5300_vm1, %v993_v30, %v5244_v2 }
  0x77   : > { %v5361_v53 = vsel %vm5313_vm7, %v996_v32, %v5247_v17  ;;  %v5366_v54 = vsel %vm5307_vm6, %v995_v31, %v5250_v18  ;;  %v5369_v55 = vsub.s32 %v5179_v44, %v465_v34  ;;  %vm1135_vm10 = vcmp.le.s32.totalorder %v5262_v11, 16  ;;  %vm5382_vm11 = vmand %vm1084_vm3, %vm1132_vm4 }
  0x78   : > { %v5375_v58 = vmul.u32.u64.low 2863311531, %v5319_v40  ;;  %v5376_v59 = vmul.u32.u64.high 2863311531, %v5319_v40, %v5375_v58  ;;  %v5386_v61 = vsel %vm950_vm12, %v998_v36, %v444_v22  ;;  %v5390_v62 = vsel %vm5326_vm8, %v997_v37, %v433_v12 }
  0x79   : > { %vm855_vm15 = vcmp.ne.s32.totalorder %v5331_v43, 0  ;;  %v5394_v63 = vsub.s32 %v5194_v52, %v476_v45  ;;  %vm903_vm3 = vcmp.lt.s32.totalorder %v5331_v43, 0  ;;  %vm8374_vm4 = vcmp.le.s32.totalorder %v5231_v7, 16 }
  0x7a   : > { %vm8375_vm1 = vcmp.ge.s32.totalorder %v5231_v7, 1  ;;  %vm856_vm12 = vcmp.ne.s32.totalorder %v5369_v55, 0  ;;  %vm904_vm9 = vcmp.lt.s32.totalorder %v5369_v55, 0  ;;  %v1000_v52 = vadd.s32 24, %v5369_v55  ;;  %vm5429_vm7 = vmand %vm903_vm3, %vm855_vm15 }
  0x7b   : > { %vm5405_vm6 = vmand %vm8375_vm1, %vm8374_vm4  ;;  %v999_v10 = vadd.s32 24, %v5331_v43  ;;  %vm1089_vm4 = vcmp.ge.s32.totalorder %v5356_v51, 1  ;;  %vm1137_vm1 = vcmp.le.s32.totalorder %v5356_v51, 16  ;;  %vm905_vm8 = vcmp.lt.s32.totalorder %v5394_v63, 0 }
  0x7c   : > { %v1001_v6 = vadd.s32 24, %v5394_v63  ;;  %v497_v20 = vshrl.u32 %v5335_v47, 4  ;;  %vm5449_vm15 = vmand %vm904_vm9, %vm856_vm12  ;;  %v5454_v22 = vmul.u32.u64.low 2863311531, %v5399_v1  ;;  %v5455_v24 = vmul.u32.u64.high 2863311531, %v5399_v1, %v5454_v22 }
  0x7d   : > { %vm5464_vm3 = vmand %vm1085_vm14, %vm1133_vm0  ;;  %v5475_v15 = vsel %vm5429_vm7, %v999_v10, %v5331_v43  ;;  %v508_v34 = vshrl.u32 %v5376_v59, 4  ;;  %vm8386_vm0 = vcmp.ge.s32.totalorder %v5238_v13, 1  ;;  %v5503_v42 = vsel %vm5449_vm15, %v1000_v52, %v5369_v55 }
  0x7e   : > { %vm5490_vm9 = vmand %vm8386_vm0, %vm1134_vm13  ;;  %v5506_v13 = vadd.s32 152, %v5095_v50  ;;  %v498_v47 = vmul.u32 24, %v497_v20  ;;  %vm8389_vm13 = vcmp.ge.s32.totalorder %v5262_v11, 1  ;;  %vm1090_vm7 = vcmp.ge.s32.totalorder %v5349_v38, 1 }
  0x7f   : > { %v5532_v59 = vadd.s32 24, %v5423_v16  ;;  %vm1139_vm12 = vcmp.le.s32.totalorder %v5366_v54, 16  ;;  %vm8393_vm15 = vcmp.ge.s32.totalorder %v5344_v48, 1  ;;  %v519_v12 = vshrl.u32 %v5455_v24, 4 }
  0x80   : > { %v5553_v52 = vmul.u32.u64.low 2863311531, %v5506_v13  ;;  %v5554_v10 = vmul.u32.u64.high 2863311531, %v5506_v13, %v5553_v52  ;;  %v5586_v22 = vadd.s32 168, %v5095_v50  ;;  %vm858_vm0 = vcmp.ne.s32.totalorder %v5423_v16, 0 }
  0x81   : > { %v5595_v51 = vadd.s32 176, %v5095_v50 }
  0x82   : > { %v530_v52 = vshrl.u32 %v5554_v10, 4 }
  0xd4   : > { %v4477_v49 = vpop.f32.mrf.mxu0 }
  0xd5   : > { %v1502_v56 = vadd.f32 %v4477_v49, %v5324_v41  ;;  %v4118_v49 = vld [vmem:[%s8332_s3 + $0x18] sm:$0xff] }
  0xd6   : > { %v1496_v44 = vpop.f32.mrf.mxu0  ;;  %4551 = vmatprep.subr.mxu1 %v4118_v49 }
  0xd7   : > { %v1736_v3 = vmax.f32 %v1502_v56, 0.0  ;;  %v1497_v4 = vadd.f32 %v5324_v41, %v1496_v44  ;;  %4552 = vmatpush3.msra.mxu1 %v4118_v49 }
  0xd8   : > { %v4480_v9 = vpop.f32.mrf.mxu0 }
  0xd9   : > { %v5417_v7 = vsel %vm5382_vm11, %v1736_v3, 0.0  ;;  %v1735_v14 = vmax.f32 %v1497_v4, 0.0  ;;  %v1512_v2 = vadd.f32 %v4480_v9, %v5324_v41  ;;  %vm857_vm11 = vcmp.ne.s32.totalorder %v5394_v63, 0 }
  0xda   : > { %v1506_v17 = vpop.f32.mrf.mxu0  ;;  %v2231_v27 = vrot.slane %v5417_v7, 2  ;;  %v1981_v30 = vrot.slane %v5417_v7, 1  ;;  %vm5481_vm14 = vmand %vm905_vm8, %vm857_vm11  ;;  %vm1138_vm8 = vcmp.le.s32.totalorder %v5349_v38, 16  ;;  %v509_v3 = vmul.u32 24, %v508_v34 }
  0xdb   : > { %v5442_v21 = vsel %vm5405_vm6, %v1735_v14, 0.0  ;;  %v1507_v8 = vadd.f32 %v5324_v41, %v1506_v17  ;;  %v1738_v31 = vmax.f32 %v1512_v2, 0.0  ;;  %vm5525_vm6 = vmand %vm8389_vm13, %vm1135_vm10  ;;  %v5537_v60 = vsel %vm5481_vm14, %v1001_v6, %v5394_v63 }
  0xdc   : > { %v4483_v23 = vpop.f32.mrf.mxu0  ;;  %v8337_v26 = vrot.slane %v5442_v21, 2  ;;  %v8336_v29 = vrot.slane %v5442_v21, 1  ;;  %vm1091_vm10 = vcmp.ge.s32.totalorder %v5366_v54, 1  ;;  %v5546_v4 = vadd.s32 160, %v5095_v50  ;;  %vm5580_vm14 = vmand %vm1089_vm4, %vm1137_vm1 }
  0xdd   : > { %v1737_v32 = vmax.f32 %v1507_v8, 0.0  ;;  %v1522_v45 = vadd.f32 %v4483_v23, %v5324_v41  ;;  %v5541_v11 = vsel %vm5490_vm9, %v1738_v31, 0.0  ;;  %vm8392_vm11 = vcmp.le.s32.totalorder %v5344_v48, 16 }
  0xde   : > { %v1516_v36 = vpop.f32.mrf.mxu0  ;;  %v2232_v37 = vsel %vm2226_vm2, %v8337_v26, %v2231_v27  ;;  %v1982_v39 = vsel %vm8335_vm5, %v8336_v29, %v1981_v30  ;;  %v5572_v6 = vsub.s32 %v5294_v28, %v498_v47  ;;  %v1985_v48 = vrot.slane %v5541_v11, 1 }
  0xdf   : > { %v5510_v43 = vsel %vm5464_vm3, %v1737_v32, 0.0  ;;  %v1517_v46 = vadd.f32 %v5324_v41, %v1516_v36  ;;  %2330 = vrot.lane.b32.xlu1 %v2232_v37, %s4935_s9  ;;  %2080 = vrot.lane.b32.xlu0 %v1982_v39, %s4936_s10  ;;  %vm5560_vm3 = vmand %vm8393_vm15, %vm8392_vm11  ;;  %v1740_v2 = vmax.f32 %v1522_v45, 0.0  ;;  %vm906_vm9 = vcmp.lt.s32.totalorder %v5423_v16, 0 }
  0xe0   : > { %v1983_v55 = vrot.slane %v5510_v43, 1  ;;  %v2233_v56 = vrot.slane %v5510_v43, 2  ;;  %v4486_v58 = vpop.f32.mrf.mxu0  ;;  %v5591_v25 = vmul.u32.u64.low 2863311531, %v5546_v4  ;;  %v5592_v19 = vmul.u32.u64.high 2863311531, %v5546_v4, %v5591_v25  ;;  %vm5646_vm15 = vmand %vm1090_vm7, %vm1138_vm8 }
  0xe1   : > { %v1739_v44 = vmax.f32 %v1517_v46, 0.0  ;;  %v5601_v31 = vsub.s32 %v5319_v40, %v509_v3  ;;  %v5605_v32 = vsel %vm5560_vm3, %v1740_v2, 0.0  ;;  %v1532_v33 = vadd.f32 %v4486_v58, %v5324_v41 }
  0xe2   : > { %v1526_v5 = vpop.f32.mrf.mxu0  ;;  %v2234_v63 = vsel %vm2226_vm2, %v2231_v27, %v2233_v56  ;;  %v1984_v9 = vsel %vm8335_vm5, %v1981_v30, %v1983_v55  ;;  %v1986_v30 = vsel %vm8335_vm5, %v1983_v55, %v1985_v48  ;;  %vm1092_vm4 = vcmp.ge.s32.totalorder %v5361_v53, 1 }
  0xe3   : > { %v5566_v17 = vsel %vm5525_vm6, %v1739_v44, 0.0  ;;  %v1527_v18 = vadd.f32 %v5324_v41, %v1526_v5  ;;  %2332 = vrot.lane.b32.xlu1 %v2234_v63, %s4935_s9  ;;  %2082 = vrot.lane.b32.xlu0 %v1984_v9, %s4936_s10  ;;  %vm1140_vm1 = vcmp.le.s32.totalorder %v5361_v53, 16  ;;  %v2235_v40 = vrot.slane %v5541_v11, 2 }
  0xe4   : > { %v1987_v20 = vrot.slane %v5566_v17, 1  ;;  %v4489_v8 = vpop.f32.mrf.mxu0  ;;  %v2237_v23 = vrot.slane %v5566_v17, 2  ;;  %vm1093_vm13 = vcmp.ge.s32.totalorder %v5390_v62, 1  ;;  %vm1141_vm6 = vcmp.le.s32.totalorder %v5390_v62, 16 }
  0xe5   : > { %v1741_v28 = vmax.f32 %v1527_v18, 0.0  ;;  %v520_v37 = vmul.u32 24, %v519_v12  ;;  %v5623_v39 = vmul.u32.u64.low 2863311531, %v5586_v22  ;;  %v5624_v45 = vmul.u32.u64.high 2863311531, %v5586_v22, %v5623_v39 }
  0xe6   : > { %v1536_v27 = vpop.f32.mrf.mxu0  ;;  %v1988_v24 = vsel %vm8335_vm5, %v1985_v48, %v1987_v20  ;;  %vm859_vm11 = vcmp.ne.s32.totalorder %v5572_v6, 0  ;;  %v5628_v46 = vadd.s32 184, %v5095_v50  ;;  %v1989_v55 = vrot.slane %v5605_v32, 1 }
  0xe7   : > { %v5610_v34 = vsel %vm5580_vm14, %v1741_v28, 0.0  ;;  %v1537_v35 = vadd.f32 %v5324_v41, %v1536_v27  ;;  %2086 = vrot.lane.b32.xlu1 %v1988_v24, %s4936_s10  ;;  %2084 = vrot.lane.b32.xlu0 %v1986_v30, %s4936_s10  ;;  %v5631_v47 = vmul.u32.u64.low 2863311531, %v5595_v51  ;;  %v5632_v49 = vmul.u32.u64.high 2863311531, %v5595_v51, %v5631_v47  ;;  %vm5658_vm14 = vmand %vm1091_vm10, %vm1139_vm12 }
  0xe8   : > { %v5618_v36 = vpop.f32.mrf.mxu0  ;;  %v1991_v57 = vrot.slane %v5610_v34, 1  ;;  %v2238_v58 = vsel %vm2226_vm2, %v2235_v40, %v2237_v23  ;;  %v2236_v44 = vsel %vm2226_vm2, %v2233_v56, %v2235_v40  ;;  %v1742_v5 = vmax.f32 %v1532_v33, 0.0 }
  0xe9   : > { %v1743_v63 = vmax.f32 %v1537_v35, 0.0  ;;  %vm907_vm3 = vcmp.lt.s32.totalorder %v5572_v6, 0  ;;  %v1003_v9 = vadd.s32 24, %v5572_v6  ;;  %vm860_vm7 = vcmp.ne.s32.totalorder %v5601_v31, 0 }
  0xea   : > { %v1546_v56 = vpop.f32.mrf.mxu0  ;;  %v5666_v14 = vsub.s32 %v5399_v1, %v520_v37  ;;  %v541_v2 = vshrl.u32 %v5592_v19, 4  ;;  %v5670_v18 = vmul.u32.u64.low 2863311531, %v5628_v46  ;;  %v5671_v48 = vmul.u32.u64.high 2863311531, %v5628_v46, %v5670_v18  ;;  %vm5715_vm8 = vmand %vm907_vm3, %vm859_vm11 }
  0xeb   : > { %2336 = vrot.lane.b32.xlu1 %v2238_v58, %s4935_s9  ;;  %2334 = vrot.lane.b32.xlu0 %v2236_v44, %s4935_s9  ;;  %v5674_v54 = vadd.s32 192, %v5095_v50  ;;  %v2239_v0 = vrot.slane %v5605_v32, 2  ;;  %v2241_v12 = vrot.slane %v5610_v34, 2  ;;  %v1992_v10 = vsel %vm8335_vm5, %v1989_v55, %v1991_v57 }
  0xec   : > { %v1990_v1 = vsel %vm8335_vm5, %v1987_v20, %v1989_v55  ;;  %v5684_v28 = vsel %vm5646_vm15, %v1742_v5, 0.0  ;;  %v1542_v25 = vadd.f32 %v4489_v8, %v5324_v41  ;;  %v5689_v19 = vsel %vm5658_vm14, %v1743_v63, 0.0  ;;  %v5696_v20 = vpop.f32.mrf.mxu0  ;;  %vm5702_vm15 = vmand %vm906_vm9, %vm858_vm0 }
  0xed   : > { %v1547_v27 = vadd.f32 %v5324_v41, %v1546_v56  ;;  %v531_v24 = vmul.u32 24, %v530_v52  ;;  %vm861_vm14 = vcmp.ne.s32.totalorder %v5666_v14, 0  ;;  %vm909_vm5 = vcmp.lt.s32.totalorder %v5666_v14, 0  ;;  %vm5729_vm0 = vmand %vm1092_vm4, %vm1140_vm1 }
  0xee   : > { %v552_v30 = vshrl.u32 %v5624_v45, 4  ;;  %vm1095_vm10 = vcmp.ge.s32.totalorder %v5475_v15, 1  ;;  %vm1143_vm12 = vcmp.le.s32.totalorder %v5475_v15, 16  ;;  %v542_v35 = vmul.u32 24, %v541_v2  ;;  %vm5744_vm9 = vmand %vm1093_vm13, %vm1141_vm6  ;;  %v1556_v63 = vpop.f32.mrf.mxu0 }
  0xef   : > { %2090 = vrot.lane.b32.xlu1 %v1992_v10, %s4936_s10  ;;  %2088 = vrot.lane.b32.xlu0 %v1990_v1, %s4936_s10  ;;  %v563_v40 = vshrl.u32 %v5632_v49, 4  ;;  %v5721_v37 = vmul.u32.u64.low 2863311531, %v5674_v54  ;;  %v5722_v39 = vmul.u32.u64.high 2863311531, %v5674_v54, %v5721_v37  ;;  %v1993_v45 = vrot.slane %v5684_v28, 1  ;;  %vm5778_vm13 = vmand %vm909_vm5, %vm861_vm14 }
  0xf0   : > { %v1995_v55 = vrot.slane %v5689_v19, 1  ;;  %v2242_v49 = vsel %vm2226_vm2, %v2239_v0, %v2241_v12  ;;  %v2240_v58 = vsel %vm2226_vm2, %v2237_v23, %v2239_v0  ;;  %v1744_v44 = vmax.f32 %v1542_v25, 0.0 }
  0xf1   : > { %v1745_v3 = vmax.f32 %v1547_v27, 0.0  ;;  %v5754_v5 = vsel %vm5702_vm15, %v5532_v59, %v5423_v16  ;;  %v1004_v23 = vadd.s32 24, %v5601_v31  ;;  %vm8410_vm4 = vcmp.lt.s32.totalorder %v5601_v31, 0 }
  0xf2   : > { %vm5761_vm1 = vmand %vm8410_vm4, %vm860_vm7  ;;  %v5768_v38 = vsel %vm5715_vm8, %v1003_v9, %v5572_v6  ;;  %v5771_v56 = vsub.s32 %v5506_v13, %v531_v24  ;;  %v1005_v16 = vadd.s32 24, %v5666_v14  ;;  %v553_v59 = vmul.u32 24, %v552_v30 }
  0xf3   : > { %2340 = vrot.lane.b32.xlu1 %v2242_v49, %s4935_s9  ;;  %2338 = vrot.lane.b32.xlu0 %v2240_v58, %s4935_s9  ;;  %v5783_v2 = vsub.s32 %v5546_v4, %v542_v35  ;;  %v574_v6 = vshrl.u32 %v5671_v48, 4  ;;  %v564_v9 = vmul.u32 24, %v563_v40  ;;  %v5787_v13 = vadd.s32 200, %v5095_v50 }
  0xf4   : > { %v2243_v18 = vrot.slane %v5684_v28, 2  ;;  %v2245_v0 = vrot.slane %v5689_v19, 2  ;;  %vm8415_vm6 = vcmask 1046528   ;;  %v5799_v4 = vsel %vm5729_vm0, %v1744_v44, 0.0 }
  0xf5   : > { %v1996_v10 = vsel %vm8415_vm6, %v1993_v45, %v1995_v55  ;;  %vm8416_vm5 = vmmov %vm8415_vm6  ;;  %v1552_v48 = vadd.f32 %v5618_v36, %v5324_v41  ;;  %v5805_v25 = vsel %vm5744_vm9, %v1745_v3, 0.0  ;;  %v1557_v27 = vadd.f32 %v5324_v41, %v1556_v63 }
  0xf6   : > { %v1994_v1 = vsel %vm8416_vm5, %v1991_v57, %v1993_v45  ;;  %vm1096_vm11 = vcmp.ge.s32.totalorder %v5503_v42, 1  ;;  %vm1144_vm3 = vcmp.le.s32.totalorder %v5503_v42, 16  ;;  %v5812_v57 = vpop.f32.mrf.mxu0  ;;  %v5817_v36 = vsel %vm5761_vm1, %v1004_v23, %v5601_v31  ;;  %vm5869_vm6 = vmand %vm1095_vm10, %vm1143_vm12 }
  0xf7   : > { %2094 = vrot.lane.b32.xlu1 %v1996_v10, %s4936_s10  ;;  %2092 = vrot.lane.b32.xlu0 %v1994_v1, %s4936_s10  ;;  %v5820_v8 = vadd.s32 24, %v5771_v56  ;;  %v5825_v24 = vsel %vm5778_vm13, %v1005_v16, %v5666_v14  ;;  %v5828_v30 = vsub.s32 %v5586_v22, %v553_v59  ;;  %vm1097_vm7 = vcmp.ge.s32.totalorder %v5537_v60, 1 }
  0xf8   : > { %vm1145_vm8 = vcmp.le.s32.totalorder %v5537_v60, 16  ;;  %v5833_v33 = vadd.s32 24, %v5783_v2  ;;  %v575_v31 = vmul.u32 24, %v574_v6  ;;  %v5836_v35 = vsub.s32 %v5595_v51, %v564_v9  ;;  %v1566_v58 = vpop.f32.mrf.mxu0 }
  0xf9   : > { %v585_v40 = vshrl.u32 %v5722_v39, 4  ;;  %v1997_v37 = vrot.slane %v5799_v4, 1  ;;  %v1999_v14 = vrot.slane %v5805_v25, 1  ;;  %v2246_v22 = vsel %vm2226_vm2, %v2243_v18, %v2245_v0 }
  0xfa   : > { %v2244_v45 = vsel %vm2226_vm2, %v2241_v12, %v2243_v18  ;;  %vm862_vm15 = vcmp.ne.s32.totalorder %v5771_v56, 0  ;;  %vm910_vm14 = vcmp.lt.s32.totalorder %v5771_v56, 0  ;;  %vm8417_vm0 = vcmp.le.s32.totalorder %v5386_v61, 16 }
  0xfb   : > { %vm8418_vm9 = vcmp.ge.s32.totalorder %v5386_v61, 1  ;;  %v1746_v39 = vmax.f32 %v1552_v48, 0.0  ;;  %v1747_v47 = vmax.f32 %v1557_v27, 0.0  ;;  %2344 = vrot.lane.b32.xlu1 %v2246_v22, %s4935_s9  ;;  %2342 = vrot.lane.b32.xlu0 %v2244_v45, %s4935_s9  ;;  %vm863_vm1 = vcmp.ne.s32.totalorder %v5783_v2, 0 }
  0xfc   : > { %vm5853_vm4 = vmand %vm8418_vm9, %vm8417_vm0  ;;  %vm911_vm13 = vcmp.lt.s32.totalorder %v5783_v2, 0  ;;  %v5862_v12 = vmul.u32.u64.low 2863311531, %v5787_v13  ;;  %v5863_v49 = vmul.u32.u64.high 2863311531, %v5787_v13, %v5862_v12  ;;  %vm864_vm5 = vcmp.ne.s32.totalorder %v5828_v30, 0 }
  0xfd   : > { %v5876_v44 = vadd.s32 24, %v5828_v30  ;;  %v5879_v53 = vadd.s32 208, %v5095_v50  ;;  %v5882_v3 = vsub.s32 %v5628_v46, %v575_v31  ;;  %vm865_vm9 = vcmp.ne.s32.totalorder %v5836_v35, 0 }
  0xfe   : > { %vm913_vm10 = vcmp.lt.s32.totalorder %v5836_v35, 0  ;;  %v586_v15 = vmul.u32 24, %v585_v40  ;;  %v2247_v23 = vrot.slane %v5799_v4, 2  ;;  %v2249_v63 = vrot.slane %v5805_v25, 2 }
  0xff   : > { %vm8423_vm12 = vcmask 1046528   ;;  %v5896_v46 = vsel %vm5853_vm4, %v1746_v39, 0.0  ;;  %v1562_v59 = vadd.f32 %v5696_v20, %v5324_v41  ;;  %v5902_v52 = vsel %vm5869_vm6, %v1747_v47, 0.0  ;;  %vm5945_vm4 = vmand %vm1096_vm11, %vm1144_vm3 }
 0x100   : > { %v2000_v62 = vsel %vm8423_vm12, %v1997_v37, %v1999_v14  ;;  %vm8424_vm0 = vmmov %vm8423_vm12  ;;  %v1567_v6 = vadd.f32 %v5324_v41, %v1566_v58  ;;  %v5912_v9 = vadd.s32 216, %v5095_v50  ;;  %v5919_v10 = vadd.s32 224, %v5095_v50 }
 0x101   : > { %v1998_v16 = vsel %vm8424_vm0, %v1995_v55, %v1997_v37  ;;  %2098 = vrot.lane.b32.xlu1 %v2000_v62, %s4936_s10  ;;  %v5909_v55 = vpop.f32.mrf.mxu0  ;;  %v5915_v20 = vmul.u32.u64.low 2863311531, %v5879_v53  ;;  %v5916_v18 = vmul.u32.u64.high 2863311531, %v5879_v53, %v5915_v20  ;;  %vm866_vm12 = vcmp.ne.s32.totalorder %v5882_v3, 0  ;;  %vm5957_vm0 = vmand %vm1097_vm7, %vm1145_vm8 }
 0x102   : > { %2096 = vrot.lane.b32.xlu0 %v1998_v16, %s4936_s10  ;;  %v5925_v1 = vadd.s32 24, %v5836_v35  ;;  %v5928_v48 = vsub.s32 %v5674_v54, %v586_v15  ;;  %v5931_v27 = vadd.s32 232, %v5095_v50  ;;  %v2001_v31 = vrot.slane %v5896_v46, 1  ;;  %vm5973_vm11 = vmand %vm910_vm14, %vm862_vm15 }
 0x103   : > { %v2003_v40 = vrot.slane %v5902_v52, 1  ;;  %v2250_v37 = vsel %vm2226_vm2, %v2247_v23, %v2249_v63  ;;  %v2248_v22 = vsel %vm2226_vm2, %v2245_v0, %v2247_v23  ;;  %v1748_v45 = vmax.f32 %v1562_v59, 0.0  ;;  %v1576_v0 = vpop.f32.mrf.mxu0  ;;  %vm5995_vm14 = vmand %vm911_vm13, %vm863_vm1 }
 0x104   : > { %v1749_v51 = vmax.f32 %v1567_v6, 0.0  ;;  %vm914_vm6 = vcmp.lt.s32.totalorder %v5882_v3, 0  ;;  %v596_v39 = vshrl.u32 %v5863_v49, 4  ;;  %vm867_vm3 = vcmp.ne.s32.totalorder %v5928_v48, 0 }
 0x105   : > { %2348 = vrot.lane.b32.xlu1 %v2250_v37, %s4935_s9  ;;  %v5962_v47 = vmul.u32.u64.low 2863311531, %v5912_v9  ;;  %v5963_v12 = vmul.u32.u64.high 2863311531, %v5912_v9, %v5962_v47  ;;  %v5966_v61 = vmul.u32.u64.low 2863311531, %v5919_v10  ;;  %v5967_v58 = vmul.u32.u64.high 2863311531, %v5919_v10, %v5966_v61 }
 0x106   : > { %2346 = vrot.lane.b32.xlu0 %v2248_v22, %s4935_s9  ;;  %vm915_vm7 = vcmp.lt.s32.totalorder %v5928_v48, 0  ;;  %v5980_v60 = vmul.u32.u64.low 2863311531, %v5931_v27  ;;  %v5981_v15 = vmul.u32.u64.high 2863311531, %v5931_v27, %v5980_v60  ;;  %v2251_v23 = vrot.slane %v5896_v46, 2 }
 0x107   : > { %v2253_v62 = vrot.slane %v5902_v52, 2  ;;  %vm8431_vm8 = vcmask 1046528   ;;  %v6001_v20 = vsel %vm5945_vm4, %v1748_v45, 0.0  ;;  %v1572_v37 = vadd.f32 %v5812_v57, %v5324_v41  ;;  %v6022_v57 = vpop.f32.mrf.mxu0 }
 0x108   : > { %v2004_v16 = vsel %vm8431_vm8, %v2001_v31, %v2003_v40  ;;  %vm8432_vm15 = vmmov %vm8431_vm8  ;;  %v6007_v22 = vsel %vm5957_vm0, %v1749_v51, 0.0  ;;  %vm8435_vm1 = vcmp.lt.s32.totalorder %v5828_v30, 0  ;;  %vm1100_vm4 = vcmp.ge.s32.totalorder %v5817_v36, 1 }
 0x109   : > { %v2002_v59 = vsel %vm8432_vm15, %v1999_v14, %v2001_v31  ;;  %v1577_v14 = vadd.f32 %v5324_v41, %v1576_v0  ;;  %2102 = vrot.lane.b32.xlu1 %v2004_v16, %s4936_s10  ;;  %vm6016_vm13 = vmand %vm8435_vm1, %vm864_vm5  ;;  %vm1148_vm8 = vcmp.le.s32.totalorder %v5817_v36, 16  ;;  %v597_v45 = vmul.u32 24, %v596_v39 }
 0x10a   : > { %2100 = vrot.lane.b32.xlu0 %v2002_v59, %s4936_s10  ;;  %vm6028_vm0 = vmand %vm913_vm10, %vm865_vm9  ;;  %v607_v51 = vshrl.u32 %v5916_v18, 4  ;;  %v6037_v42 = vsel %vm5973_vm11, %v5820_v8, %v5771_v56  ;;  %vm1101_vm5 = vcmp.ge.s32.totalorder %v5825_v24, 1  ;;  %vm1149_vm15 = vcmp.le.s32.totalorder %v5825_v24, 16  ;;  %v1586_v59 = vpop.f32.mrf.mxu0 }
 0x10b   : > { %v6045_v0 = vsel %vm5995_vm14, %v5833_v33, %v5783_v2  ;;  %vm6051_vm9 = vmand %vm914_vm6, %vm866_vm12  ;;  %v1010_v56 = vadd.s32 24, %v5882_v3  ;;  %v1011_v8 = vadd.s32 24, %v5928_v48  ;;  %v2005_v39 = vrot.slane %v6001_v20, 1 }
 0x10c   : > { %v2007_v47 = vrot.slane %v6007_v22, 1  ;;  %v2254_v2 = vsel %vm2226_vm2, %v2251_v23, %v2253_v62  ;;  %v2252_v33 = vsel %vm2226_vm2, %v2249_v63, %v2251_v23  ;;  %vm6069_vm10 = vmand %vm915_vm7, %vm867_vm3  ;;  %vm8444_vm12 = vcmp.le.s32.totalorder %v5754_v5, 16 }
 0x10d   : > { %vm8445_vm6 = vcmp.ge.s32.totalorder %v5754_v5, 1  ;;  %v1750_v60 = vmax.f32 %v1572_v37, 0.0  ;;  %v1751_v16 = vmax.f32 %v1577_v14, 0.0  ;;  %2352 = vrot.lane.b32.xlu1 %v2254_v2, %s4935_s9  ;;  %v6087_v63 = vsel %vm6016_vm13, %v5876_v44, %v5828_v30 }
 0x10e   : > { %vm6077_vm11 = vmand %vm8445_vm6, %vm8444_vm12  ;;  %2350 = vrot.lane.b32.xlu0 %v2252_v33, %s4935_s9  ;;  %v6093_v5 = vsel %vm6028_vm0, %v5925_v1, %v5836_v35  ;;  %vm8448_vm3 = vcmp.le.s32.totalorder %v5768_v38, 16  ;;  %vm8449_vm7 = vcmp.ge.s32.totalorder %v5768_v38, 1  ;;  %v6104_v6 = vsub.s32 %v5787_v13, %v597_v45 }
 0x10f   : > { %vm6099_vm14 = vmand %vm8449_vm7, %vm8448_vm3  ;;  %v618_v30 = vshrl.u32 %v5963_v12, 4  ;;  %v608_v44 = vmul.u32 24, %v607_v51  ;;  %v629_v37 = vshrl.u32 %v5967_v58, 4  ;;  %vm1102_vm1 = vcmp.ge.s32.totalorder %v6037_v42, 1 }
 0x110   : > { %vm1150_vm13 = vcmp.le.s32.totalorder %v6037_v42, 16  ;;  %v6113_v38 = vsel %vm6051_vm9, %v1010_v56, %v5882_v3  ;;  %v6118_v35 = vsel %vm6069_vm10, %v1011_v8, %v5928_v48  ;;  %v640_v13 = vshrl.u32 %v5981_v15, 4  ;;  %vm6186_vm7 = vmand %vm1101_vm5, %vm1149_vm15 }
 0x111   : > { %v6122_v1 = vadd.s32 240, %v5095_v50  ;;  %v2255_v12 = vrot.slane %v6001_v20, 2  ;;  %v2257_v58 = vrot.slane %v6007_v22, 2  ;;  %vm8452_vm0 = vcmask 1046528  }
 0x112   : > { %v2008_v14 = vsel %vm8452_vm0, %v2005_v39, %v2007_v47  ;;  %vm8453_vm9 = vmmov %vm8452_vm0  ;;  %vm1103_vm10 = vcmp.ge.s32.totalorder %v6045_v0, 1  ;;  %vm1151_vm12 = vcmp.le.s32.totalorder %v6045_v0, 16  ;;  %v6136_v48 = vsel %vm6077_vm11, %v1750_v60, 0.0 }
 0x113   : > { %v2006_v3 = vsel %vm8453_vm9, %v2003_v40, %v2005_v39  ;;  %v1582_v15 = vadd.f32 %v5909_v55, %v5324_v41  ;;  %v6142_v31 = vsel %vm6099_vm14, %v1751_v16, 0.0  ;;  %v1587_v54 = vadd.f32 %v5324_v41, %v1586_v59  ;;  %2106 = vrot.lane.b32.xlu1 %v2008_v14, %s4936_s10  ;;  %v6147_v40 = vpop.f32.mrf.mxu0  ;;  %vm6172_vm11 = vmand %vm1100_vm4, %vm1148_vm8 }
 0x114   : > { %2104 = vrot.lane.b32.xlu0 %v2006_v3, %s4936_s10  ;;  %vm868_vm6 = vcmp.ne.s32.totalorder %v6104_v6, 0  ;;  %v619_v45 = vmul.u32 24, %v618_v30  ;;  %v6151_v51 = vsub.s32 %v5879_v53, %v608_v44  ;;  %v630_v18 = vmul.u32 24, %v629_v37  ;;  %vm8458_vm5 = vmmov %vm8452_vm0 }
 0x115   : > { %v641_v55 = vmul.u32 24, %v640_v13  ;;  %v6154_v56 = vadd.s32 248, %v5095_v50  ;;  %v6157_v8 = vmul.u32.u64.low 2863311531, %v6122_v1  ;;  %v6158_v39 = vmul.u32.u64.high 2863311531, %v6122_v1, %v6157_v8  ;;  %vm8459_vm15 = vmmov %vm8452_vm0 }
 0x116   : > { %v2009_v2 = vrot.slane %v6136_v48, 1  ;;  %v2011_v33 = vrot.slane %v6142_v31, 1  ;;  %v2258_v61 = vsel %vm2226_vm2, %v2255_v12, %v2257_v58  ;;  %v2256_v53 = vsel %vm2226_vm2, %v2253_v62, %v2255_v12  ;;  %v1596_v62 = vpop.f32.mrf.mxu0  ;;  %vm6233_vm14 = vmand %vm1102_vm1, %vm1150_vm13 }
 0x117   : > { %v1752_v60 = vmax.f32 %v1582_v15, 0.0  ;;  %v1753_v16 = vmax.f32 %v1587_v54, 0.0  ;;  %2356 = vrot.lane.b32.xlu1 %v2258_v61, %s4935_s9  ;;  %vm916_vm3 = vcmp.lt.s32.totalorder %v6104_v6, 0  ;;  %v6180_v23 = vadd.s32 24, %v6104_v6  ;;  %vm6251_vm1 = vmand %vm1103_vm10, %vm1151_vm12 }
 0x118   : > { %2354 = vrot.lane.b32.xlu0 %v2256_v53, %s4935_s9  ;;  %v6191_v59 = vsub.s32 %v5912_v9, %v619_v45  ;;  %vm869_vm4 = vcmp.ne.s32.totalorder %v6151_v51, 0  ;;  %vm917_vm8 = vcmp.lt.s32.totalorder %v6151_v51, 0  ;;  %v6196_v30 = vadd.s32 24, %v6151_v51  ;;  %vm6275_vm10 = vmand %vm916_vm3, %vm868_vm6 }
 0x119   : > { %v6199_v44 = vsub.s32 %v5931_v27, %v641_v55  ;;  %v6202_v24 = vsub.s32 %v5919_v10, %v630_v18  ;;  %v6205_v37 = vmul.u32.u64.low 2863311531, %v6154_v56  ;;  %v6206_v13 = vmul.u32.u64.high 2863311531, %v6154_v56, %v6205_v37  ;;  %vm6285_vm12 = vmand %vm917_vm8, %vm869_vm4 }
 0x11a   : > { %v2259_v9 = vrot.slane %v6136_v48, 2  ;;  %v8338_v12 = vrot.slane %v6142_v31, 2  ;;  %v2012_v14 = vsel %vm8458_vm5, %v2009_v2, %v2011_v33  ;;  %v2010_v27 = vsel %vm8459_vm15, %v2007_v47, %v2009_v2 }
 0x11b   : > { %v6218_v10 = vsel %vm6172_vm11, %v1752_v60, 0.0  ;;  %v1592_v3 = vadd.f32 %v6022_v57, %v5324_v41  ;;  %v6224_v15 = vsel %vm6186_vm7, %v1753_v16, 0.0  ;;  %v1597_v54 = vadd.f32 %v5324_v41, %v1596_v62  ;;  %2110 = vrot.lane.b32.xlu1 %v2012_v14, %s4936_s10  ;;  %v6239_v57 = vpop.f32.mrf.mxu0 }
 0x11c   : > { %2108 = vrot.lane.b32.xlu0 %v2010_v27, %s4936_s10  ;;  %vm1152_vm9 = vcmp.le.s32.totalorder %v6087_v63, 16  ;;  %vm870_vm11 = vcmp.ne.s32.totalorder %v6191_v59, 0  ;;  %vm918_vm7 = vcmp.lt.s32.totalorder %v6191_v59, 0  ;;  %v1014_v45 = vadd.s32 24, %v6191_v59 }
 0x11d   : > { %v6245_v18 = vadd.s32 256, %v5095_v50  ;;  %vm1153_vm5 = vcmp.le.s32.totalorder %v6093_v5, 16  ;;  %vm871_vm15 = vcmp.ne.s32.totalorder %v6202_v24, 0  ;;  %vm919_vm0 = vcmp.lt.s32.totalorder %v6202_v24, 0  ;;  %v1606_v16 = vpop.f32.mrf.mxu0  ;;  %vm6295_vm3 = vmand %vm918_vm7, %vm870_vm11 }
 0x11e   : > { %v651_v55 = vshrl.u32 %v6158_v39, 4  ;;  %v6261_v8 = vadd.s32 264, %v5095_v50  ;;  %v2013_v2 = vrot.slane %v6218_v10, 1  ;;  %v8339_v0 = vrot.slane %v6224_v15, 1  ;;  %vm6309_vm4 = vmand %vm919_vm0, %vm871_vm15 }
 0x11f   : > { %v2262_v61 = vsel %vm2226_vm2, %v2259_v9, %v8338_v12  ;;  %v2260_v53 = vsel %vm2226_vm2, %v2257_v58, %v2259_v9  ;;  %v1754_v49 = vmax.f32 %v1592_v3, 0.0  ;;  %v1755_v60 = vmax.f32 %v1597_v54, 0.0 }
 0x120   : > { %2360 = vrot.lane.b32.xlu1 %v2262_v61, %s4935_s9  ;;  %2358 = vrot.lane.b32.xlu0 %v2260_v53, %s4935_s9  ;;  %vm872_vm13 = vcmp.ne.s32.totalorder %v6199_v44, 0  ;;  %vm920_vm6 = vcmp.lt.s32.totalorder %v6199_v44, 0  ;;  %v1016_v62 = vadd.s32 24, %v6199_v44  ;;  %v1015_v37 = vadd.s32 24, %v6202_v24 }
 0x121   : > { %v6302_v9 = vmul.u32.u64.low 2863311531, %v6245_v18  ;;  %v6303_v14 = vmul.u32.u64.high 2863311531, %v6245_v18, %v6302_v9  ;;  %v662_v3 = vshrl.u32 %v6206_v13, 4  ;;  %v652_v54 = vmul.u32 24, %v651_v55  ;;  %vm6328_vm11 = vmand %vm920_vm6, %vm872_vm13 }
 0x122   : > { %v6315_v61 = vmul.u32.u64.low 2863311531, %v6261_v8  ;;  %v6316_v53 = vmul.u32.u64.high 2863311531, %v6261_v8, %v6315_v61  ;;  %v2263_v29 = vrot.slane %v6218_v10, 2  ;;  %vm8472_vm8 = vcmask 1046528  }
 0x123   : > { %v2016_v9 = vsel %vm8472_vm8, %v2013_v2, %v8339_v0  ;;  %vm8473_vm0 = vmmov %vm8472_vm8  ;;  %v6334_v55 = vsel %vm6233_vm14, %v1754_v49, 0.0  ;;  %v1602_v61 = vadd.f32 %v6147_v40, %v5324_v41  ;;  %v6340_v0 = vsel %vm6251_vm1, %v1755_v60, 0.0  ;;  %v6353_v40 = vpop.f32.mrf.mxu0 }
 0x124   : > { %v2014_v12 = vsel %vm8473_vm0, %v2011_v33, %v2013_v2  ;;  %8476 = vst [vmem:[#allocation3_spill] sm:$0xff] %v6340_v0  ;;  %v1607_v26 = vadd.f32 %v5324_v41, %v1606_v16  ;;  %2114 = vrot.lane.b32.xlu1 %v2016_v9, %s4936_s10  ;;  %vm1106_vm7 = vcmp.ge.s32.totalorder %v6113_v38, 1  ;;  %vm1154_vm13 = vcmp.le.s32.totalorder %v6113_v38, 16 }
 0x125   : > { %2112 = vrot.lane.b32.xlu0 %v2014_v12, %s4936_s10  ;;  %v6351_v33 = vsel %vm6275_vm10, %v6180_v23, %v6104_v6  ;;  %v6359_v47 = vsel %vm6285_vm12, %v6196_v30, %v6151_v51  ;;  %v6362_v12 = vadd.s32 272, %v5095_v50  ;;  %vm1107_vm14 = vcmp.ge.s32.totalorder %v6118_v35, 1 }
 0x126   : > { %vm1155_vm1 = vcmp.le.s32.totalorder %v6118_v35, 16  ;;  %v6369_v6 = vsel %vm6295_vm3, %v1014_v45, %v6191_v59  ;;  %v6374_v23 = vsel %vm6328_vm11, %v1016_v62, %v6199_v44  ;;  %v6379_v51 = vsel %vm6309_vm4, %v1015_v37, %v6202_v24  ;;  %vm6476_vm11 = vmand %vm1106_vm7, %vm1154_vm13 }
 0x127   : > { %v6382_v30 = vadd.s32 280, %v5095_v50  ;;  %v2017_v42 = vrot.slane %v6334_v55, 1  ;;  %v2019_v2 = vrot.slane %v6340_v0, 1  ;;  %v8477_v59 = vrot.slane %v6224_v15, 2 }
 0x128   : > { %v8478_v39 = vrot.slane %v6142_v31, 2  ;;  %vm8479_vm15 = vcmp.ge.s32.totalorder %v6087_v63, 1  ;;  %v1756_v49 = vmax.f32 %v1602_v61, 0.0  ;;  %v1757_v60 = vmax.f32 %v1607_v26, 0.0 }
 0x129   : > { %v2266_v45 = vsel %vm2226_vm2, %v2263_v29, %v8477_v59  ;;  %vm6396_vm10 = vmand %vm8479_vm15, %vm1152_vm9  ;;  %v663_v58 = vmul.u32 24, %v662_v3  ;;  %v6403_v16 = vsub.s32 %v6122_v1, %v652_v54  ;;  %vm8482_vm12 = vcmp.ge.s32.totalorder %v6093_v5, 1 }
 0x12a   : > { %v2264_v44 = vsel %vm2226_vm2, %v8478_v39, %v2263_v29  ;;  %2364 = vrot.lane.b32.xlu1 %v2266_v45, %s4935_s9  ;;  %vm1201_vm6 = vmand %vm8482_vm12, %vm1153_vm5  ;;  %v1616_v29 = vpop.f32.mrf.mxu0  ;;  %v673_v63 = vshrl.u32 %v6303_v14, 4  ;;  %v6411_v36 = vmul.u32.u64.low 2863311531, %v6362_v12  ;;  %v6412_v62 = vmul.u32.u64.high 2863311531, %v6362_v12, %v6411_v36 }
 0x12b   : > { %2362 = vrot.lane.b32.xlu0 %v2264_v44, %s4935_s9  ;;  %v6415_v26 = vadd.s32 288, %v5095_v50  ;;  %v684_v37 = vshrl.u32 %v6316_v53, 4  ;;  %v6419_v1 = vmul.u32.u64.low 2863311531, %v6382_v30  ;;  %v6420_v27 = vmul.u32.u64.high 2863311531, %v6382_v30, %v6419_v1  ;;  %vm8483_vm9 = vmmov %vm8473_vm0 }
 0x12c   : > { %v6423_v3 = vadd.s32 296, %v5095_v50  ;;  %v2267_v5 = vrot.slane %v6334_v55, 2  ;;  %v2269_v14 = vrot.slane %v6340_v0, 2  ;;  %v2020_v54 = vsel %vm8483_vm9, %v2017_v42, %v2019_v2  ;;  %vm8485_vm5 = vmmov %vm8473_vm0 }
 0x12d   : > { %v8484_v9 = vrot.slane %v6224_v15, 1  ;;  %v6435_v53 = vsel %vm6396_vm10, %v1756_v49, 0.0  ;;  %v1612_v61 = vadd.f32 %v6239_v57, %v5324_v41  ;;  %v6439_v59 = vsel %vm1201_vm6, %v1757_v60, 0.0  ;;  %vm6488_vm12 = vmand %vm1107_vm14, %vm1155_vm1 }
 0x12e   : > { %8486 = vst [vmem:[#allocation4_spill] sm:$0xff] %v6435_v53  ;;  %8487 = vst [vmem:[#allocation5_spill] sm:$0xff] %v6439_v59  ;;  %vm1108_vm3 = vcmp.ge.s32.totalorder %v6351_v33, 1  ;;  %vm1156_vm4 = vcmp.le.s32.totalorder %v6351_v33, 16  ;;  %v1617_v45 = vadd.f32 %v5324_v41, %v1616_v29  ;;  %2118 = vrot.lane.b32.xlu1 %v2020_v54, %s4936_s10  ;;  %vm1109_vm8 = vcmp.ge.s32.totalorder %v6359_v47, 1 }
 0x12f   : > { %v2018_v13 = vsel %vm8485_vm5, %v8484_v9, %v2017_v42  ;;  %v6446_v42 = vpop.f32.mrf.mxu0  ;;  %vm1157_vm0 = vcmp.le.s32.totalorder %v6359_v47, 16  ;;  %v674_v39 = vmul.u32 24, %v673_v63  ;;  %v6455_v24 = vadd.s32 304, %v5095_v50  ;;  %vm8493_vm13 = vmmov %vm8485_vm5 }
 0x130   : > { %2116 = vrot.lane.b32.xlu0 %v2018_v13, %s4936_s10  ;;  %v6451_v57 = vmul.u32.u64.low 2863311531, %v6415_v26  ;;  %v6452_v44 = vmul.u32.u64.high 2863311531, %v6415_v26, %v6451_v57  ;;  %v6458_v41 = vsub.s32 %v6154_v56, %v663_v58  ;;  %v685_v49 = vmul.u32 24, %v684_v37  ;;  %vm8494_vm14 = vmmov %vm8485_vm5 }
 0x131   : > { %v6461_v60 = vmul.u32.u64.low 2863311531, %v6423_v3  ;;  %v6462_v29 = vmul.u32.u64.high 2863311531, %v6423_v3, %v6461_v60  ;;  %v2021_v36 = vrot.slane %v6435_v53, 1  ;;  %v8341_v1 = vrot.slane %v6439_v59, 1 }
 0x132   : > { %v2270_v63 = vsel %vm2226_vm2, %v2267_v5, %v2269_v14  ;;  %v8488_v54 = vrot.slane %v6224_v15, 2  ;;  %v1758_v58 = vmax.f32 %v1612_v61, 0.0  ;;  %v1759_v37 = vmax.f32 %v1617_v45, 0.0 }
 0x133   : > { %2368 = vrot.lane.b32.xlu1 %v2270_v63, %s4935_s9  ;;  %vm873_vm15 = vcmp.ne.s32.totalorder %v6403_v16, 0  ;;  %vm921_vm10 = vcmp.lt.s32.totalorder %v6403_v16, 0  ;;  %v1017_v13 = vadd.s32 24, %v6403_v16  ;;  %v6494_v61 = vsub.s32 %v6245_v18, %v674_v39 }
 0x134   : > { %v2268_v9 = vsel %vm2226_vm2, %v8488_v54, %v2267_v5  ;;  %v1626_v5 = vpop.f32.mrf.mxu0  ;;  %v6497_v45 = vmul.u32.u64.low 2863311531, %v6455_v24  ;;  %v6498_v57 = vmul.u32.u64.high 2863311531, %v6455_v24, %v6497_v45  ;;  %vm874_vm7 = vcmp.ne.s32.totalorder %v6458_v41, 0 }
 0x135   : > { %2366 = vrot.lane.b32.xlu0 %v2268_v9, %s4935_s9  ;;  %v6502_v60 = vsub.s32 %v6261_v8, %v685_v49  ;;  %v706_v35 = vshrl.u32 %v6420_v27, 4  ;;  %v695_v63 = vshrl.u32 %v6412_v62, 4  ;;  %v2271_v54 = vrot.slane %v6435_v53, 2  ;;  %v6521_v62 = vld [vmem:[%s8331_s2] ss:$0 sm:$0xff] }
 0x136   : > { %v8340_v9 = vrot.slane %v6439_v59, 2  ;;  %v2024_v18 = vsel %vm8493_vm13, %v2021_v36, %v8341_v1  ;;  %v2022_v39 = vsel %vm8494_vm14, %v2019_v2, %v2021_v36  ;;  %v6516_v8 = vsel %vm6476_vm11, %v1758_v58, 0.0  ;;  %v6534_v2 = vpop.f32.mrf.mxu0  ;;  %vm6546_vm13 = vmand %vm921_vm10, %vm873_vm15 }
 0x137   : > { %v1622_v27 = vadd.f32 %v6521_v62, %v6353_v40  ;;  %v6527_v49 = vsel %vm6488_vm12, %v1759_v37, 0.0  ;;  %v1627_v45 = vadd.f32 %v6521_v62, %v1626_v5  ;;  %2122 = vrot.lane.b32.xlu1 %v2024_v18, %s4936_s10  ;;  %vm1110_vm1 = vcmp.ge.s32.totalorder %v6369_v6, 1  ;;  %vm6557_vm11 = vmand %vm1108_vm3, %vm1156_vm4 }
 0x138   : > { %8495 = vst [vmem:[#allocation6_spill] sm:$0xff] %v6527_v49  ;;  %vm1158_vm6 = vcmp.le.s32.totalorder %v6369_v6, 16  ;;  %vm922_vm9 = vcmp.lt.s32.totalorder %v6458_v41, 0  ;;  %v1018_v40 = vadd.s32 24, %v6458_v41  ;;  %vm875_vm5 = vcmp.ne.s32.totalorder %v6494_v61, 0  ;;  %vm6572_vm15 = vmand %vm1109_vm8, %vm1157_vm0 }
 0x139   : > { %2120 = vrot.lane.b32.xlu0 %v2022_v39, %s4936_s10  ;;  %v717_v36 = vshrl.u32 %v6452_v44, 4  ;;  %vm923_vm14 = vcmp.lt.s32.totalorder %v6494_v61, 0  ;;  %v707_v58 = vmul.u32 24, %v706_v35  ;;  %v696_v37 = vmul.u32 24, %v695_v63  ;;  %vm6586_vm8 = vmand %vm922_vm9, %vm874_vm7 }
 0x13a   : > { %v728_v38 = vshrl.u32 %v6462_v29, 4  ;;  %v2025_v44 = vrot.slane %v6516_v8, 1  ;;  %v2027_v18 = vrot.slane %v6527_v49, 1  ;;  %v2274_v39 = vsel %vm2226_vm2, %v2271_v54, %v8340_v9  ;;  %vm6602_vm0 = vmand %vm923_vm14, %vm875_vm5 }
 0x13b   : > { %v2272_v29 = vsel %vm2226_vm2, %v2269_v14, %v2271_v54  ;;  %v1760_v35 = vmax.f32 %v1622_v27, 0.0  ;;  %v1761_v63 = vmax.f32 %v1627_v45, 0.0  ;;  %2372 = vrot.lane.b32.xlu1 %v2274_v39, %s4935_s9  ;;  %vm876_vm3 = vcmp.ne.s32.totalorder %v6502_v60, 0  ;;  %v1636_v14 = vpop.f32.mrf.mxu0 }
 0x13c   : > { %vm924_vm4 = vcmp.lt.s32.totalorder %v6502_v60, 0  ;;  %vm1112_vm10 = vcmp.ge.s32.totalorder %v6374_v23, 1  ;;  %vm1160_vm12 = vcmp.le.s32.totalorder %v6374_v23, 16  ;;  %v6593_v54 = vsel %vm6546_vm13, %v1017_v13, %v6403_v16  ;;  %v6748_v23 = vld [vmem:[%s8332_s3 + $0x40] sm:$0xff] }
 0x13d   : > { %2370 = vrot.lane.b32.xlu0 %v2272_v29, %s4935_s9  ;;  %v1019_v27 = vadd.s32 24, %v6494_v61  ;;  %v718_v45 = vmul.u32 24, %v717_v36  ;;  %v739_v39 = vshrl.u32 %v6498_v57, 4  ;;  %v1020_v29 = vadd.s32 24, %v6502_v60  ;;  %vm972_vm5 = vmand %vm924_vm4, %vm876_vm3  ;;  %4703 = vmatprep.subr.mxu1 %v6748_v23 }
 0x13e   : > { %v6607_v1 = vsub.s32 %v6382_v30, %v707_v58  ;;  %v6610_v16 = vsub.s32 %v6362_v12, %v696_v37  ;;  %v729_v13 = vmul.u32 24, %v728_v38  ;;  %v2275_v36 = vrot.slane %v6516_v8, 2  ;;  %vm6677_vm3 = vmand %vm1110_vm1, %vm1158_vm6 }
 0x13f   : > { %v2277_v57 = vrot.slane %v6527_v49, 2  ;;  %vm8506_vm7 = vcmask 1046528   ;;  %v8507_v0 = vrot.slane %v6439_v59, 1  ;;  %v6626_v12 = vsel %vm6557_vm11, %v1760_v35, 0.0  ;;  %v2689_v35 = vld [vmem:[%s8332_s3 + $0x10] sm:$0xff]  ;;  %vm6732_vm13 = vmand %vm1112_vm10, %vm1160_vm12 }
 0x140   : > { %v2028_v56 = vsel %vm8506_vm7, %v2025_v44, %v2027_v18  ;;  %vm8508_vm9 = vmmov %vm8506_vm7  ;;  %8509 = vst [vmem:[#allocation7_spill] sm:$0xff] %v6626_v12  ;;  %v1632_v30 = vadd.f32 %v6521_v62, %v6446_v42  ;;  %v6632_v58 = vsel %vm6572_vm15, %v1761_v63, 0.0  ;;  %v1637_v37 = vadd.f32 %v6521_v62, %v1636_v14  ;;  %4625 = vmatprep.subr.mxu0 %v2689_v35 }
 0x141   : > { %v2026_v53 = vsel %vm8508_vm9, %v8507_v0, %v2025_v44  ;;  %8510 = vst [vmem:[#allocation8_spill] sm:$0xff] %v6632_v58  ;;  %2126 = vrot.lane.b32.xlu1 %v2028_v56, %s4936_s10  ;;  %v6637_v0 = vpop.f32.mrf.mxu0  ;;  %v6642_v38 = vsel %vm6586_vm8, %v1018_v40, %v6458_v41  ;;  %v6649_v42 = vsel %vm6602_vm0, %v1019_v27, %v6494_v61  ;;  %vm878_vm14 = vcmp.ne.s32.totalorder %v6607_v1, 0 }
 0x142   : > { %2124 = vrot.lane.b32.xlu0 %v2026_v53, %s4936_s10  ;;  %v6652_v44 = vsub.s32 %v6415_v26, %v718_v45  ;;  %v740_v53 = vmul.u32 24, %v739_v39  ;;  %v6655_v5 = vsel %vm972_vm5, %v1020_v29, %v6502_v60  ;;  %vm926_vm15 = vcmp.lt.s32.totalorder %v6607_v1, 0  ;;  %4626 = vmatpush3.msra.mxu0 %v2689_v35 }
 0x143   : > { %v6660_v41 = vsub.s32 %v6423_v3, %v729_v13  ;;  %v2029_v40 = vrot.slane %v6626_v12, 1  ;;  %v2031_v9 = vrot.slane %v6632_v58, 1  ;;  %v2278_v26 = vsel %vm2226_vm2, %v2275_v36, %v2277_v57  ;;  %v1646_v14 = vpop.f32.mrf.mxu0  ;;  %vm6705_vm6 = vmand %vm926_vm15, %vm878_vm14 }
 0x144   : > { %v8511_v61 = vrot.slane %v6439_v59, 2  ;;  %v1762_v33 = vmax.f32 %v1632_v30, 0.0  ;;  %v1763_v63 = vmax.f32 %v1637_v37, 0.0  ;;  %vm877_vm4 = vcmp.ne.s32.totalorder %v6610_v16, 0 }
 0x145   : > { %2376 = vrot.lane.b32.xlu1 %v2278_v26, %s4935_s9  ;;  %vm925_vm8 = vcmp.lt.s32.totalorder %v6610_v16, 0  ;;  %vm8514_vm0 = vcmp.le.s32.totalorder %v6379_v51, 16  ;;  %vm8515_vm7 = vcmp.ge.s32.totalorder %v6379_v51, 1  ;;  %v1022_v47 = vadd.s32 24, %v6607_v1  ;;  %v4525_v29 = vpop.f32.mrf.mxu0 }
 0x146   : > { %v2276_v60 = vsel %vm2226_vm2, %v8511_v61, %v2275_v36  ;;  %vm6689_vm9 = vmand %vm8515_vm7, %vm8514_vm0  ;;  %v1021_v27 = vadd.s32 24, %v6610_v16  ;;  %vm879_vm1 = vcmp.ne.s32.totalorder %v6652_v44, 0  ;;  %v6697_v45 = vsub.s32 %v6455_v24, %v740_v53 }
 0x147   : > { %2374 = vrot.lane.b32.xlu0 %v2276_v60, %s4935_s9  ;;  %v1642_v39 = vadd.f32 %v6521_v62, %v6534_v2  ;;  %vm880_vm5 = vcmp.ne.s32.totalorder %v6660_v41, 0  ;;  %vm927_vm0 = vcmp.lt.s32.totalorder %v6652_v44, 0  ;;  %v6712_v24 = vadd.s32 312, %v5095_v50  ;;  %v1656_v3 = vpop.f32.mrf.mxu0 }
 0x148   : > { %v2279_v13 = vrot.slane %v6626_v12, 2  ;;  %v2281_v2 = vrot.slane %v6632_v58, 2  ;;  %vm1114_vm7 = vcmp.ge.s32.totalorder %v6642_v38, 1  ;;  %vm1162_vm11 = vcmp.le.s32.totalorder %v6642_v38, 16 }
 0x149   : > { %vm8520_vm14 = vcmask 1046528   ;;  %v6726_v30 = vsel %vm6677_vm3, %v1762_v33, 0.0  ;;  %v6738_v53 = vsel %vm6689_vm9, %v1763_v63, 0.0  ;;  %v1647_v26 = vadd.f32 %v6521_v62, %v1646_v14  ;;  %vm6761_vm9 = vmand %vm925_vm8, %vm877_vm4 }
 0x14a   : > { %v2032_v36 = vsel %vm8520_vm14, %v2029_v40, %v2031_v9  ;;  %vm8521_vm15 = vmmov %vm8520_vm14  ;;  %8522 = vst [vmem:[#allocation9_spill] sm:$0xff] %v6726_v30  ;;  %vm1116_vm3 = vcmp.ge.s32.totalorder %v6655_v5, 1  ;;  %vm928_vm14 = vcmp.lt.s32.totalorder %v6660_v41, 0  ;;  %v1024_v61 = vadd.s32 24, %v6660_v41 }
 0x14b   : > { %v2030_v56 = vsel %vm8521_vm15, %v2027_v18, %v2029_v40  ;;  %8525 = vst [vmem:[#allocation10_spill] sm:$0xff] %v6738_v53  ;;  %2130 = vrot.lane.b32.xlu1 %v2032_v36, %s4936_s10  ;;  %v6755_v18 = vsel %vm6705_vm6, %v1022_v47, %v6607_v1  ;;  %v1023_v60 = vadd.s32 24, %v6652_v44  ;;  %vm881_vm15 = vcmp.ne.s32.totalorder %v6697_v45, 0  ;;  %vm6773_vm6 = vmand %vm927_vm0, %vm879_vm1 }
 0x14c   : > { %2128 = vrot.lane.b32.xlu0 %v2030_v56, %s4936_s10  ;;  %v1764_v35 = vmax.f32 %v1642_v39, 0.0  ;;  %v6778_v33 = vmul.u32.u64.low 2863311531, %v6712_v24  ;;  %v6779_v63 = vmul.u32.u64.high 2863311531, %v6712_v24, %v6778_v33  ;;  %vm929_vm4 = vcmp.lt.s32.totalorder %v6697_v45, 0  ;;  %vm6794_vm8 = vmand %vm928_vm14, %vm880_vm5 }
 0x14d   : > { %v2033_v14 = vrot.slane %v6726_v30, 1  ;;  %v8344_v6 = vrot.slane %v6738_v53, 1  ;;  %v2282_v47 = vsel %vm2226_vm2, %v2279_v13, %v2281_v2  ;;  %v2280_v39 = vsel %vm2226_vm2, %v2277_v57, %v2279_v13  ;;  %v4528_v57 = vpop.f32.mrf.mxu0 }
 0x14e   : > { %vm8532_vm1 = vcmp.le.s32.totalorder %v6593_v54, 16  ;;  %vm8533_vm0 = vcmp.ge.s32.totalorder %v6593_v54, 1  ;;  %v1765_v56 = vmax.f32 %v1647_v26, 0.0  ;;  %vm1164_vm10 = vcmp.le.s32.totalorder %v6655_v5, 16 }
 0x14f   : > { %vm6802_vm12 = vmand %vm8533_vm0, %vm8532_vm1  ;;  %2380 = vrot.lane.b32.xlu1 %v2282_v47, %s4935_s9  ;;  %v6812_v13 = vsel %vm6761_vm9, %v1021_v27, %v6610_v16  ;;  %v1025_v33 = vadd.s32 24, %v6697_v45  ;;  %v1652_v54 = vadd.f32 %v6521_v62, %v6637_v0  ;;  %vm1118_vm5 = vcmp.ge.s32.totalorder %v6755_v18, 1 }
 0x150   : > { %2378 = vrot.lane.b32.xlu0 %v2280_v39, %s4935_s9  ;;  %vm1166_vm14 = vcmp.le.s32.totalorder %v6755_v18, 16  ;;  %v6822_v26 = vsel %vm6773_vm6, %v1023_v60, %v6652_v44  ;;  %vm6828_vm9 = vmand %vm929_vm4, %vm881_vm15  ;;  %v6833_v27 = vadd.s32 320, %v5095_v50  ;;  %v2283_v0 = vrot.slane %v6726_v30, 2 }
 0x151   : > { %v6838_v40 = vsel %vm6732_vm13, %v1764_v35, 0.0  ;;  %v1662_v44 = vadd.f32 %v6521_v62, %v4525_v29  ;;  %v6844_v60 = vsel %vm6794_vm8, %v1024_v61, %v6660_v41  ;;  %v2285_v1 = vrot.slane %v6738_v53, 2  ;;  %v1666_v29 = vpop.f32.mrf.mxu0  ;;  %vm6885_vm1 = vmand %vm1114_vm7, %vm1162_vm11 }
 0x152   : > { %8538 = vst [vmem:[#allocation11_spill] sm:$0xff] %v6838_v40  ;;  %v1657_v47 = vadd.f32 %v6521_v62, %v1656_v3  ;;  %vm8539_vm15 = vcmask 1046528   ;;  %vm1117_vm13 = vcmp.ge.s32.totalorder %v6812_v13, 1  ;;  %vm1165_vm4 = vcmp.le.s32.totalorder %v6812_v13, 16  ;;  %vm6900_vm11 = vmand %vm1116_vm3, %vm1164_vm10 }
 0x153   : > { %v2036_v39 = vsel %vm8539_vm15, %v2033_v14, %v8344_v6  ;;  %vm8540_vm6 = vmmov %vm8539_vm15  ;;  %v6858_v41 = vsel %vm6802_vm12, %v1765_v56, 0.0  ;;  %vm2476_vm8 = vcmask 64512   ;;  %v6865_v61 = vsel %vm6828_vm9, %v1025_v33, %v6697_v45  ;;  %v4531_v16 = vpop.f32.mrf.mxu0 }
 0x154   : > { %v2034_v37 = vsel %vm8540_vm6, %v2031_v9, %v2033_v14  ;;  %2134 = vrot.lane.b32.xlu1 %v2036_v39, %s4936_s10  ;;  %v6868_v9 = vadd.s32 328, %v5095_v50  ;;  %v6871_v35 = vadd.s32 344, %v5095_v50  ;;  %v1766_v3 = vmax.f32 %v1652_v54, 0.0 }
 0x155   : > { %2132 = vrot.lane.b32.xlu0 %v2034_v37, %s4936_s10  ;;  %vm2527_vm12 = vcmask 130048   ;;  %v6874_v14 = vmul.u32.u64.low 2863311531, %v6833_v27  ;;  %v6875_v51 = vmul.u32.u64.high 2863311531, %v6833_v27, %v6874_v14  ;;  %v6878_v36 = vadd.s32 336, %v5095_v50  ;;  %v1676_v37 = vpop.f32.mrf.mxu0 }
 0x156   : > { %v2037_v56 = vrot.slane %v6838_v40, 1  ;;  %v1768_v33 = vmax.f32 %v1662_v44, 0.0  ;;  %v2284_v54 = vsel %vm2226_vm2, %v2281_v2, %v2283_v0  ;;  %v750_v39 = vshrl.u32 %v6779_v63, 4 }
 0x157   : > { %v1767_v44 = vmax.f32 %v1657_v47, 0.0  ;;  %v1672_v2 = vadd.f32 %v6521_v62, %v4528_v57  ;;  %v2286_v14 = vsel %vm2226_vm2, %v2283_v0, %v2285_v1  ;;  %vm1119_vm7 = vcmp.ge.s32.totalorder %v6822_v26, 1  ;;  %v4534_v18 = vpop.f32.mrf.mxu0 }
 0x158   : > { %vm1167_vm6 = vcmp.le.s32.totalorder %v6822_v26, 16  ;;  %v2287_v63 = vrot.slane %v6838_v40, 2  ;;  %vm8545_vm9 = vcmp.le.s32.totalorder %v6649_v42, 16  ;;  %vm8546_vm15 = vcmp.ge.s32.totalorder %v6649_v42, 1  ;;  %2384 = vrot.lane.b32.xlu1 %v2286_v14, %s4935_s9 }
 0x159   : > { %vm1211_vm0 = vmand %vm8546_vm15, %vm8545_vm9  ;;  %2382 = vrot.lane.b32.xlu0 %v2284_v54, %s4935_s9  ;;  %v6916_v5 = vadd.s32 360, %v5095_v50  ;;  %v6919_v57 = vadd.s32 352, %v5095_v50  ;;  %v6922_v0 = vadd.s32 376, %v5095_v50  ;;  %v6926_v47 = vsel %vm6885_vm1, %v1766_v3, 0.0 }
 0x15a   : > { %8547 = vst [vmem:[#allocation12_spill] sm:$0xff] %v6926_v47  ;;  %v2289_v42 = vrot.slane %v6858_v41, 2  ;;  %v1667_v6 = vadd.f32 %v6521_v62, %v1666_v29  ;;  %v6931_v14 = vadd.s32 368, %v5095_v50  ;;  %v6935_v54 = vsel %vm6900_vm11, %v1768_v33, 0.0  ;;  %vm6955_vm1 = vmand %vm1118_vm5, %vm1166_vm14 }
 0x15b   : > { %v751_v40 = vmul.u32 24, %v750_v39  ;;  %v6938_v58 = vmul.u32.u64.low 2863311531, %v6868_v9  ;;  %v6939_v30 = vmul.u32.u64.high 2863311531, %v6868_v9, %v6938_v58  ;;  %v6941_v45 = vsel %vm1211_vm0, %v1767_v44, 0.0  ;;  %vm6972_vm5 = vmand %vm1117_vm13, %vm1165_vm4 }
 0x15c   : > { %v1770_v3 = vmax.f32 %v1672_v2, 0.0  ;;  %v8548_v49 = vrot.slane %v6858_v41, 1  ;;  %vm8549_vm3 = vcmask 1046528   ;;  %v8550_v50 = vrot.slane %v6738_v53, 1  ;;  %vm7013_vm9 = vmand %vm1119_vm7, %vm1167_vm6 }
 0x15d   : > { %vm8551_vm10 = vmmov %vm8549_vm3  ;;  %v2041_v33 = vrot.slane %v6926_v47, 1  ;;  %v2291_v38 = vrot.slane %v6926_v47, 2  ;;  %v1769_v44 = vmax.f32 %v1667_v6, 0.0  ;;  %v1677_v2 = vadd.f32 %v6521_v62, %v1676_v37 }
 0x15e   : > { %v2040_v29 = vsel %vm8549_vm3, %v2037_v56, %v8548_v49  ;;  %v2038_v12 = vsel %vm8551_vm10, %v8550_v50, %v2037_v56  ;;  %v1682_v49 = vadd.f32 %v6521_v62, %v4531_v16  ;;  %v2288_v56 = vsel %vm2226_vm2, %v2285_v1, %v2287_v63  ;;  %v2331_v1 = vpop.permute.xlu1 %2330  ;;  %v2081_v16 = vpop.permute.xlu0 %2080  ;;  %vm8564_vm15 = vmmov %vm8549_vm3 }
 0x15f   : > { %2138 = vrot.lane.b32.xlu1 %v2040_v29, %s4936_s10  ;;  %2136 = vrot.lane.b32.xlu0 %v2038_v12, %s4936_s10  ;;  %v761_v50 = vshrl.u32 %v6875_v51, 4  ;;  %v2043_v47 = vrot.slane %v6941_v45, 1  ;;  %v2290_v6 = vsel %vm2226_vm2, %v2287_v63, %v2289_v42  ;;  %v752_v37 = vsub.s32 %v6712_v24, %v751_v40 }
 0x160   : > { %v6980_v51 = vsel %vm6955_vm1, %v1770_v3, 0.0  ;;  %v2479_v29 = vsel %vm2476_vm8, %v5442_v21, %v2081_v16  ;;  %v6985_v13 = vmul.u32.u64.low 2863311531, %v6878_v36  ;;  %v6986_v39 = vmul.u32.u64.high 2863311531, %v6878_v36, %v6985_v13 }
 0x161   : > { %v2530_v53 = vsel %vm2527_vm12, %v2479_v29, %v2331_v1  ;;  %v1772_v59 = vmax.f32 %v1682_v49, 0.0  ;;  %v6992_v24 = vmul.u32.u64.low 2863311531, %v6871_v35  ;;  %v6993_v40 = vmul.u32.u64.high 2863311531, %v6871_v35, %v6992_v24  ;;  %v1686_v29 = vpop.f32.mrf.mxu0 }
 0x162   : > { %v2293_v63 = vrot.slane %v6941_v45, 2  ;;  %v6998_v3 = vsel %vm6972_vm5, %v1769_v44, 0.0  ;;  %vm8556_vm14 = vcmask 195584   ;;  %vm8557_vm13 = vcmp.le.s32.totalorder %v6844_v60, 16  ;;  %v2333_v44 = vpop.permute.xlu1 %2332 }
 0x163   : > { %2388 = vrot.lane.b32.xlu1 %v2290_v6, %s4935_s9  ;;  %2386 = vrot.lane.b32.xlu0 %v2288_v56, %s4935_s9  ;;  %2582 = vst.msk [vmem:[#allocation2 + $0x18] sm:$0xff] %vm8556_vm14, %v2530_v53  ;;  %vm8558_vm4 = vcmp.ge.s32.totalorder %v6844_v60, 1  ;;  %v1771_v49 = vmax.f32 %v1677_v2, 0.0  ;;  %v762_v56 = vmul.u32 24, %v761_v50  ;;  %v2083_v53 = vpop.permute.xlu0 %2082  ;;  %v8563_v1 = vrot.slane %v6858_v41, 1  ;;  %vm8565_vm1 = vmmov %vm8556_vm14 }
 0x164   : > { %vm7005_vm0 = vmand %vm8558_vm4, %vm8557_vm13  ;;  %vm882_vm11 = vcmp.ne.s32.totalorder %v752_v37, 0  ;;  %vm930_vm3 = vcmp.lt.s32.totalorder %v752_v37, 0  ;;  %v772_v16 = vshrl.u32 %v6939_v30, 4  ;;  %v2480_v50 = vsel %vm2476_vm8, %v5417_v7, %v2083_v53 }
 0x165   : > { %v2042_v60 = vsel %vm8564_vm15, %v8563_v1, %v2041_v33  ;;  %v2044_v26 = vsel %vm8551_vm10, %v2041_v33, %v2043_v47  ;;  %v2292_v6 = vsel %vm2226_vm2, %v2289_v42, %v2291_v38  ;;  %vm1121_vm7 = vcmp.ge.s32.totalorder %v6865_v61, 1  ;;  %vm7044_vm5 = vmand %vm930_vm3, %vm882_vm11 }
 0x166   : > { %vm1169_vm6 = vcmp.le.s32.totalorder %v6865_v61, 16  ;;  %v8353_v13 = vrot.slane %v6998_v3, 1  ;;  %v7031_v24 = vsel %vm7005_vm0, %v1772_v59, 0.0  ;;  %v2531_v30 = vsel %vm2527_vm12, %v2480_v50, %v2333_v44  ;;  %v7049_v44 = vpop.f32.mrf.mxu0  ;;  %vm8569_vm14 = vmmov %vm8551_vm10 }
 0x167   : > { %2142 = vrot.lane.b32.xlu1 %v2044_v26, %s4936_s10  ;;  %2140 = vrot.lane.b32.xlu0 %v2042_v60, %s4936_s10  ;;  %v1026_v7 = vadd.s32 24, %v752_v37  ;;  %v7039_v33 = vsel %vm7013_vm9, %v1771_v49, 0.0  ;;  %2583 = vst.msk [vmem:[#allocation2 + $0x20] sm:$0xff] %vm8565_vm1, %v2531_v30  ;;  %v2294_v58 = vsel %vm2226_vm2, %v2291_v38, %v2293_v63  ;;  %v763_v53 = vsub.s32 %v6833_v27, %v762_v56  ;;  %v2087_v60 = vpop.permute.xlu1 %2086  ;;  %v2085_v12 = vpop.permute.xlu0 %2084  ;;  %vm8572_vm13 = vmmov %vm8551_vm10 }
 0x168   : > { %v7054_v49 = vadd.f32 %v6521_v62, %v1686_v29  ;;  %v8568_v50 = vrot.slane %v6935_v54, 1  ;;  %v773_v30 = vmul.u32 24, %v772_v16  ;;  %v7061_v38 = vadd.f32 %v6521_v62, %v4534_v18  ;;  %v2688_v29 = vld [vmem:[%s8332_s3 + $0x8] sm:$0xff]  ;;  %vm8573_vm4 = vmmov %vm8565_vm1 }
 0x169   : > { %v8570_v2 = vrot.slane %v6935_v54, 2  ;;  %v783_v56 = vshrl.u32 %v6986_v39, 4  ;;  %v2051_v1 = vrot.slane %v7039_v33, 1  ;;  %v794_v16 = vshrl.u32 %v6993_v40, 4  ;;  %4627 = vmatprep.subr.mxu0 %v2688_v29  ;;  %vm8574_vm11 = vmmov %vm8565_vm1 }
 0x16a   : > { %v2046_v26 = vsel %vm8569_vm14, %v2043_v47, %v8568_v50  ;;  %v1074_v47 = vsel %vm7044_vm5, %v1026_v7, %v752_v37  ;;  %v2636_v18 = vld [vmem:[#allocation2 + $0x18] sm:$0xff]  ;;  %vm883_vm0 = vcmp.ne.s32.totalorder %v763_v53, 0  ;;  %vm931_vm9 = vcmp.lt.s32.totalorder %v763_v53, 0  ;;  %4628 = vmatpush3.msra.mxu0 %v2688_v29  ;;  %vm8575_vm3 = vmmov %vm8565_vm1 }
 0x16b   : > { %v2296_v27 = vsel %vm2226_vm2, %v2293_v63, %v8570_v2  ;;  %2392 = vrot.lane.b32.xlu1 %v2294_v58, %s4935_s9  ;;  %2390 = vrot.lane.b32.xlu0 %v2292_v6, %s4935_s9  ;;  %v8571_v63 = vmov %v8568_v50  ;;  %v1696_v2 = vpop.f32.mrf.mxu0  ;;  %v7083_v37 = vmul.u32.u64.low 2863311531, %v6919_v57  ;;  %v7084_v7 = vmul.u32.u64.high 2863311531, %v6919_v57, %v7083_v37  ;;  %v2337_v50 = vpop.permute.xlu1 %2336  ;;  %vm7102_vm10 = vmand %vm931_vm9, %vm883_vm0 }
 0x16c   : > { %v2048_v39 = vsel %vm8572_vm13, %v8571_v63, %v8353_v13  ;;  %4553 = vmatprep.mubr.msk.f32.mxu1 %vm8573_vm4, %v2636_v18  ;;  %v2482_v6 = vsel %vm2476_vm8, %v5541_v11, %v2087_v60  ;;  %v2481_v59 = vsel %vm2476_vm8, %v5510_v43, %v2085_v12  ;;  %v1773_v58 = vmax.f32 %v7054_v49, 0.0  ;;  %v2335_v40 = vpop.permute.xlu0 %2334  ;;  %vm8578_vm5 = vmmov %vm8575_vm3 }
 0x16d   : > { %v7092_v18 = vsub.s32 %v6868_v9, %v773_v30  ;;  %v2533_v63 = vsel %vm2527_vm12, %v2482_v6, %v2337_v50  ;;  %v2532_v42 = vsel %vm2527_vm12, %v2481_v59, %v2335_v40  ;;  %v1027_v37 = vadd.s32 24, %v763_v53  ;;  %vm7127_vm14 = vmand %vm1121_vm7, %vm1169_vm6 }
 0x16e   : > { %v784_v13 = vmul.u32 24, %v783_v56  ;;  %vm1122_vm15 = vcmp.ge.s32.totalorder %v1074_v47, 1  ;;  %2585 = vst.msk [vmem:[#allocation2 + $0x30] sm:$0xff] %vm8574_vm11, %v2533_v63  ;;  %v2637_v43 = vld [vmem:[#allocation2 + $0x20] sm:$0xff]  ;;  %v7107_v9 = vadd.f32 %v6521_v62, %v1696_v2  ;;  %vm1170_vm1 = vcmp.le.s32.totalorder %v1074_v47, 16 }
 0x16f   : > { %2584 = vst.msk [vmem:[#allocation2 + $0x28] sm:$0xff] %vm8575_vm3, %v2532_v42  ;;  %2146 = vrot.lane.b32.xlu1 %v2048_v39, %s4936_s10  ;;  %2144 = vrot.lane.b32.xlu0 %v2046_v26, %s4936_s10  ;;  %v7110_v60 = vmul.u32.u64.low 2863311531, %v6916_v5  ;;  %v7111_v12 = vmul.u32.u64.high 2863311531, %v6916_v5, %v7110_v60  ;;  %v4218_v42 = vld [vmem:[%s8332_s3 + $0x38] sm:$0xff]  ;;  %v795_v49 = vmul.u32 24, %v794_v16  ;;  %v2303_v56 = vrot.slane %v7031_v24, 2  ;;  %v2091_v2 = vpop.permute.xlu1 %2090  ;;  %vm7147_vm7 = vmand %vm1122_vm15, %vm1170_vm1 }
 0x170   : > { %4554 = vmatmul.mubr.msk.f32.vlgmr.msra.gmra.mxu1 %vm8578_vm5, %v2637_v43  ;;  %v7118_v26 = vmul.u32.u64.low 2863311531, %v6922_v0  ;;  %v7119_v30 = vmul.u32.u64.high 2863311531, %v6922_v0, %v7118_v26  ;;  %v1774_v29 = vmax.f32 %v7061_v38, 0.0  ;;  %v2089_v6 = vpop.permute.xlu0 %2088  ;;  %vm884_vm13 = vcmp.ne.s32.totalorder %v7092_v18, 0  ;;  %vm8592_vm1 = vmmov %vm8578_vm5 }
 0x171   : > { %vm932_vm4 = vcmp.lt.s32.totalorder %v7092_v18, 0  ;;  %4704 = vmatpush3.msra.mxu1 %v6748_v23  ;;  %v2301_v16 = vrot.slane %v7039_v33, 2  ;;  %v8581_v38 = vrot.slane %v6998_v3, 2  ;;  %v8582_v59 = vrot.slane %v6935_v54, 2  ;;  %vm8593_vm5 = vmmov %vm8592_vm1 }
 0x172   : > { %v1075_v50 = vsel %vm7102_vm10, %v1027_v37, %v763_v53  ;;  %v7143_v40 = vsub.s32 %v6878_v36, %v784_v13  ;;  %4705 = vmatprep.subr.mxu1 %v4218_v42  ;;  %v1028_v23 = vadd.s32 24, %v7092_v18  ;;  %v7154_v43 = vadd.f32 %v6521_v62, %v7049_v44  ;;  %vm7176_vm9 = vmand %vm932_vm4, %vm884_vm13 }
 0x173   : > { %v2298_v61 = vsel %vm2226_vm2, %v8582_v59, %v8581_v38  ;;  %2394 = vrot.lane.b32.xlu0 %v2296_v27, %s4935_s9  ;;  %v8585_v36 = vrot.slane %v6980_v51, 1  ;;  %vm8586_vm6 = vcmask 1046528   ;;  %v8588_v47 = vrot.slane %v6998_v3, 1  ;;  %4706 = vmatpush3.msra.mxu1 %v4218_v42  ;;  %v2341_v38 = vpop.permute.xlu1 %2340  ;;  %vm8596_vm13 = vmmov %vm8592_vm1 }
 0x174   : > { %2396 = vrot.lane.b32.xlu1 %v2298_v61, %s4935_s9  ;;  %vm8589_vm0 = vmmov %vm8586_vm6  ;;  %v7170_v44 = vsel %vm7127_vm14, %v1773_v58, 0.0  ;;  %v1775_v11 = vmax.f32 %v7107_v9, 0.0  ;;  %v7182_v60 = vsub.s32 %v6871_v35, %v795_v49  ;;  %v805_v26 = vshrl.u32 %v7084_v7, 4  ;;  %v2339_v59 = vpop.permute.xlu0 %2338  ;;  %v7193_v49 = vpop.f32.mrf.mxu0 }
 0x175   : > { %v2052_v13 = vsel %vm8586_vm6, %v8585_v36, %v2051_v1  ;;  %v8587_v53 = vmov %v8585_v36  ;;  %v2484_v58 = vsel %vm2476_vm8, %v5605_v32, %v2091_v2  ;;  %v2483_v39 = vsel %vm2476_vm8, %v5566_v17, %v2089_v6  ;;  %v7191_v35 = vld [vmem:[#allocation2 + $0x30] sm:$0xff]  ;;  %vm8597_vm4 = vmmov %vm8592_vm1 }
 0x176   : > { %v2050_v37 = vsel %vm8589_vm0, %v8588_v47, %v8587_v53  ;;  %vm1123_vm15 = vcmp.ge.s32.totalorder %v1075_v50, 1  ;;  %vm1171_vm11 = vcmp.le.s32.totalorder %v1075_v50, 16  ;;  %v2535_v61 = vsel %vm2527_vm12, %v2484_v58, %v2341_v38  ;;  %v2638_v36 = vld [vmem:[#allocation2 + $0x28] sm:$0xff]  ;;  %v1706_v58 = vpop.f32.mrf.mxu0 }
 0x177   : > { %v2534_v9 = vsel %vm2527_vm12, %v2483_v39, %v2339_v59  ;;  %vm885_vm3 = vcmp.ne.s32.totalorder %v7143_v40, 0  ;;  %vm933_vm10 = vcmp.lt.s32.totalorder %v7143_v40, 0  ;;  %v7199_v17 = vsel %vm7147_vm7, %v1774_v29, 0.0  ;;  %2587 = vst.msk [vmem:[#allocation2 + $0x40] sm:$0xff] %vm8592_vm1, %v2535_v61  ;;  %2148 = vrot.lane.b32.xlu0 %v2050_v37, %s4936_s10  ;;  %vm7212_vm14 = vmand %vm1123_vm15, %vm1171_vm11  ;;  %4556 = vmatprep.mubr.msk.f32.mxu1 %vm8596_vm13, %v2638_v36 }
 0x178   : > { %v1076_v32 = vsel %vm7176_vm9, %v1028_v23, %v7092_v18  ;;  %2586 = vst.msk [vmem:[#allocation2 + $0x38] sm:$0xff] %vm8593_vm5, %v2534_v9  ;;  %2150 = vrot.lane.b32.xlu1 %v2052_v13, %s4936_s10  ;;  %v1029_v7 = vadd.s32 24, %v7143_v40  ;;  %v816_v42 = vshrl.u32 %v7111_v12, 4  ;;  %v806_v18 = vmul.u32 24, %v805_v26  ;;  %4557 = vmatmul.mubr.msk.f32.gmra.mxu1 %vm8597_vm4, %v7191_v35  ;;  %v2095_v12 = vpop.permute.xlu1 %2094  ;;  %v2093_v50 = vpop.permute.xlu0 %2092  ;;  %vm981_vm0 = vmand %vm933_vm10, %vm885_vm3 }
 0x179   : > { %v838_v2 = vshrl.u32 %v7119_v30, 4  ;;  %v7219_v6 = vmul.u32.u64.low 2863311531, %v6931_v14  ;;  %v7220_v63 = vmul.u32.u64.high 2863311531, %v6931_v14, %v7219_v6  ;;  %v2055_v23 = vrot.slane %v7170_v44, 1  ;;  %vm8609_vm13 = vmmov %vm8597_vm4 }
 0x17a   : > { %v1776_v13 = vmax.f32 %v7154_v43, 0.0  ;;  %vm886_vm7 = vcmp.ne.s32.totalorder %v7182_v60, 0  ;;  %vm934_vm6 = vcmp.lt.s32.totalorder %v7182_v60, 0  ;;  %v2057_v30 = vrot.slane %v7199_v17, 1 }
 0x17b   : > { %v2305_v53 = vrot.slane %v7170_v44, 2  ;;  %v8598_v43 = vrot.slane %v6980_v51, 2  ;;  %v8600_v27 = vrot.slane %v6998_v3, 2  ;;  %vm1124_vm9 = vcmp.ge.s32.totalorder %v1076_v32, 1  ;;  %vm7253_vm11 = vmand %vm934_vm6, %vm886_vm7 }
 0x17c   : > { %v7246_v39 = vsel %vm7212_vm14, %v1775_v11, 0.0  ;;  %v1030_v38 = vadd.s32 24, %v7182_v60  ;;  %v817_v59 = vmul.u32 24, %v816_v42  ;;  %vm1172_vm15 = vcmp.le.s32.totalorder %v1076_v32, 16  ;;  %vm8610_vm7 = vmmov %vm8597_vm4  ;;  %v7299_v32 = vpop.f32.mrf.mxu0 }
 0x17d   : > { %v2302_v47 = vsel %vm2226_vm2, %v8598_v43, %v2301_v16  ;;  %v8599_v37 = vmov %v8598_v43  ;;  %v1077_v9 = vsel %vm981_vm0, %v1029_v7, %v7143_v40  ;;  %v807_v36 = vsub.s32 %v6919_v57, %v806_v18  ;;  %v2345_v43 = vpop.permute.xlu1 %2344  ;;  %vm7283_vm1 = vmand %vm1124_vm9, %vm1172_vm15 }
 0x17e   : > { %v2300_v26 = vsel %vm2226_vm2, %v8600_v27, %v8599_v37  ;;  %2400 = vrot.lane.b32.xlu1 %v2302_v47, %s4935_s9  ;;  %v839_v11 = vmul.u32 24, %v838_v2  ;;  %v2486_v29 = vsel %vm2476_vm8, %v5684_v28, %v2095_v12  ;;  %v2485_v6 = vsel %vm2476_vm8, %v5610_v34, %v2093_v50  ;;  %v2343_v47 = vpop.permute.xlu0 %2342  ;;  %v7279_v2 = vld [vmem:[#allocation2 + $0x40] sm:$0xff]  ;;  %vm8611_vm9 = vmmov %vm8597_vm4 }
 0x17f   : > { %2398 = vrot.lane.b32.xlu0 %v2300_v26, %s4935_s9  ;;  %v1707_v42 = vadd.f32 %v6521_v62, %v1706_v58  ;;  %v8603_v37 = vrot.slane %v7031_v24, 1  ;;  %vm8604_vm3 = vcmask 1046528   ;;  %v2059_v40 = vrot.slane %v7246_v39, 1  ;;  %v7277_v18 = vld [vmem:[#allocation2 + $0x38] sm:$0xff] }
 0x180   : > { %v2537_v57 = vsel %vm2527_vm12, %v2486_v29, %v2345_v43  ;;  %v2536_v7 = vsel %vm2527_vm12, %v2485_v6, %v2343_v47  ;;  %vm8606_vm10 = vmmov %vm8604_vm3  ;;  %v1078_v50 = vsel %vm7253_vm11, %v1030_v38, %v7182_v60  ;;  %vm1125_vm5 = vcmp.ge.s32.totalorder %v1077_v9, 1  ;;  %4559 = vmatprep.mubr.msk.f32.mxu1 %vm8610_vm7, %v7277_v18 }
 0x181   : > { %v2056_v27 = vsel %vm8604_vm3, %v8603_v37, %v2055_v23  ;;  %v8605_v28 = vmov %v8603_v37  ;;  %vm1173_vm14 = vcmp.le.s32.totalorder %v1077_v9, 16  ;;  %2589 = vst.msk [vmem:[#allocation2 + $0x50] sm:$0xff] %vm8609_vm13, %v2537_v57  ;;  %vm887_vm6 = vcmp.ne.s32.totalorder %v807_v36, 0  ;;  %4560 = vmatmul.mubr.msk.f32.gmra.mxu1 %vm8611_vm9, %v7279_v2 }
 0x182   : > { %v2054_v34 = vsel %vm8606_vm10, %v2051_v1, %v8605_v28  ;;  %2588 = vst.msk [vmem:[#allocation2 + $0x48] sm:$0xff] %vm8597_vm4, %v2536_v7  ;;  %2154 = vrot.lane.b32.xlu1 %v2056_v27, %s4936_s10  ;;  %v7295_v1 = vsub.s32 %v6916_v5, %v817_v59  ;;  %vm935_vm0 = vcmp.lt.s32.totalorder %v807_v36, 0  ;;  %v840_v60 = vsub.s32 %v6922_v0, %v839_v11  ;;  %v2099_v5 = vpop.permute.xlu1 %2098  ;;  %v2097_v59 = vpop.permute.xlu0 %2096  ;;  %vm1221_vm15 = vmand %vm1125_vm5, %vm1173_vm14 }
 0x183   : > { %2152 = vrot.lane.b32.xlu0 %v2054_v34, %s4936_s10  ;;  %v827_v26 = vshrl.u32 %v7220_v63, 4  ;;  %v2307_v58 = vrot.slane %v7199_v17, 2  ;;  %v1712_v38 = vadd.f32 %v6521_v62, %v7193_v49  ;;  %v1777_v61 = vmax.f32 %v1707_v42, 0.0  ;;  %vm983_vm10 = vmand %vm935_vm0, %vm887_vm6 }
 0x184   : > { %v2306_v29 = vsel %vm2226_vm2, %v2303_v56, %v2305_v53  ;;  %v7315_v0 = vsel %vm7283_vm1, %v1776_v13, 0.0  ;;  %v2309_v63 = vrot.slane %v7246_v39, 2  ;;  %v2304_v49 = vsel %vm2226_vm2, %v2301_v16, %v2303_v56  ;;  %v1716_v16 = vpop.f32.mrf.mxu0  ;;  %vm8614_vm6 = vmmov %vm8611_vm9 }
 0x185   : > { %v1031_v11 = vadd.s32 24, %v807_v36  ;;  %vm1126_vm11 = vcmp.ge.s32.totalorder %v1078_v50, 1  ;;  %vm1174_vm3 = vcmp.le.s32.totalorder %v1078_v50, 16  ;;  %vm8612_vm1 = vcmask 1046528   ;;  %vm8615_vm0 = vmmov %vm8614_vm6 }
 0x186   : > { %2404 = vrot.lane.b32.xlu1 %v2306_v29, %s4935_s9  ;;  %v2060_v13 = vsel %vm8612_vm1, %v2057_v30, %v2059_v40  ;;  %vm8613_vm5 = vmmov %vm8612_vm1  ;;  %vm888_vm14 = vcmp.ne.s32.totalorder %v7295_v1, 0  ;;  %vm890_vm13 = vcmp.ne.s32.totalorder %v840_v60, 0  ;;  %vm938_vm4 = vcmp.lt.s32.totalorder %v840_v60, 0  ;;  %v2349_v47 = vpop.permute.xlu1 %2348  ;;  %v2347_v37 = vpop.permute.xlu0 %2346 }
 0x187   : > { %2402 = vrot.lane.b32.xlu0 %v2304_v49, %s4935_s9  ;;  %v2058_v56 = vsel %vm8613_vm5, %v2055_v23, %v2057_v30  ;;  %v828_v9 = vmul.u32 24, %v827_v26  ;;  %v7340_v6 = vsel %vm1221_vm15, %v1777_v61, 0.0  ;;  %v2488_v42 = vsel %vm2476_vm8, %v5799_v4, %v2099_v5  ;;  %vm986_vm9 = vmand %vm938_vm4, %vm890_vm13  ;;  %v4546_v49 = vpop.f32.mrf.mxu0 }
 0x188   : > { %v2487_v43 = vsel %vm2476_vm8, %v5689_v19, %v2097_v59  ;;  %vm936_vm7 = vcmp.lt.s32.totalorder %v7295_v1, 0  ;;  %v1079_v27 = vsel %vm983_vm10, %v1031_v11, %v807_v36  ;;  %v2539_v23 = vsel %vm2527_vm12, %v2488_v42, %v2349_v47  ;;  %v7351_v7 = vld [vmem:[#allocation2 + $0x50] sm:$0xff]  ;;  %vm7363_vm15 = vmand %vm1126_vm11, %vm1174_vm3 }
 0x189   : > { %v2538_v30 = vsel %vm2527_vm12, %v2487_v43, %v2347_v37  ;;  %v7349_v57 = vld [vmem:[#allocation2 + $0x48] sm:$0xff]  ;;  %v1034_v28 = vadd.s32 24, %v840_v60  ;;  %v1778_v34 = vmax.f32 %v1712_v38, 0.0  ;;  %v1717_v4 = vadd.f32 %v6521_v62, %v1716_v16  ;;  %2591 = vst.msk [vmem:[#allocation2 + $0x60] sm:$0xff] %vm8614_vm6, %v2539_v23  ;;  %vm8618_vm10 = vmmov %vm8615_vm0  ;;  %v1726_v36 = vpop.f32.mrf.mxu0 }
 0x18a   : > { %2590 = vst.msk [vmem:[#allocation2 + $0x58] sm:$0xff] %vm8615_vm0, %v2538_v30  ;;  %2158 = vrot.lane.b32.xlu1 %v2060_v13, %s4936_s10  ;;  %v2061_v19 = vrot.slane %v7315_v0, 1  ;;  %v2063_v12 = vrot.slane %v7340_v6, 1  ;;  %v1032_v26 = vadd.s32 24, %v7295_v1  ;;  %4562 = vmatprep.mubr.msk.f32.mxu1 %vm8618_vm10, %v7349_v57  ;;  %v829_v38 = vsub.s32 %v6931_v14, %v828_v9  ;;  %vm7376_vm1 = vmand %vm936_vm7, %vm888_vm14  ;;  %v2103_v50 = vpop.permute.xlu1 %2102  ;;  %v2101_v5 = vpop.permute.xlu0 %2100  ;;  %v2687_v13 = vld [vmem:[%s8332_s3] sm:$0xff] }
 0x18b   : > { %2156 = vrot.lane.b32.xlu0 %v2058_v56, %s4936_s10  ;;  %vm1127_vm11 = vcmp.ge.s32.totalorder %v1079_v27, 1  ;;  %vm1175_vm3 = vcmp.le.s32.totalorder %v1079_v27, 16  ;;  %vm8621_vm5 = vmmov %vm8615_vm0  ;;  %v2311_v59 = vrot.slane %v7315_v0, 2  ;;  %v1082_v29 = vsel %vm986_vm9, %v1034_v28, %v840_v60  ;;  %4629 = vmatprep.subr.mxu0 %v2687_v13 }
 0x18c   : > { %4563 = vmatmul.mubr.msk.f32.gmra.mxu1 %vm8621_vm5, %v7351_v7  ;;  %v2310_v14 = vsel %vm2226_vm2, %v2307_v58, %v2309_v63  ;;  %v2308_v11 = vsel %vm2226_vm2, %v2305_v53, %v2307_v58  ;;  %v7394_v56 = vsel %vm7363_vm15, %v1778_v34, 0.0  ;;  %v2313_v16 = vrot.slane %v7340_v6, 2  ;;  %vm7405_vm14 = vmand %vm1127_vm11, %vm1175_vm3  ;;  %4630 = vmatpush3.msra.mxu0 %v2687_v13  ;;  %v4906_v13 = vld [vmem:[%s8331_s2] ss:$0 sm:$0xff] }
 0x18d   : > { %v1779_v60 = vmax.f32 %v1717_v4, 0.0  ;;  %v1732_v9 = vadd.f32 %v6521_v62, %v4546_v49  ;;  %v1080_v53 = vsel %vm7376_vm1, %v1032_v26, %v7295_v1  ;;  %vm889_vm13 = vcmp.ne.s32.totalorder %v829_v38, 0  ;;  %vm8628_vm10 = vmmov %vm8621_vm5 }
 0x18e   : > { %2408 = vrot.lane.b32.xlu1 %v2310_v14, %s4935_s9  ;;  %vm937_vm4 = vcmp.lt.s32.totalorder %v829_v38, 0  ;;  %vm8624_vm7 = vcmask 1046528   ;;  %v2490_v43 = vsel %vm2476_vm8, %v5896_v46, %v2103_v50  ;;  %v2489_v47 = vsel %vm2476_vm8, %v5805_v25, %v2101_v5  ;;  %v2353_v1 = vpop.permute.xlu1 %2352  ;;  %v2351_v37 = vpop.permute.xlu0 %2350  ;;  %vm8629_vm1 = vmmov %vm8621_vm5 }
 0x18f   : > { %2406 = vrot.lane.b32.xlu0 %v2308_v11, %s4935_s9  ;;  %v2064_v42 = vsel %vm8624_vm7, %v2061_v19, %v2063_v12  ;;  %vm1130_vm6 = vcmp.ge.s32.totalorder %v1082_v29, 1  ;;  %vm8625_vm0 = vmmov %vm8624_vm7  ;;  %vm1178_vm9 = vcmp.le.s32.totalorder %v1082_v29, 16  ;;  %v1033_v23 = vadd.s32 24, %v829_v38 }
 0x190   : > { %v2062_v27 = vsel %vm8625_vm0, %v2059_v40, %v2061_v19  ;;  %v2541_v30 = vsel %vm2527_vm12, %v2490_v43, %v2353_v1  ;;  %v2540_v28 = vsel %vm2527_vm12, %v2489_v47, %v2351_v37  ;;  %v7423_v46 = vld [vmem:[#allocation2 + $0x60] sm:$0xff]  ;;  %v1722_v25 = vadd.f32 %v6521_v62, %v7299_v32  ;;  %vm7433_vm15 = vmand %vm937_vm4, %vm889_vm13  ;;  %v4217_v62 = vld [vmem:[%s8332_s3 + $0x30] sm:$0xff] }
 0x191   : > { %v7421_v34 = vld [vmem:[#allocation2 + $0x58] sm:$0xff]  ;;  %v7429_v4 = vsel %vm7405_vm14, %v1779_v60, 0.0  ;;  %2593 = vst.msk [vmem:[#allocation2 + $0x70] sm:$0xff] %vm8628_vm10, %v2541_v30  ;;  %v2065_v32 = vrot.slane %v7394_v56, 1  ;;  %v1782_v19 = vmax.f32 %v1732_v9, 0.0  ;;  %vm8630_vm11 = vmmov %vm8629_vm1  ;;  %4707 = vmatprep.subr.mxu1 %v4217_v62  ;;  %vm1128_vm3 = vcmp.ge.s32.totalorder %v1080_v53, 1 }
 0x192   : > { %2592 = vst.msk [vmem:[#allocation2 + $0x68] sm:$0xff] %vm8629_vm1, %v2540_v28  ;;  %2162 = vrot.lane.b32.xlu1 %v2064_v42, %s4936_s10  ;;  %4565 = vmatprep.mubr.msk.f32.mxu1 %vm8630_vm11, %v7421_v34  ;;  %vm1176_vm5 = vcmp.le.s32.totalorder %v1080_v53, 16  ;;  %vm7449_vm14 = vmand %vm1130_vm6, %vm1178_vm9  ;;  %v2107_v61 = vpop.permute.xlu1 %2106  ;;  %v2105_v50 = vpop.permute.xlu0 %2104  ;;  %v2067_v5 = vrot.slane %v7429_v4, 1  ;;  %v1081_v49 = vsel %vm7433_vm15, %v1033_v23, %v829_v38  ;;  %v2314_v14 = vsel %vm2226_vm2, %v2311_v59, %v2313_v16 }
 0x193   : > { %2160 = vrot.lane.b32.xlu0 %v2062_v27, %s4936_s10  ;;  %vm8633_vm13 = vmmov %vm8629_vm1  ;;  %v2312_v29 = vsel %vm2226_vm2, %v2309_v63, %v2311_v59  ;;  %4708 = vmatpush3.msra.mxu1 %v4217_v62  ;;  %v1780_v11 = vmax.f32 %v1722_v25, 0.0  ;;  %v1727_v60 = vadd.f32 %v4906_v13, %v1726_v36  ;;  %v2315_v38 = vrot.slane %v7394_v56, 2 }
 0x194   : > { %4566 = vmatmul.mubr.msk.f32.gmra.mxu1 %vm8633_vm13, %v7423_v46  ;;  %vm1224_vm4 = vmand %vm1128_vm3, %vm1176_vm5  ;;  %v7474_v9 = vsel %vm7449_vm14, %v1782_v19, 0.0  ;;  %vm1129_vm6 = vcmp.ge.s32.totalorder %v1081_v49, 1  ;;  %v2492_v59 = vsel %vm2476_vm8, %v6001_v20, %v2107_v61  ;;  %v2491_v58 = vsel %vm2476_vm8, %v5902_v52, %v2105_v50 }
 0x195   : > { %vm8634_vm7 = vmmov %vm8625_vm0  ;;  %vm1177_vm0 = vcmp.le.s32.totalorder %v1081_v49, 16  ;;  %v2317_v53 = vrot.slane %v7429_v4, 2  ;;  %v7491_v23 = vsel %vm1224_vm4, %v1780_v11, 0.0  ;;  %v1781_v20 = vmax.f32 %v1727_v60, 0.0 }
 0x196   : > { %2412 = vrot.lane.b32.xlu1 %v2314_v14, %s4935_s9  ;;  %v2066_v63 = vsel %vm8634_vm7, %v2063_v12, %v2065_v32  ;;  %v2357_v42 = vpop.permute.xlu1 %2356  ;;  %v2355_v43 = vpop.permute.xlu0 %2354  ;;  %vm8635_vm9 = vmmov %vm8634_vm7  ;;  %v2073_v52 = vrot.slane %v7474_v9, 1  ;;  %v2069_v25 = vrot.slane %v7491_v23, 1  ;;  %v2316_v62 = vsel %vm2226_vm2, %v2313_v16, %v2315_v38 }
 0x197   : > { %2410 = vrot.lane.b32.xlu0 %v2312_v29, %s4935_s9  ;;  %v2543_v47 = vsel %vm2527_vm12, %v2492_v59, %v2357_v42  ;;  %v2542_v1 = vsel %vm2527_vm12, %v2491_v58, %v2355_v43  ;;  %v2068_v37 = vsel %vm8635_vm9, %v2065_v32, %v2067_v5  ;;  %vm8636_vm15 = vmmov %vm8629_vm1  ;;  %v2318_v40 = vsel %vm2226_vm2, %v2315_v38, %v2317_v53 }
 0x198   : > { %v7489_v12 = vld [vmem:[#allocation2 + $0x70] sm:$0xff]  ;;  %2595 = vst.msk [vmem:[#allocation2 + $0x80] sm:$0xff] %vm8636_vm15, %v2543_v47  ;;  %vm8637_vm10 = vmmov %vm8629_vm1  ;;  %v4937_v32 = vmov 0.0   ;;  %v2319_v61 = vrot.slane %v7491_v23, 2  ;;  %v2323_v42 = vrot.slane %v7474_v9, 2 }
 0x199   : > { %v7487_v27 = vld [vmem:[#allocation2 + $0x68] sm:$0xff]  ;;  %2594 = vst.msk [vmem:[#allocation2 + $0x78] sm:$0xff] %vm8637_vm10, %v2542_v1  ;;  %vm1225_vm1 = vmand %vm1129_vm6, %vm1177_vm0  ;;  %v7509_v19 = vrot.slane %v4937_v32, 1 }
 0x19a   : > { %2166 = vrot.lane.b32.xlu1 %v2068_v37, %s4936_s10  ;;  %vm8638_vm11 = vmmov %vm8637_vm10  ;;  %v2111_v30 = vpop.permute.xlu1 %2110  ;;  %v2109_v28 = vpop.permute.xlu0 %2108  ;;  %v7511_v36 = vsel %vm1225_vm1, %v1781_v20, 0.0  ;;  %v2320_v58 = vsel %vm2226_vm2, %v2317_v53, %v2319_v61 }
 0x19b   : > { %2164 = vrot.lane.b32.xlu0 %v2066_v63, %s4936_s10  ;;  %4568 = vmatprep.mubr.msk.f32.mxu1 %vm8638_vm11, %v7487_v27  ;;  %vm8639_vm3 = vmmov %vm8637_vm10  ;;  %v2494_v50 = vsel %vm2476_vm8, %v6136_v48, %v2111_v30  ;;  %v2493_v16 = vsel %vm2476_vm8, %v6007_v22, %v2109_v28  ;;  %v2071_v29 = vrot.slane %v7511_v36, 1 }
 0x19c   : > { %4569 = vmatmul.mubr.msk.f32.gmra.mxu1 %vm8639_vm3, %v7489_v12  ;;  %vm8640_vm5 = vmmov %vm8634_vm7 }
 0x19d   : > { %v2075_v26 = vsel %vm8640_vm5, %v2073_v52, %v7509_v19  ;;  %vm8641_vm14 = vmmov %vm8640_vm5 }
 0x19e   : > { %2416 = vrot.lane.b32.xlu1 %v2318_v40, %s4935_s9  ;;  %v2361_v49 = vpop.permute.xlu1 %2360  ;;  %v2359_v14 = vpop.permute.xlu0 %2358  ;;  %v2070_v60 = vsel %vm8641_vm14, %v2067_v5, %v2069_v25  ;;  %vm8642_vm13 = vmmov %vm8639_vm3  ;;  %v2321_v5 = vrot.slane %v7511_v36, 2 }
 0x19f   : > { %2414 = vrot.lane.b32.xlu0 %v2316_v62, %s4935_s9  ;;  %v2545_v11 = vsel %vm2527_vm12, %v2494_v50, %v2361_v49  ;;  %v2544_v13 = vsel %vm2527_vm12, %v2493_v16, %v2359_v14  ;;  %v7528_v63 = vld [vmem:[#allocation2 + $0x80] sm:$0xff]  ;;  %vm8643_vm4 = vmmov %vm8639_vm3  ;;  %v2227_v62 = vrot.slane %v4937_v32, 2  ;;  %v8656_v32 = vrot.slane %v5442_v21, 2 }
 0x1a0   : > { %v7526_v38 = vld [vmem:[#allocation2 + $0x78] sm:$0xff]  ;;  %2597 = vst.msk [vmem:[#allocation2 + $0x90] sm:$0xff] %vm8642_vm13, %v2545_v11  ;;  %vm8644_vm7 = vmmov %vm8639_vm3  ;;  %v2322_v53 = vsel %vm2226_vm2, %v2319_v61, %v2321_v5 }
 0x1a1   : > { %2596 = vst.msk [vmem:[#allocation2 + $0x88] sm:$0xff] %vm8643_vm4, %v2544_v13  ;;  %4571 = vmatprep.mubr.msk.f32.mxu1 %vm8644_vm7, %v7526_v38  ;;  %vm8645_vm6 = vmmov %vm8639_vm3 }
 0x1a2   : > { %2174 = vrot.lane.b32.xlu1 %v2075_v26, %s4936_s10  ;;  %4572 = vmatmul.mubr.msk.f32.gmra.mxu1 %vm8645_vm6, %v7528_v63  ;;  %v2115_v22 = vpop.permute.xlu1 %2114  ;;  %v2113_v48 = vpop.permute.xlu0 %2112  ;;  %vm8646_vm0 = vmmov %vm8640_vm5 }
 0x1a3   : > { %2168 = vrot.lane.b32.xlu0 %v2070_v60, %s4936_s10  ;;  %v2072_v59 = vsel %vm8646_vm0, %v2069_v25, %v2071_v29  ;;  %v2496_v43 = vsel %vm2476_vm8, %v6218_v10, %v2115_v22  ;;  %v2495_v47 = vsel %vm2476_vm8, %v6142_v31, %v2113_v48  ;;  %vm8647_vm9 = vmmov %vm8646_vm0  ;;  %v2230_v60 = vsel %vm2226_vm2, %v2227_v62, %v8656_v32 }
 0x1a4   : > { %v2074_v28 = vsel %vm8647_vm9, %v2071_v29, %v2073_v52  ;;  %vm8648_vm15 = vmmov %vm8639_vm3  ;;  %v2324_v52 = vsel %vm2226_vm2, %v2321_v5, %v2323_v42  ;;  %v2325_v29 = vsel %vm2226_vm2, %v2323_v42, %v2227_v62  ;;  %v8657_v22 = vrot.slane %v5442_v21, 1  ;;  %v8659_v5 = vld [vmem:[#allocation4_spill] sm:$0xff] }
 0x1a5   : > { %vm8649_vm10 = vmmov %vm8639_vm3 }
 0x1a6   : > { %2170 = vrot.lane.b32.xlu1 %v2072_v59, %s4936_s10  ;;  %v2365_v1 = vpop.permute.xlu1 %2364  ;;  %v2363_v37 = vpop.permute.xlu0 %2362  ;;  %vm8650_vm1 = vmmov %vm8639_vm3 }
 0x1a7   : > { %2418 = vrot.lane.b32.xlu0 %v2320_v58, %s4935_s9  ;;  %v2547_v20 = vsel %vm2527_vm12, %v2496_v43, %v2365_v1  ;;  %v2546_v30 = vsel %vm2527_vm12, %v2495_v47, %v2363_v37  ;;  %v7554_v40 = vld [vmem:[#allocation2 + $0x90] sm:$0xff]  ;;  %vm8651_vm11 = vmmov %vm8650_vm1 }
 0x1a8   : > { %v7552_v25 = vld [vmem:[#allocation2 + $0x88] sm:$0xff]  ;;  %2599 = vst.msk [vmem:[#allocation2 + $0xa0] sm:$0xff] %vm8648_vm15, %v2547_v20  ;;  %vm8652_vm3 = vmmov %vm8650_vm1  ;;  %v8660_v58 = vld [vmem:[#allocation3_spill] sm:$0xff] }
 0x1a9   : > { %2598 = vst.msk [vmem:[#allocation2 + $0x98] sm:$0xff] %vm8649_vm10, %v2546_v30  ;;  %4574 = vmatprep.mubr.msk.f32.mxu1 %vm8650_vm1, %v7552_v25  ;;  %vm8653_vm5 = vmmov %vm8650_vm1 }
 0x1aa   : > { %2420 = vrot.lane.b32.xlu1 %v2322_v53, %s4935_s9  ;;  %4575 = vmatmul.mubr.msk.f32.gmra.mxu1 %vm8651_vm11, %v7554_v40  ;;  %v2119_v31 = vpop.permute.xlu1 %2118  ;;  %v2117_v10 = vpop.permute.xlu0 %2116  ;;  %vm8654_vm14 = vmmov %vm8650_vm1 }
 0x1ab   : > { %2172 = vrot.lane.b32.xlu0 %v2074_v28, %s4936_s10  ;;  %v2498_v26 = vsel %vm2476_vm8, %v6334_v55, %v2119_v31  ;;  %v2497_v61 = vsel %vm2476_vm8, %v6224_v15, %v2117_v10  ;;  %vm8655_vm13 = vmmov %vm8650_vm1  ;;  %v8665_v28 = vld [vmem:[#allocation5_spill] sm:$0xff] }
 0x1ac   : > { %vm8658_vm4 = vmmov %vm8646_vm0 }
 0x1ad   : > { %v1980_v48 = vsel %vm8658_vm4, %v7509_v19, %v8657_v22  ;;  %vm8661_vm2 = vmmov %vm8650_vm1 }
 0x1ae   : > { %2076 = vrot.lane.b32.xlu1 %v7509_v19, %s4936_s10  ;;  %v2369_v50 = vpop.permute.xlu1 %2368  ;;  %v2367_v16 = vpop.permute.xlu0 %2366  ;;  %vm8662_vm7 = vmmov %vm8650_vm1 }
 0x1af   : > { %2422 = vrot.lane.b32.xlu0 %v2324_v52, %s4935_s9  ;;  %v2549_v49 = vsel %vm2527_vm12, %v2498_v26, %v2369_v50  ;;  %v2548_v14 = vsel %vm2527_vm12, %v2497_v61, %v2367_v16  ;;  %v7577_v13 = vld [vmem:[#allocation2 + $0xa0] sm:$0xff]  ;;  %vm8663_vm6 = vmmov %vm8650_vm1 }
 0x1b0   : > { %v7575_v11 = vld [vmem:[#allocation2 + $0x98] sm:$0xff]  ;;  %2601 = vst.msk [vmem:[#allocation2 + $0xb0] sm:$0xff] %vm8652_vm3, %v2549_v49  ;;  %vm8664_vm0 = vmmov %vm8650_vm1  ;;  %v8670_v49 = vld [vmem:[#allocation7_spill] sm:$0xff] }
 0x1b1   : > { %2600 = vst.msk [vmem:[#allocation2 + $0xa8] sm:$0xff] %vm8653_vm5, %v2548_v14  ;;  %4577 = vmatprep.mubr.msk.f32.mxu1 %vm8654_vm14, %v7575_v11  ;;  %vm8666_vm9 = vmmov %vm8664_vm0 }
 0x1b2   : > { %2326 = vrot.lane.b32.xlu1 %v2227_v62, %s4935_s9  ;;  %4578 = vmatmul.mubr.msk.f32.gmra.mxu1 %vm8655_vm13, %v7577_v13  ;;  %v2123_v15 = vpop.permute.xlu1 %2122  ;;  %v2121_v55 = vpop.permute.xlu0 %2120  ;;  %vm8667_vm15 = vmmov %vm8664_vm0 }
 0x1b3   : > { %2424 = vrot.lane.b32.xlu0 %v2325_v29, %s4935_s9  ;;  %v2500_v59 = vsel %vm2476_vm8, %v8659_v5, %v2123_v15  ;;  %v2499_v42 = vsel %vm2476_vm8, %v8660_v58, %v2121_v55  ;;  %vm8668_vm10 = vmmov %vm8664_vm0  ;;  %v8671_v29 = vld [vmem:[#allocation6_spill] sm:$0xff] }
 0x1b4   : > { %vm8669_vm1 = vmmov %vm8664_vm0 }
 0x1b5   : > { %vm8672_vm11 = vmmov %vm8664_vm0 }
 0x1b6   : > { %2328 = vrot.lane.b32.xlu1 %v2230_v60, %s4935_s9  ;;  %v2373_v43 = vpop.permute.xlu1 %2372  ;;  %v2371_v47 = vpop.permute.xlu0 %2370  ;;  %vm8673_vm3 = vmmov %vm8664_vm0 }
 0x1b7   : > { %2078 = vrot.lane.b32.xlu0 %v1980_v48, %s4936_s10  ;;  %v2551_v1 = vsel %vm2527_vm12, %v2500_v59, %v2373_v43  ;;  %v2550_v37 = vsel %vm2527_vm12, %v2499_v42, %v2371_v47  ;;  %v7604_v20 = vld [vmem:[#allocation2 + $0xb0] sm:$0xff]  ;;  %vm8674_vm5 = vmmov %vm8664_vm0  ;;  %v8676_v42 = vld [vmem:[#allocation9_spill] sm:$0xff] }
 0x1b8   : > { %v7602_v21 = vld [vmem:[#allocation2 + $0xa8] sm:$0xff]  ;;  %2603 = vst.msk [vmem:[#allocation2 + $0xc0] sm:$0xff] %vm8661_vm2, %v2551_v1  ;;  %vm8675_vm14 = vmmov %vm8664_vm0  ;;  %v8677_v47 = vld [vmem:[#allocation8_spill] sm:$0xff] }
 0x1b9   : > { %2602 = vst.msk [vmem:[#allocation2 + $0xb8] sm:$0xff] %vm8662_vm7, %v2550_v37  ;;  %4580 = vmatprep.mubr.msk.f32.mxu1 %vm8663_vm6, %v7602_v21  ;;  %vm8678_vm13 = vmmov %vm8664_vm0 }
 0x1ba   : > { %4581 = vmatmul.mubr.msk.f32.gmra.mxu1 %vm8664_vm0, %v7604_v20  ;;  %v2127_v19 = vpop.permute.xlu1 %2126  ;;  %v2125_v30 = vpop.permute.xlu0 %2124  ;;  %vm8679_vm4 = vmmov %vm8664_vm0 }
 0x1bb   : > { %v2502_v53 = vsel %vm2476_vm8, %v6516_v8, %v2127_v19  ;;  %v2501_v31 = vsel %vm2476_vm8, %v8665_v28, %v2125_v30  ;;  %vm8680_vm2 = vmmov %vm8664_vm0 }
 0x1bc   : > { %vm8681_vm7 = vmmov %vm8664_vm0 }
 0x1bd   : > { %vm8684_vm6 = vmmov %vm8664_vm0 }
 0x1be   : > { %v2377_v10 = vpop.permute.xlu1 %2376  ;;  %v2375_v52 = vpop.permute.xlu0 %2374 }
 0x1bf   : > { %v2553_v62 = vsel %vm2527_vm12, %v2502_v53, %v2377_v10  ;;  %v2552_v26 = vsel %vm2527_vm12, %v2501_v31, %v2375_v52  ;;  %v7620_v50 = vld [vmem:[#allocation2 + $0xc0] sm:$0xff] }
 0x1c0   : > { %v7618_v61 = vld [vmem:[#allocation2 + $0xb8] sm:$0xff]  ;;  %2605 = vst.msk [vmem:[#allocation2 + $0xd0] sm:$0xff] %vm8666_vm9, %v2553_v62  ;;  %v8682_v62 = vld [vmem:[#allocation11_spill] sm:$0xff]  ;;  %vm8685_vm9 = vmmov %vm8664_vm0 }
 0x1c1   : > { %2604 = vst.msk [vmem:[#allocation2 + $0xc8] sm:$0xff] %vm8667_vm15, %v2552_v26  ;;  %4583 = vmatprep.mubr.msk.f32.mxu1 %vm8668_vm10, %v7618_v61  ;;  %vm8686_vm15 = vmmov %vm8664_vm0 }
 0x1c2   : > { %4584 = vmatmul.mubr.msk.f32.gmra.mxu1 %vm8669_vm1, %v7620_v50  ;;  %v2131_v8 = vpop.permute.xlu1 %2130  ;;  %v2129_v16 = vpop.permute.xlu0 %2128  ;;  %vm8688_vm10 = vmmov %vm8664_vm0 }
 0x1c3   : > { %v2504_v14 = vsel %vm2476_vm8, %v8670_v49, %v2131_v8  ;;  %v2503_v15 = vsel %vm2476_vm8, %v8671_v29, %v2129_v16  ;;  %v8683_v8 = vld [vmem:[#allocation10_spill] sm:$0xff]  ;;  %vm8689_vm1 = vmmov %vm8664_vm0 }
 0x1c6   : > { %v2381_v55 = vpop.permute.xlu1 %2380  ;;  %v2379_v32 = vpop.permute.xlu0 %2378 }
 0x1c7   : > { %v2555_v60 = vsel %vm2527_vm12, %v2504_v14, %v2381_v55  ;;  %v2554_v22 = vsel %vm2527_vm12, %v2503_v15, %v2379_v32  ;;  %v7636_v5 = vld [vmem:[#allocation2 + $0xd0] sm:$0xff] }
 0x1c8   : > { %v7634_v48 = vld [vmem:[#allocation2 + $0xc8] sm:$0xff]  ;;  %2607 = vst.msk [vmem:[#allocation2 + $0xe0] sm:$0xff] %vm8672_vm11, %v2555_v60  ;;  %vm8690_vm11 = vmmov %vm8664_vm0 }
 0x1c9   : > { %2606 = vst.msk [vmem:[#allocation2 + $0xd8] sm:$0xff] %vm8673_vm3, %v2554_v22  ;;  %4586 = vmatprep.mubr.msk.f32.mxu1 %vm8674_vm5, %v7634_v48  ;;  %vm8691_vm3 = vmmov %vm8664_vm0 }
 0x1ca   : > { %4587 = vmatmul.mubr.msk.f32.gmra.mxu1 %vm8675_vm14, %v7636_v5  ;;  %v2135_v59 = vpop.permute.xlu1 %2134  ;;  %v2133_v58 = vpop.permute.xlu0 %2132  ;;  %vm8692_vm5 = vmmov %vm8664_vm0 }
 0x1cb   : > { %v2506_v43 = vsel %vm2476_vm8, %v8676_v42, %v2135_v59  ;;  %v2505_v1 = vsel %vm2476_vm8, %v8677_v47, %v2133_v58  ;;  %v8687_v59 = vld [vmem:[#allocation12_spill] sm:$0xff]  ;;  %vm8693_vm14 = vmmov %vm8664_vm0 }
 0x1ce   : > { %v2385_v37 = vpop.permute.xlu1 %2384  ;;  %v2383_v19 = vpop.permute.xlu0 %2382 }
 0x1cf   : > { %v2557_v30 = vsel %vm2527_vm12, %v2506_v43, %v2385_v37  ;;  %v2556_v53 = vsel %vm2527_vm12, %v2505_v1, %v2383_v19  ;;  %v7652_v31 = vld [vmem:[#allocation2 + $0xe0] sm:$0xff] }
 0x1d0   : > { %v7650_v28 = vld [vmem:[#allocation2 + $0xd8] sm:$0xff]  ;;  %2609 = vst.msk [vmem:[#allocation2 + $0xf0] sm:$0xff] %vm8678_vm13, %v2557_v30  ;;  %vm8694_vm13 = vmmov %vm8664_vm0 }
 0x1d1   : > { %2608 = vst.msk [vmem:[#allocation2 + $0xe8] sm:$0xff] %vm8679_vm4, %v2556_v53  ;;  %4589 = vmatprep.mubr.msk.f32.mxu1 %vm8680_vm2, %v7650_v28  ;;  %vm8695_vm4 = vmmov %vm8664_vm0 }
 0x1d2   : > { %4590 = vmatmul.mubr.msk.f32.gmra.mxu1 %vm8681_vm7, %v7652_v31  ;;  %v2139_v10 = vpop.permute.xlu1 %2138  ;;  %v2137_v52 = vpop.permute.xlu0 %2136  ;;  %vm8696_vm2 = vmmov %vm8664_vm0 }
 0x1d3   : > { %v2508_v26 = vsel %vm2476_vm8, %v8682_v62, %v2139_v10  ;;  %v2507_v16 = vsel %vm2476_vm8, %v8683_v8, %v2137_v52  ;;  %vm8697_vm7 = vmmov %vm8664_vm0 }
 0x1d6   : > { %v2389_v49 = vpop.permute.xlu1 %2388  ;;  %v2387_v14 = vpop.permute.xlu0 %2386 }
 0x1d7   : > { %v2559_v29 = vsel %vm2527_vm12, %v2508_v26, %v2389_v49  ;;  %v2558_v15 = vsel %vm2527_vm12, %v2507_v16, %v2387_v14  ;;  %v7668_v32 = vld [vmem:[#allocation2 + $0xf0] sm:$0xff] }
 0x1d8   : > { %v7666_v55 = vld [vmem:[#allocation2 + $0xe8] sm:$0xff]  ;;  %2611 = vst.msk [vmem:[#allocation2 + $0x100] sm:$0xff] %vm8684_vm6, %v2559_v29  ;;  %vm8698_vm6 = vmmov %vm8664_vm0 }
 0x1d9   : > { %2610 = vst.msk [vmem:[#allocation2 + $0xf8] sm:$0xff] %vm8664_vm0, %v2558_v15  ;;  %4592 = vmatprep.mubr.msk.f32.mxu1 %vm8685_vm9, %v7666_v55  ;;  %vm8699_vm9 = vmmov %vm8664_vm0 }
 0x1da   : > { %4593 = vmatmul.mubr.msk.f32.gmra.mxu1 %vm8686_vm15, %v7668_v32  ;;  %v2143_v60 = vpop.permute.xlu1 %2142  ;;  %v2141_v22 = vpop.permute.xlu0 %2140  ;;  %vm8700_vm15 = vmmov %vm8664_vm0 }
 0x1db   : > { %v2510_v58 = vsel %vm2476_vm8, %v8687_v59, %v2143_v60  ;;  %v2509_v42 = vsel %vm2476_vm8, %v6858_v41, %v2141_v22 }
 0x1de   : > { %v2393_v43 = vpop.permute.xlu1 %2392  ;;  %v2391_v47 = vpop.permute.xlu0 %2390 }
 0x1df   : > { %v2561_v1 = vsel %vm2527_vm12, %v2510_v58, %v2393_v43  ;;  %v2560_v37 = vsel %vm2527_vm12, %v2509_v42, %v2391_v47  ;;  %v7684_v30 = vld [vmem:[#allocation2 + $0x100] sm:$0xff] }
 0x1e0   : > { %v7682_v19 = vld [vmem:[#allocation2 + $0xf8] sm:$0xff]  ;;  %2613 = vst.msk [vmem:[#allocation2 + $0x110] sm:$0xff] %vm8688_vm10, %v2561_v1  ;;  %vm8701_vm10 = vmmov %vm8664_vm0 }
 0x1e1   : > { %2612 = vst.msk [vmem:[#allocation2 + $0x108] sm:$0xff] %vm8689_vm1, %v2560_v37  ;;  %4595 = vmatprep.mubr.msk.f32.mxu1 %vm8690_vm11, %v7682_v19  ;;  %vm8702_vm1 = vmmov %vm8664_vm0 }
 0x1e2   : > { %4596 = vmatmul.mubr.msk.f32.gmra.mxu1 %vm8691_vm3, %v7684_v30  ;;  %v2147_v41 = vpop.permute.xlu1 %2146  ;;  %v2145_v53 = vpop.permute.xlu0 %2144  ;;  %vm8703_vm11 = vmmov %vm8664_vm0 }
 0x1e3   : > { %v2512_v10 = vsel %vm2476_vm8, %v6935_v54, %v2147_v41  ;;  %v2511_v52 = vsel %vm2476_vm8, %v6941_v45, %v2145_v53  ;;  %vm8704_vm3 = vmmov %vm8664_vm0 }
 0x1e6   : > { %v2397_v62 = vpop.permute.xlu1 %2396  ;;  %v2395_v26 = vpop.permute.xlu0 %2394 }
 0x1e7   : > { %v2563_v8 = vsel %vm2527_vm12, %v2512_v10, %v2397_v62  ;;  %v2562_v16 = vsel %vm2527_vm12, %v2511_v52, %v2395_v26  ;;  %v7700_v14 = vld [vmem:[#allocation2 + $0x110] sm:$0xff] }
 0x1e8   : > { %v7698_v49 = vld [vmem:[#allocation2 + $0x108] sm:$0xff]  ;;  %2615 = vst.msk [vmem:[#allocation2 + $0x120] sm:$0xff] %vm8692_vm5, %v2563_v8  ;;  %vm8705_vm5 = vmmov %vm8664_vm0 }
 0x1e9   : > { %2614 = vst.msk [vmem:[#allocation2 + $0x118] sm:$0xff] %vm8693_vm14, %v2562_v16  ;;  %4598 = vmatprep.mubr.msk.f32.mxu1 %vm8694_vm13, %v7698_v49  ;;  %vm8706_vm14 = vmmov %vm8664_vm0 }
 0x1ea   : > { %4599 = vmatmul.mubr.msk.f32.gmra.mxu1 %vm8695_vm4, %v7700_v14  ;;  %v2151_v54 = vpop.permute.xlu1 %2150  ;;  %v2149_v45 = vpop.permute.xlu0 %2148  ;;  %vm8707_vm13 = vmmov %vm8664_vm0 }
 0x1eb   : > { %v2514_v29 = vsel %vm2476_vm8, %v6980_v51, %v2151_v54  ;;  %v2513_v15 = vsel %vm2476_vm8, %v6998_v3, %v2149_v45  ;;  %vm8708_vm4 = vmmov %vm8664_vm0 }
 0x1ef   : > { %v7716_v43 = vld [vmem:[#allocation2 + $0x120] sm:$0xff] }
 0x1f0   : > { %v2401_v60 = vpop.permute.xlu1 %2400  ;;  %v7714_v42 = vld [vmem:[#allocation2 + $0x118] sm:$0xff] }
 0x1f1   : > { %v2399_v22 = vpop.permute.xlu0 %2398  ;;  %v2565_v59 = vsel %vm2527_vm12, %v2514_v29, %v2401_v60  ;;  %4601 = vmatprep.mubr.msk.f32.mxu1 %vm8698_vm6, %v7714_v42  ;;  %vm8711_vm6 = vmmov %vm8664_vm0 }
 0x1f2   : > { %v2564_v58 = vsel %vm2527_vm12, %v2513_v15, %v2399_v22  ;;  %2617 = vst.msk [vmem:[#allocation2 + $0x130] sm:$0xff] %vm8696_vm2, %v2565_v59  ;;  %4602 = vmatmul.mubr.msk.f32.gmra.mxu1 %vm8664_vm0, %v7716_v43  ;;  %vm8709_vm2 = vmmov %vm8664_vm0 }
 0x1f3   : > { %2616 = vst.msk [vmem:[#allocation2 + $0x128] sm:$0xff] %vm8697_vm7, %v2564_v58  ;;  %vm8710_vm7 = vmmov %vm8664_vm0 }
 0x1f4   : > { %v2155_v51 = vpop.permute.xlu1 %2154 }
 0x1f5   : > { %v2153_v3 = vpop.permute.xlu0 %2152  ;;  %v2516_v47 = vsel %vm2476_vm8, %v7031_v24, %v2155_v51 }
 0x1f6   : > { %v2515_v1 = vsel %vm2476_vm8, %v7039_v33, %v2153_v3 }
 0x1f8   : > { %v2405_v37 = vpop.permute.xlu1 %2404 }
 0x1f9   : > { %v2403_v41 = vpop.permute.xlu0 %2402  ;;  %v2567_v53 = vsel %vm2527_vm12, %v2516_v47, %v2405_v37  ;;  %v7732_v62 = vld [vmem:[#allocation2 + $0x130] sm:$0xff] }
 0x1fa   : > { %v2566_v10 = vsel %vm2527_vm12, %v2515_v1, %v2403_v41  ;;  %v7730_v52 = vld [vmem:[#allocation2 + $0x128] sm:$0xff]  ;;  %2619 = vst.msk [vmem:[#allocation2 + $0x140] sm:$0xff] %vm8699_vm9, %v2567_v53  ;;  %vm8712_vm9 = vmmov %vm8664_vm0 }
 0x1fb   : > { %2618 = vst.msk [vmem:[#allocation2 + $0x138] sm:$0xff] %vm8700_vm15, %v2566_v10  ;;  %4604 = vmatprep.mubr.msk.f32.mxu1 %vm8701_vm10, %v7730_v52  ;;  %vm8713_vm15 = vmmov %vm8664_vm0 }
 0x1fc   : > { %4605 = vmatmul.mubr.msk.f32.gmra.mxu1 %vm8702_vm1, %v7732_v62  ;;  %v2159_v24 = vpop.permute.xlu1 %2158  ;;  %vm8714_vm10 = vmmov %vm8664_vm0 }
 0x1fd   : > { %v2157_v33 = vpop.permute.xlu0 %2156  ;;  %v2518_v26 = vsel %vm2476_vm8, %v7199_v17, %v2159_v24  ;;  %vm8715_vm1 = vmmov %vm8664_vm0 }
 0x1fe   : > { %v2517_v8 = vsel %vm2476_vm8, %v7170_v44, %v2157_v33 }
 0x200   : > { %v2409_v16 = vpop.permute.xlu1 %2408 }
 0x201   : > { %v2407_v54 = vpop.permute.xlu0 %2406  ;;  %v2569_v45 = vsel %vm2527_vm12, %v2518_v26, %v2409_v16  ;;  %v7748_v60 = vld [vmem:[#allocation2 + $0x140] sm:$0xff] }
 0x202   : > { %v2568_v29 = vsel %vm2527_vm12, %v2517_v8, %v2407_v54  ;;  %v7746_v15 = vld [vmem:[#allocation2 + $0x138] sm:$0xff]  ;;  %2621 = vst.msk [vmem:[#allocation2 + $0x150] sm:$0xff] %vm8703_vm11, %v2569_v45  ;;  %vm8716_vm11 = vmmov %vm8664_vm0 }
 0x203   : > { %2620 = vst.msk [vmem:[#allocation2 + $0x148] sm:$0xff] %vm8704_vm3, %v2568_v29  ;;  %4607 = vmatprep.mubr.msk.f32.mxu1 %vm8705_vm5, %v7746_v15  ;;  %vm8717_vm3 = vmmov %vm8664_vm0 }
 0x204   : > { %4608 = vmatmul.mubr.msk.f32.gmra.mxu1 %vm8706_vm14, %v7748_v60  ;;  %v2163_v44 = vpop.permute.xlu1 %2162  ;;  %vm8718_vm5 = vmmov %vm8664_vm0 }
 0x205   : > { %v2161_v17 = vpop.permute.xlu0 %2160  ;;  %v2520_v22 = vsel %vm2476_vm8, %v7315_v0, %v2163_v44  ;;  %vm8719_vm14 = vmmov %vm8664_vm0 }
 0x206   : > { %v2519_v59 = vsel %vm2476_vm8, %v7246_v39, %v2161_v17 }
 0x208   : > { %v2413_v58 = vpop.permute.xlu1 %2412 }
 0x209   : > { %v2411_v51 = vpop.permute.xlu0 %2410  ;;  %v2571_v3 = vsel %vm2527_vm12, %v2520_v22, %v2413_v58  ;;  %v7764_v37 = vld [vmem:[#allocation2 + $0x150] sm:$0xff] }
 0x20a   : > { %v2570_v47 = vsel %vm2527_vm12, %v2519_v59, %v2411_v51  ;;  %v7762_v1 = vld [vmem:[#allocation2 + $0x148] sm:$0xff]  ;;  %2623 = vst.msk [vmem:[#allocation2 + $0x160] sm:$0xff] %vm8707_vm13, %v2571_v3  ;;  %vm8720_vm13 = vmmov %vm8664_vm0 }
 0x20b   : > { %2622 = vst.msk [vmem:[#allocation2 + $0x158] sm:$0xff] %vm8708_vm4, %v2570_v47  ;;  %4610 = vmatprep.mubr.msk.f32.mxu1 %vm8709_vm2, %v7762_v1  ;;  %vm8721_vm4 = vmmov %vm8664_vm0 }
 0x20c   : > { %4611 = vmatmul.mubr.msk.f32.gmra.mxu1 %vm8710_vm7, %v7764_v37  ;;  %v2167_v39 = vpop.permute.xlu1 %2166  ;;  %vm8722_vm2 = vmmov %vm8664_vm0 }
 0x20d   : > { %v2165_v0 = vpop.permute.xlu0 %2164  ;;  %v2522_v41 = vsel %vm2476_vm8, %v7394_v56, %v2167_v39  ;;  %vm8723_vm7 = vmmov %vm8664_vm0 }
 0x20e   : > { %v2521_v53 = vsel %vm2476_vm8, %v7340_v6, %v2165_v0 }
 0x210   : > { %v2417_v10 = vpop.permute.xlu1 %2416 }
 0x211   : > { %v2415_v24 = vpop.permute.xlu0 %2414  ;;  %v2573_v33 = vsel %vm2527_vm12, %v2522_v41, %v2417_v10  ;;  %v7780_v16 = vld [vmem:[#allocation2 + $0x160] sm:$0xff] }
 0x212   : > { %v2572_v26 = vsel %vm2527_vm12, %v2521_v53, %v2415_v24  ;;  %v7778_v8 = vld [vmem:[#allocation2 + $0x158] sm:$0xff]  ;;  %2625 = vst.msk [vmem:[#allocation2 + $0x170] sm:$0xff] %vm8711_vm6, %v2573_v33  ;;  %vm8724_vm6 = vmmov %vm8664_vm0 }
 0x213   : > { %2624 = vst.msk [vmem:[#allocation2 + $0x168] sm:$0xff] %vm8664_vm0, %v2572_v26  ;;  %4613 = vmatprep.mubr.msk.f32.mxu1 %vm8712_vm9, %v7778_v8  ;;  %vm8725_vm9 = vmmov %vm8664_vm0 }
 0x214   : > { %4614 = vmatmul.mubr.msk.f32.gmra.mxu1 %vm8713_vm15, %v7780_v16  ;;  %v2175_v6 = vpop.permute.xlu1 %2174  ;;  %vm8726_vm15 = vmmov %vm8664_vm0 }
 0x215   : > { %v2169_v56 = vpop.permute.xlu0 %2168 }
 0x216   : > { %v2523_v54 = vsel %vm2476_vm8, %v7429_v4, %v2169_v56 }
 0x218   : > { %v2171_v45 = vpop.permute.xlu1 %2170 }
 0x219   : > { %v2419_v29 = vpop.permute.xlu0 %2418  ;;  %v7793_v22 = vld [vmem:[#allocation2 + $0x170] sm:$0xff]  ;;  %v2524_v59 = vsel %vm2476_vm8, %v7491_v23, %v2171_v45  ;;  %v2526_v23 = vsel %vm2476_vm8, %v7474_v9, %v2175_v6 }
 0x21a   : > { %v2574_v44 = vsel %vm2527_vm12, %v2523_v54, %v2419_v29  ;;  %v7791_v17 = vld [vmem:[#allocation2 + $0x168] sm:$0xff] }
 0x21b   : > { %2626 = vst.msk [vmem:[#allocation2 + $0x178] sm:$0xff] %vm8714_vm10, %v2574_v44  ;;  %4616 = vmatprep.mubr.msk.f32.mxu1 %vm8715_vm1, %v7791_v17  ;;  %vm8727_vm10 = vmmov %vm8664_vm0 }
 0x21c   : > { %4617 = vmatmul.mubr.msk.f32.gmra.mxu1 %vm8716_vm11, %v7793_v22  ;;  %v2421_v4 = vpop.permute.xlu1 %2420  ;;  %vm8728_vm1 = vmmov %vm8664_vm0 }
 0x21d   : > { %v2173_v58 = vpop.permute.xlu0 %2172  ;;  %v2575_v51 = vsel %vm2527_vm12, %v2524_v59, %v2421_v4  ;;  %vm8729_vm11 = vmmov %vm8664_vm0 }
 0x21e   : > { %2627 = vst.msk [vmem:[#allocation2 + $0x180] sm:$0xff] %vm8717_vm3, %v2575_v51  ;;  %v2525_v3 = vsel %vm2476_vm8, %v7511_v36, %v2173_v58  ;;  %vm8730_vm3 = vmmov %vm8664_vm0  ;;  %v4907_v58 = vld [vmem:[#allocation2 + $0x18] sm:$0xff]  ;;  %v4908_v51 = vld [vmem:[#allocation2 + $0x20] sm:$0xff] }
 0x220   : > { %v2077_v47 = vpop.permute.xlu1 %2076 }
 0x221   : > { %v2423_v39 = vpop.permute.xlu0 %2422  ;;  %v2477_v53 = vsel %vm2476_vm8, 0.0, %v2077_v47 }
 0x222   : > { %v2576_v0 = vsel %vm2527_vm12, %v2525_v3, %v2423_v39  ;;  %v7807_v41 = vld [vmem:[#allocation2 + $0x178] sm:$0xff]  ;;  %v4910_v3 = vld [vmem:[#allocation2 + $0x30] sm:$0xff] }
 0x223   : > { %2628 = vst.msk [vmem:[#allocation2 + $0x188] sm:$0xff] %vm8718_vm5, %v2576_v0  ;;  %4619 = vmatprep.mubr.msk.f32.mxu1 %vm8719_vm14, %v7807_v41  ;;  %vm8732_vm5 = vmmov %vm8664_vm0 }
 0x224   : > { %v2327_v10 = vpop.permute.xlu1 %2326  ;;  %vm8733_vm14 = vmmov %vm8664_vm0 }
 0x225   : > { %v2425_v24 = vpop.permute.xlu0 %2424  ;;  %v2528_v36 = vsel %vm2527_vm12, %v2477_v53, %v2327_v10  ;;  %v7817_v26 = vld [vmem:[#allocation2 + $0x180] sm:$0xff] }
 0x226   : > { %v2577_v33 = vsel %vm2527_vm12, %v2526_v23, %v2425_v24  ;;  %2579 = vst.msk [vmem:[#allocation2] sm:$0xff] %vm8720_vm13, %v2528_v36  ;;  %4620 = vmatmul.mubr.msk.f32.gmra.mxu1 %vm8725_vm9, %v7817_v26  ;;  %vm8734_vm13 = vmmov %vm8664_vm0 }
 0x227   : > { %2580 = vst.msk [vmem:[#allocation2 + $0x8] sm:$0xff] %vm8721_vm4, %v2528_v36  ;;  %vm8735_vm4 = vmmov %vm8664_vm0 }
 0x228   : > { %2630 = vst.msk [vmem:[#allocation2 + $0x198] sm:$0xff] %vm8722_vm2, %v2528_v36  ;;  %v2329_v9 = vpop.permute.xlu1 %2328  ;;  %vm8736_vm2 = vmmov %vm8664_vm0 }
 0x229   : > { %2631 = vst.msk [vmem:[#allocation2 + $0x1a0] sm:$0xff] %vm8723_vm7, %v2528_v36  ;;  %v2079_v6 = vpop.permute.xlu0 %2078  ;;  %vm8737_vm7 = vmmov %vm8664_vm0 }
 0x22a   : > { %2632 = vst.msk [vmem:[#allocation2 + $0x1a8] sm:$0xff] %vm8724_vm6, %v2528_v36  ;;  %v2478_v56 = vsel %vm2476_vm8, 0.0, %v2079_v6  ;;  %v7828_v54 = vld [vmem:[#allocation2 + $0x188] sm:$0xff]  ;;  %vm8731_vm8 = vmmov %vm8664_vm0 }
 0x22b   : > { %2629 = vst.msk [vmem:[#allocation2 + $0x190] sm:$0xff] %vm8664_vm0, %v2577_v33  ;;  %v2529_v45 = vsel %vm2527_vm12, %v2478_v56, %v2329_v9  ;;  %4622 = vmatprep.mubr.msk.f32.mxu1 %vm8726_vm15, %v7828_v54  ;;  %vm8738_vm6 = vmmov %vm8664_vm0 }
 0x22c   : > { %2581 = vst.msk [vmem:[#allocation2 + $0x10] sm:$0xff] %vm8727_vm10, %v2529_v45  ;;  %vm8739_vm9 = vmmov %vm8664_vm0 }
 0x22d   : > { %v2633_v44 = vld [vmem:[#allocation2] sm:$0xff]  ;;  %vm8740_vm15 = vmmov %vm8664_vm0 }
 0x22e   : > { %v2634_v59 = vld [vmem:[#allocation2 + $0x8] sm:$0xff]  ;;  %4631 = vmatprep.mubr.msk.f32.mxu0 %vm8729_vm11, %v2633_v44  ;;  %vm8741_vm10 = vmmov %vm8664_vm0 }
 0x22f   : > { %4632 = vmatmul.mubr.msk.f32.vlgmr.msra.gmra.mxu0 %vm8730_vm3, %v2634_v59  ;;  %vm8743_vm11 = vmmov %vm8664_vm0 }
 0x230   : > { %vm8744_vm3 = vmmov %vm8664_vm0 }
 0x232   : > { %v7834_v29 = vld [vmem:[#allocation2 + $0x190] sm:$0xff] }
 0x233   : > { %4623 = vmatmul.mubr.msk.f32.gmra.mxu1 %vm8728_vm1, %v7834_v29  ;;  %v2635_v4 = vld [vmem:[#allocation2 + $0x10] sm:$0xff]  ;;  %vm8742_vm1 = vmmov %vm8664_vm0 }
 0x234   : > { %4709 = vmatprep.mubr.msk.f32.mxu1 %vm8731_vm8, %v7191_v35  ;;  %4634 = vmatprep.mubr.msk.f32.mxu0 %vm8733_vm14, %v2635_v4  ;;  %v4909_v35 = vld [vmem:[#allocation2 + $0x28] sm:$0xff]  ;;  %vm8745_vm8 = vmmov %vm8664_vm0 }
 0x235   : > { %4635 = vmatmul.mubr.msk.f32.gmra.mxu0 %vm8735_vm4, %v4907_v58  ;;  %vm8747_vm14 = vmmov %vm8664_vm0 }
 0x236   : > { %4637 = vmatprep.mubr.msk.f32.mxu0 %vm8736_vm2, %v4908_v51  ;;  %vm8749_vm4 = vmmov %vm8664_vm0 }
 0x237   : > { %4710 = vmatmul.mubr.msk.f32.vlgmr.msra.gmra.mxu1 %vm8732_vm5, %v7277_v18  ;;  %vm8746_vm5 = vmmov %vm8664_vm0 }
 0x238   : > { %4712 = vmatprep.mubr.msk.f32.mxu1 %vm8734_vm13, %v7279_v2  ;;  %vm8748_vm13 = vmmov %vm8664_vm0 }
 0x239   : > { %4638 = vmatmul.mubr.msk.f32.gmra.mxu0 %vm8664_vm0, %v4909_v35  ;;  %vm8750_vm2 = vmmov %vm8664_vm0 }
 0x23a   : > { %4640 = vmatprep.mubr.msk.f32.mxu0 %vm8739_vm9, %v4910_v3  ;;  %vm8753_vm9 = vmmov %vm8664_vm0 }
 0x23b   : > { %4713 = vmatmul.mubr.msk.f32.gmra.mxu1 %vm8737_vm7, %v7349_v57  ;;  %vm8751_vm7 = vmmov %vm8664_vm0 }
 0x23c   : > { %4715 = vmatprep.mubr.msk.f32.mxu1 %vm8738_vm6, %v7351_v7  ;;  %vm8752_vm6 = vmmov %vm8664_vm0 }
 0x23d   : > { %4641 = vmatmul.mubr.msk.f32.gmra.mxu0 %vm8742_vm1, %v7277_v18  ;;  %vm8756_vm1 = vmmov %vm8664_vm0  ;;  %v7939_v18 = vpop.f32.mrf.mxu1 }
 0x23e   : > { %4643 = vmatprep.mubr.msk.f32.mxu0 %vm8743_vm11, %v7279_v2  ;;  %vm8757_vm11 = vmmov %vm8664_vm0 }
 0x23f   : > { %4716 = vmatmul.mubr.msk.f32.gmra.mxu1 %vm8740_vm15, %v7421_v34  ;;  %vm8754_vm15 = vmmov %vm8664_vm0  ;;  %v7949_v2 = vpop.f32.mrf.mxu1 }
 0x240   : > { %4718 = vmatprep.mubr.msk.f32.mxu1 %vm8741_vm10, %v7423_v46  ;;  %vm8755_vm10 = vmmov %vm8664_vm0 }
 0x241   : > { %4644 = vmatmul.mubr.msk.f32.gmra.mxu0 %vm8746_vm5, %v7349_v57  ;;  %vm8760_vm5 = vmmov %vm8664_vm0  ;;  %v7955_v57 = vpop.f32.mrf.mxu1 }
 0x242   : > { %4646 = vmatprep.mubr.msk.f32.mxu0 %vm8747_vm14, %v7351_v7  ;;  %vm8761_vm14 = vmmov %vm8664_vm0 }
 0x243   : > { %4719 = vmatmul.mubr.msk.f32.gmra.mxu1 %vm8744_vm3, %v7487_v27  ;;  %vm8758_vm3 = vmmov %vm8664_vm0  ;;  %v7965_v7 = vpop.f32.mrf.mxu1 }
 0x244   : > { %4721 = vmatprep.mubr.msk.f32.mxu1 %vm8745_vm8, %v7489_v12  ;;  %vm8759_vm8 = vmmov %vm8664_vm0 }
 0x245   : > { %4647 = vmatmul.mubr.msk.f32.gmra.mxu0 %vm8750_vm2, %v7421_v34  ;;  %vm8764_vm2 = vmmov %vm8664_vm0  ;;  %v7971_v34 = vpop.f32.mrf.mxu1 }
 0x246   : > { %4649 = vmatprep.mubr.msk.f32.mxu0 %vm8751_vm7, %v7423_v46  ;;  %vm8765_vm7 = vmmov %vm8664_vm0 }
 0x247   : > { %4722 = vmatmul.mubr.msk.f32.gmra.mxu1 %vm8748_vm13, %v7526_v38  ;;  %vm8762_vm13 = vmmov %vm8664_vm0  ;;  %v7981_v46 = vpop.f32.mrf.mxu1 }
 0x248   : > { %4724 = vmatprep.mubr.msk.f32.mxu1 %vm8749_vm4, %v7528_v63  ;;  %vm8763_vm4 = vmmov %vm8664_vm0 }
 0x249   : > { %4650 = vmatmul.mubr.msk.f32.gmra.mxu0 %vm8753_vm9, %v7487_v27  ;;  %vm8767_vm9 = vmmov %vm8664_vm0 }
 0x24a   : > { %4652 = vmatprep.mubr.msk.f32.mxu0 %vm8754_vm15, %v7489_v12  ;;  %vm8768_vm15 = vmmov %vm8664_vm0 }
 0x24b   : > { %4725 = vmatmul.mubr.msk.f32.gmra.mxu1 %vm8752_vm6, %v7552_v25  ;;  %vm8766_vm6 = vmmov %vm8664_vm0 }
 0x24c   : > { %4727 = vmatprep.mubr.msk.f32.mxu1 %vm8664_vm0, %v7554_v40  ;;  %v7987_v27 = vpop.f32.mrf.mxu1 }
 0x24d   : > { %4653 = vmatmul.mubr.msk.f32.gmra.mxu0 %vm8757_vm11, %v7526_v38  ;;  %vm8771_vm11 = vmmov %vm8664_vm0 }
 0x24e   : > { %4655 = vmatprep.mubr.msk.f32.mxu0 %vm8758_vm3, %v7528_v63  ;;  %vm8772_vm3 = vmmov %vm8664_vm0  ;;  %v7997_v12 = vpop.f32.mrf.mxu1 }
 0x24f   : > { %4728 = vmatmul.mubr.msk.f32.gmra.mxu1 %vm8755_vm10, %v7575_v11  ;;  %vm8769_vm10 = vmmov %vm8664_vm0 }
 0x250   : > { %4730 = vmatprep.mubr.msk.f32.mxu1 %vm8756_vm1, %v7577_v13  ;;  %vm8770_vm1 = vmmov %vm8664_vm0 }
 0x251   : > { %4656 = vmatmul.mubr.msk.f32.gmra.mxu0 %vm8761_vm14, %v7552_v25  ;;  %vm8775_vm14 = vmmov %vm8664_vm0 }
 0x252   : > { %4658 = vmatprep.mubr.msk.f32.mxu0 %vm8762_vm13, %v7554_v40  ;;  %vm8776_vm13 = vmmov %vm8664_vm0 }
 0x253   : > { %4731 = vmatmul.mubr.msk.f32.gmra.mxu1 %vm8759_vm8, %v7602_v21  ;;  %vm8773_vm8 = vmmov %vm8664_vm0 }
 0x254   : > { %4733 = vmatprep.mubr.msk.f32.mxu1 %vm8760_vm5, %v7604_v20  ;;  %vm8774_vm5 = vmmov %vm8664_vm0  ;;  %v8003_v38 = vpop.f32.mrf.mxu1 }
 0x255   : > { %4659 = vmatmul.mubr.msk.f32.gmra.mxu0 %vm8765_vm7, %v7575_v11  ;;  %vm8779_vm7 = vmmov %vm8664_vm0 }
 0x256   : > { %4661 = vmatprep.mubr.msk.f32.mxu0 %vm8766_vm6, %v7577_v13  ;;  %vm8780_vm6 = vmmov %vm8664_vm0  ;;  %v8013_v63 = vpop.f32.mrf.mxu1  ;;  %v2684_v13 = vld [vmem:[#allocation2 + $0x198] sm:$0xff] }
 0x257   : > { %4734 = vmatmul.mubr.msk.f32.gmra.mxu1 %vm8763_vm4, %v7618_v61  ;;  %vm8777_vm4 = vmmov %vm8664_vm0 }
 0x258   : > { %4736 = vmatprep.mubr.msk.f32.mxu1 %vm8764_vm2, %v7620_v50  ;;  %vm8778_vm2 = vmmov %vm8664_vm0 }
 0x259   : > { %4662 = vmatmul.mubr.msk.f32.gmra.mxu0 %vm8768_vm15, %v7602_v21  ;;  %vm8782_vm15 = vmmov %vm8664_vm0  ;;  %v2685_v21 = vld [vmem:[#allocation2 + $0x1a0] sm:$0xff] }
 0x25a   : > { %4664 = vmatprep.mubr.msk.f32.mxu0 %vm8769_vm10, %v7604_v20  ;;  %vm8783_vm10 = vmmov %vm8664_vm0 }
 0x25b   : > { %4737 = vmatmul.mubr.msk.f32.gmra.mxu1 %vm8664_vm0, %v7634_v48 }
 0x25c   : > { %4739 = vmatprep.mubr.msk.f32.mxu1 %vm8767_vm9, %v7636_v5  ;;  %vm8781_vm9 = vmmov %vm8664_vm0  ;;  %v8019_v25 = vpop.f32.mrf.mxu1 }
 0x25d   : > { %4665 = vmatmul.mubr.msk.f32.gmra.mxu0 %vm8772_vm3, %v7618_v61  ;;  %vm8786_vm3 = vmmov %vm8664_vm0  ;;  %v2686_v61 = vld [vmem:[#allocation2 + $0x1a8] sm:$0xff] }
 0x25e   : > { %4667 = vmatprep.mubr.msk.f32.mxu0 %vm8773_vm8, %v7620_v50  ;;  %vm8787_vm8 = vmmov %vm8664_vm0  ;;  %v8029_v40 = vpop.f32.mrf.mxu1 }
 0x25f   : > { %4740 = vmatmul.mubr.msk.f32.gmra.mxu1 %vm8770_vm1, %v7650_v28  ;;  %vm8784_vm1 = vmmov %vm8664_vm0 }
 0x260   : > { %4742 = vmatprep.mubr.msk.f32.mxu1 %vm8771_vm11, %v7652_v31  ;;  %vm8785_vm11 = vmmov %vm8664_vm0 }
 0x261   : > { %4668 = vmatmul.mubr.msk.f32.gmra.mxu0 %vm8776_vm13, %v7634_v48  ;;  %vm8790_vm13 = vmmov %vm8664_vm0 }
 0x262   : > { %4670 = vmatprep.mubr.msk.f32.mxu0 %vm8777_vm4, %v7636_v5  ;;  %vm8791_vm4 = vmmov %vm8664_vm0  ;;  %v8035_v11 = vpop.f32.mrf.mxu1 }
 0x263   : > { %4743 = vmatmul.mubr.msk.f32.gmra.mxu1 %vm8774_vm5, %v7666_v55  ;;  %vm8788_vm5 = vmmov %vm8664_vm0 }
 0x264   : > { %4745 = vmatprep.mubr.msk.f32.mxu1 %vm8775_vm14, %v7668_v32  ;;  %vm8789_vm14 = vmmov %vm8664_vm0  ;;  %v8043_v20 = vpop.f32.mrf.mxu1 }
 0x265   : > { %4671 = vmatmul.mubr.msk.f32.gmra.mxu0 %vm8780_vm6, %v7650_v28  ;;  %vm8794_vm6 = vmmov %vm8664_vm0 }
 0x266   : > { %4673 = vmatprep.mubr.msk.f32.mxu0 %vm8664_vm0, %v7652_v31 }
 0x267   : > { %4746 = vmatmul.mubr.msk.f32.gmra.mxu1 %vm8778_vm2, %v7682_v19  ;;  %vm8792_vm2 = vmmov %vm8664_vm0 }
 0x268   : > { %4748 = vmatprep.mubr.msk.f32.mxu1 %vm8779_vm7, %v7684_v30  ;;  %vm8793_vm7 = vmmov %vm8664_vm0 }
 0x269   : > { %4674 = vmatmul.mubr.msk.f32.gmra.mxu0 %vm8783_vm10, %v7666_v55  ;;  %vm8797_vm10 = vmmov %vm8664_vm0 }
 0x26a   : > { %4676 = vmatprep.mubr.msk.f32.mxu0 %vm8784_vm1, %v7668_v32  ;;  %vm8798_vm1 = vmmov %vm8664_vm0  ;;  %v8047_v50 = vpop.f32.mrf.mxu1 }
 0x26b   : > { %4749 = vmatmul.mubr.msk.f32.gmra.mxu1 %vm8781_vm9, %v7698_v49  ;;  %vm8795_vm9 = vmmov %vm8664_vm0 }
 0x26c   : > { %4751 = vmatprep.mubr.msk.f32.mxu1 %vm8782_vm15, %v7700_v14  ;;  %vm8796_vm15 = vmmov %vm8664_vm0  ;;  %v8050_v48 = vpop.f32.mrf.mxu1 }
 0x26d   : > { %4677 = vmatmul.mubr.msk.f32.gmra.mxu0 %vm8787_vm8, %v7682_v19  ;;  %vm8801_vm8 = vmmov %vm8664_vm0 }
 0x26e   : > { %4679 = vmatprep.mubr.msk.f32.mxu0 %vm8788_vm5, %v7684_v30  ;;  %vm8802_vm5 = vmmov %vm8664_vm0 }
 0x26f   : > { %4752 = vmatmul.mubr.msk.f32.gmra.mxu1 %vm8785_vm11, %v7714_v42  ;;  %vm8799_vm11 = vmmov %vm8664_vm0 }
 0x270   : > { %4754 = vmatprep.mubr.msk.f32.mxu1 %vm8786_vm3, %v7716_v43  ;;  %vm8800_vm3 = vmmov %vm8664_vm0 }
 0x271   : > { %4680 = vmatmul.mubr.msk.f32.gmra.mxu0 %vm8791_vm4, %v7698_v49  ;;  %vm8805_vm4 = vmmov %vm8664_vm0 }
 0x272   : > { %4682 = vmatprep.mubr.msk.f32.mxu0 %vm8792_vm2, %v7700_v14  ;;  %vm8806_vm2 = vmmov %vm8664_vm0  ;;  %v8052_v5 = vpop.f32.mrf.mxu1 }
 0x273   : > { %4755 = vmatmul.mubr.msk.f32.gmra.mxu1 %vm8789_vm14, %v7730_v52  ;;  %vm8803_vm14 = vmmov %vm8664_vm0 }
 0x274   : > { %4757 = vmatprep.mubr.msk.f32.mxu1 %vm8790_vm13, %v7732_v62  ;;  %vm8804_vm13 = vmmov %vm8664_vm0  ;;  %v8054_v28 = vpop.f32.mrf.mxu1 }
 0x275   : > { %4683 = vmatmul.mubr.msk.f32.gmra.mxu0 %vm8664_vm0, %v7714_v42 }
 0x276   : > { %4685 = vmatprep.mubr.msk.f32.mxu0 %vm8795_vm9, %v7716_v43  ;;  %vm8809_vm9 = vmmov %vm8664_vm0 }
 0x277   : > { %4758 = vmatmul.mubr.msk.f32.gmra.mxu1 %vm8793_vm7, %v7746_v15  ;;  %vm8807_vm7 = vmmov %vm8664_vm0 }
 0x278   : > { %4760 = vmatprep.mubr.msk.f32.mxu1 %vm8794_vm6, %v7748_v60  ;;  %vm8808_vm6 = vmmov %vm8664_vm0 }
 0x279   : > { %4686 = vmatmul.mubr.msk.f32.gmra.mxu0 %vm8798_vm1, %v7730_v52  ;;  %vm8812_vm1 = vmmov %vm8664_vm0 }
 0x27a   : > { %4688 = vmatprep.mubr.msk.f32.mxu0 %vm8799_vm11, %v7732_v62  ;;  %vm8813_vm11 = vmmov %vm8664_vm0  ;;  %v8056_v31 = vpop.f32.mrf.mxu1 }
 0x27b   : > { %4761 = vmatmul.mubr.msk.f32.gmra.mxu1 %vm8796_vm15, %v7762_v1  ;;  %vm8810_vm15 = vmmov %vm8664_vm0 }
 0x27c   : > { %4763 = vmatprep.mubr.msk.f32.mxu1 %vm8797_vm10, %v7764_v37  ;;  %vm8811_vm10 = vmmov %vm8664_vm0  ;;  %v8058_v55 = vpop.f32.mrf.mxu1 }
 0x27d   : > { %4689 = vmatmul.mubr.msk.f32.gmra.mxu0 %vm8802_vm5, %v7746_v15  ;;  %vm8816_vm5 = vmmov %vm8664_vm0 }
 0x27e   : > { %4691 = vmatprep.mubr.msk.f32.mxu0 %vm8803_vm14, %v7748_v60  ;;  %vm8817_vm14 = vmmov %vm8664_vm0 }
 0x27f   : > { %4764 = vmatmul.mubr.msk.f32.gmra.mxu1 %vm8800_vm3, %v7778_v8  ;;  %vm8814_vm3 = vmmov %vm8664_vm0 }
 0x280   : > { %4766 = vmatprep.mubr.msk.f32.mxu1 %vm8801_vm8, %v7780_v16  ;;  %vm8815_vm8 = vmmov %vm8664_vm0 }
 0x281   : > { %4692 = vmatmul.mubr.msk.f32.gmra.mxu0 %vm8806_vm2, %v7762_v1 }
 0x282   : > { %4694 = vmatprep.mubr.msk.f32.mxu0 %vm8807_vm7, %v7764_v37  ;;  %v8060_v32 = vpop.f32.mrf.mxu1 }
 0x283   : > { %4767 = vmatmul.mubr.msk.f32.gmra.mxu1 %vm8804_vm13, %v7791_v17  ;;  %vm8818_vm13 = vmmov %vm8664_vm0 }
 0x284   : > { %4769 = vmatprep.mubr.msk.f32.mxu1 %vm8805_vm4, %v7793_v22  ;;  %v8062_v19 = vpop.f32.mrf.mxu1 }
 0x285   : > { %4695 = vmatmul.mubr.msk.f32.gmra.mxu0 %vm8809_vm9, %v7778_v8 }
 0x286   : > { %4697 = vmatprep.mubr.msk.f32.mxu0 %vm8810_vm15, %v7780_v16 }
 0x287   : > { %4770 = vmatmul.mubr.msk.f32.gmra.mxu1 %vm8808_vm6, %v7807_v41 }
 0x288   : > { %4772 = vmatprep.mubr.msk.f32.mxu1 %vm8664_vm0, %v7817_v26 }
 0x289   : > { %4698 = vmatmul.mubr.msk.f32.gmra.mxu0 %vm8813_vm11, %v7791_v17 }
 0x28a   : > { %4700 = vmatprep.mubr.msk.f32.mxu0 %vm8814_vm3, %v7793_v22  ;;  %v8064_v30 = vpop.f32.mrf.mxu1 }
 0x28b   : > { %4773 = vmatmul.mubr.msk.f32.gmra.mxu1 %vm8811_vm10, %v7828_v54 }
 0x28c   : > { %4775 = vmatprep.mubr.msk.f32.mxu1 %vm8812_vm1, %v7834_v29  ;;  %v8066_v49 = vpop.f32.mrf.mxu1  ;;  %v8121_v29 = vld [vmem:[%s8333_s4] ss:$0 sm:$0xff] }
 0x28d   : > { %4701 = vmatmul.mubr.msk.f32.gmra.mxu0 %vm8817_vm14, %v7807_v41 }
 0x28f   : > { %4776 = vmatmul.mubr.msk.f32.gmra.mxu1 %vm8815_vm8, %v2684_v13 }
 0x290   : > { %4778 = vmatprep.mubr.msk.f32.mxu1 %vm8816_vm5, %v2685_v21 }
 0x292   : > { %v8068_v14 = vpop.f32.mrf.mxu1 }
 0x293   : > { %4779 = vmatmul.mubr.msk.f32.gmra.mxu1 %vm8818_vm13, %v2686_v61 }
 0x294   : > { %v8070_v42 = vpop.f32.mrf.mxu1 }
 0x29a   : > { %v8072_v43 = vpop.f32.mrf.mxu1 }
 0x29c   : > { %v8074_v52 = vpop.f32.mrf.mxu1 }
 0x2a2   : > { %v8076_v62 = vpop.f32.mrf.mxu1 }
 0x2a4   : > { %v8078_v15 = vpop.f32.mrf.mxu1 }
 0x2aa   : > { %v8080_v60 = vpop.f32.mrf.mxu1 }
 0x2ac   : > { %v8082_v1 = vpop.f32.mrf.mxu1 }
 0x2b2   : > { %v8084_v37 = vpop.f32.mrf.mxu1 }
 0x2b4   : > { %v8086_v8 = vpop.f32.mrf.mxu1 }
 0x2bc   : > { %v8088_v16 = vpop.f32.mrf.mxu1 }
 0x2be   : > { %v8090_v17 = vpop.f32.mrf.mxu1 }
 0x2c4   : > { %v8092_v22 = vpop.f32.mrf.mxu1 }
 0x2c6   : > { %v8094_v47 = vpop.f32.mrf.mxu1 }
 0x2cc   : > { %v8096_v39 = vpop.f32.mrf.mxu1 }
 0x2ce   : > { %v8098_v0 = vpop.f32.mrf.mxu1 }
 0x2d4   : > { %v8100_v41 = vpop.f32.mrf.mxu1 }
 0x2d6   : > { %v8102_v23 = vpop.f32.mrf.mxu1 }
 0x2dc   : > { %v8104_v53 = vpop.f32.mrf.mxu1 }
 0x2de   : > { %v8106_v10 = vpop.f32.mrf.mxu1 }
 0x2e6   : > { %v8108_v24 = vpop.f32.mrf.mxu1 }
 0x2e8   : > { %v8110_v36 = vpop.f32.mrf.mxu1 }
 0x2ef   : > { %v4633_v26 = vpop.f32.mrf.mxu0 }
 0x2f0   : > { %v3224_v9 = vadd.f32 %v4633_v26, %v7939_v18 }
 0x2f1   : > { %v3218_v56 = vpop.f32.mrf.mxu0 }
 0x2f2   : > { %v3219_v54 = vadd.f32 %v3218_v56, %v7949_v2 }
 0x2f3   : > { %v8112_v33 = vpop.f32.mrf.mxu1 }
 0x2f5   : > { %v8115_v6 = vpop.f32.mrf.mxu1  ;;  %v4636_v59 = vpop.f32.mrf.mxu0 }
 0x2f6   : > { %v3234_v51 = vadd.f32 %v4636_v59, %v7955_v57 }
 0x2f7   : > { %v4711_v45 = vpop.f32.mrf.mxu1  ;;  %v3228_v3 = vpop.f32.mrf.mxu0 }
 0x2f8   : > { %v3776_v44 = vadd.f32 %v4711_v45, %v3224_v9  ;;  %v3229_v21 = vadd.f32 %v3228_v3, %v7965_v7 }
 0x2f9   : > { %v3536_v4 = vpop.f32.mrf.mxu1  ;;  %v4639_v26 = vpop.f32.mrf.mxu0 }
 0x2fa   : > { %v3831_v58 = vadd.f32 %v8121_v29, %v3776_v44  ;;  %v3775_v35 = vadd.f32 %v3536_v4, %v3219_v54  ;;  %v3244_v54 = vadd.f32 %v4639_v26, %v7971_v34 }
 0x2fb   : > { %v4714_v18 = vpop.f32.mrf.mxu1  ;;  %v3238_v44 = vpop.f32.mrf.mxu0 }
 0x2fc   : > { %v3879_v2 = vmax.f32 %v3831_v58, 0.0  ;;  %v3830_v13 = vadd.f32 %v8121_v29, %v3775_v35  ;;  %v3778_v61 = vadd.f32 %v4714_v18, %v3234_v51  ;;  %v3239_v58 = vadd.f32 %v3238_v44, %v7981_v46 }
 0x2fd   : > { %v3546_v57 = vpop.f32.mrf.mxu1  ;;  %v4642_v35 = vpop.f32.mrf.mxu0 }
 0x2fe   : > { %3927 = vst.msk [vmem:[%s8130_s13 + $0x8] sm:$0xff] %vm2527_vm12, %v3879_v2  ;;  %v3878_v9 = vmax.f32 %v3830_v13, 0.0  ;;  %v3833_v56 = vadd.f32 %v8121_v29, %v3778_v61  ;;  %v3777_v45 = vadd.f32 %v3546_v57, %v3229_v21  ;;  %v3254_v2 = vadd.f32 %v4642_v35, %v7987_v27 }
 0x2ff   : > { %v4717_v59 = vpop.f32.mrf.mxu1  ;;  %v3248_v21 = vpop.f32.mrf.mxu0 }
 0x300   : > { %3926 = vst.msk [vmem:[%s8130_s13] sm:$0xff] %vm2527_vm12, %v3878_v9  ;;  %v3881_v4 = vmax.f32 %v3833_v56, 0.0  ;;  %v3832_v7 = vadd.f32 %v8121_v29, %v3777_v45  ;;  %v3780_v51 = vadd.f32 %v4717_v59, %v3244_v54  ;;  %v3249_v57 = vadd.f32 %v3248_v21, %v7997_v12 }
 0x301   : > { %v3556_v3 = vpop.f32.mrf.mxu1  ;;  %v4645_v56 = vpop.f32.mrf.mxu0 }
 0x302   : > { %3929 = vst.msk [vmem:[%s8130_s13 + $0x18] sm:$0xff] %vm2527_vm12, %v3881_v4  ;;  %v3880_v18 = vmax.f32 %v3832_v7, 0.0  ;;  %v3835_v34 = vadd.f32 %v8121_v29, %v3780_v51  ;;  %v3779_v13 = vadd.f32 %v3556_v3, %v3239_v58  ;;  %v3264_v44 = vadd.f32 %v4645_v56, %v8003_v38 }
 0x303   : > { %v4720_v61 = vpop.f32.mrf.mxu1  ;;  %v3258_v4 = vpop.f32.mrf.mxu0 }
 0x304   : > { %3928 = vst.msk [vmem:[%s8130_s13 + $0x10] sm:$0xff] %vm2527_vm12, %v3880_v18  ;;  %v3883_v26 = vmax.f32 %v3835_v34, 0.0  ;;  %v3834_v46 = vadd.f32 %v8121_v29, %v3779_v13  ;;  %v3782_v9 = vadd.f32 %v4720_v61, %v3254_v2  ;;  %v3259_v51 = vadd.f32 %v3258_v4, %v8013_v63 }
 0x305   : > { %v3566_v54 = vpop.f32.mrf.mxu1  ;;  %v4648_v3 = vpop.f32.mrf.mxu0 }
 0x306   : > { %3931 = vst.msk [vmem:[%s8130_s13 + $0x28] sm:$0xff] %vm2527_vm12, %v3883_v26  ;;  %v3882_v45 = vmax.f32 %v3834_v46, 0.0  ;;  %v3837_v27 = vadd.f32 %v8121_v29, %v3782_v9  ;;  %v3781_v59 = vadd.f32 %v3566_v54, %v3249_v57  ;;  %v3274_v2 = vadd.f32 %v4648_v3, %v8019_v25 }
 0x307   : > { %v4723_v7 = vpop.f32.mrf.mxu1  ;;  %v3268_v21 = vpop.f32.mrf.mxu0 }
 0x308   : > { %3930 = vst.msk [vmem:[%s8130_s13 + $0x20] sm:$0xff] %vm2527_vm12, %v3882_v45  ;;  %v3885_v58 = vmax.f32 %v3837_v27, 0.0  ;;  %v3836_v12 = vadd.f32 %v8121_v29, %v3781_v59  ;;  %v3784_v35 = vadd.f32 %v4723_v7, %v3264_v44  ;;  %v3269_v46 = vadd.f32 %v3268_v21, %v8029_v40 }
 0x309   : > { %v3576_v18 = vpop.f32.mrf.mxu1  ;;  %v4651_v9 = vpop.f32.mrf.mxu0 }
 0x30a   : > { %3933 = vst.msk [vmem:[%s8130_s13 + $0x38] sm:$0xff] %vm2527_vm12, %v3885_v58  ;;  %v3884_v34 = vmax.f32 %v3836_v12, 0.0  ;;  %v3839_v38 = vadd.f32 %v8121_v29, %v3784_v35  ;;  %v3783_v13 = vadd.f32 %v3576_v18, %v3259_v51  ;;  %v3284_v45 = vadd.f32 %v4651_v9, %v8035_v11 }
 0x30b   : > { %v4726_v61 = vpop.f32.mrf.mxu1  ;;  %v3278_v44 = vpop.f32.mrf.mxu0 }
 0x30c   : > { %3932 = vst.msk [vmem:[%s8130_s13 + $0x30] sm:$0xff] %vm2527_vm12, %v3884_v34  ;;  %v3887_v26 = vmax.f32 %v3839_v38, 0.0  ;;  %v3838_v63 = vadd.f32 %v8121_v29, %v3783_v13  ;;  %v3786_v57 = vadd.f32 %v4726_v61, %v3274_v2  ;;  %v3279_v7 = vadd.f32 %v3278_v44, %v8043_v20 }
 0x30d   : > { %v3586_v56 = vpop.f32.mrf.mxu1  ;;  %v4654_v12 = vpop.f32.mrf.mxu0 }
 0x30e   : > { %3935 = vst.msk [vmem:[%s8130_s13 + $0x48] sm:$0xff] %vm2527_vm12, %v3887_v26  ;;  %v3886_v54 = vmax.f32 %v3838_v63, 0.0  ;;  %v3841_v25 = vadd.f32 %v8121_v29, %v3786_v57  ;;  %v3785_v27 = vadd.f32 %v3586_v56, %v3269_v46  ;;  %v3294_v3 = vadd.f32 %v4654_v12, %v8047_v50 }
 0x30f   : > { %v4729_v59 = vpop.f32.mrf.mxu1  ;;  %v3288_v34 = vpop.f32.mrf.mxu0 }
 0x310   : > { %3934 = vst.msk [vmem:[%s8130_s13 + $0x40] sm:$0xff] %vm2527_vm12, %v3886_v54  ;;  %v3889_v4 = vmax.f32 %v3841_v25, 0.0  ;;  %v3840_v40 = vadd.f32 %v8121_v29, %v3785_v27  ;;  %v3788_v58 = vadd.f32 %v4729_v59, %v3284_v45  ;;  %v3289_v13 = vadd.f32 %v3288_v34, %v8050_v48 }
 0x311   : > { %v3596_v51 = vpop.f32.mrf.mxu1  ;;  %v4657_v61 = vpop.f32.mrf.mxu0 }
 0x312   : > { %3937 = vst.msk [vmem:[%s8130_s13 + $0x58] sm:$0xff] %vm2527_vm12, %v3889_v4  ;;  %v3888_v35 = vmax.f32 %v3840_v40, 0.0  ;;  %v3843_v11 = vadd.f32 %v8121_v29, %v3788_v58  ;;  %v3787_v18 = vadd.f32 %v3596_v51, %v3279_v7  ;;  %v3304_v46 = vadd.f32 %v4657_v61, %v8052_v5 }
 0x313   : > { %v4732_v38 = vpop.f32.mrf.mxu1  ;;  %v3298_v9 = vpop.f32.mrf.mxu0 }
 0x314   : > { %3936 = vst.msk [vmem:[%s8130_s13 + $0x50] sm:$0xff] %vm2527_vm12, %v3888_v35  ;;  %v3891_v2 = vmax.f32 %v3843_v11, 0.0  ;;  %v3842_v20 = vadd.f32 %v8121_v29, %v3787_v18  ;;  %v3790_v21 = vadd.f32 %v4732_v38, %v3294_v3  ;;  %v3299_v25 = vadd.f32 %v3298_v9, %v8054_v28 }
 0x315   : > { %v3606_v26 = vpop.f32.mrf.mxu1  ;;  %v4660_v27 = vpop.f32.mrf.mxu0 }
 0x316   : > { %3939 = vst.msk [vmem:[%s8130_s13 + $0x68] sm:$0xff] %vm2527_vm12, %v3891_v2  ;;  %v3890_v63 = vmax.f32 %v3842_v20, 0.0  ;;  %v3845_v50 = vadd.f32 %v8121_v29, %v3790_v21  ;;  %v3789_v57 = vadd.f32 %v3606_v26, %v3289_v13  ;;  %v3314_v4 = vadd.f32 %v4660_v27, %v8056_v31 }
 0x317   : > { %v4735_v56 = vpop.f32.mrf.mxu1  ;;  %v3308_v7 = vpop.f32.mrf.mxu0 }
 0x318   : > { %3938 = vst.msk [vmem:[%s8130_s13 + $0x60] sm:$0xff] %vm2527_vm12, %v3890_v63  ;;  %v3893_v54 = vmax.f32 %v3845_v50, 0.0  ;;  %v3844_v48 = vadd.f32 %v8121_v29, %v3789_v57  ;;  %v3792_v45 = vadd.f32 %v4735_v56, %v3304_v46  ;;  %v3309_v51 = vadd.f32 %v3308_v7, %v8058_v55 }
 0x319   : > { %v3616_v44 = vpop.f32.mrf.mxu1  ;;  %v4663_v11 = vpop.f32.mrf.mxu0 }
 0x31a   : > { %3941 = vst.msk [vmem:[%s8130_s13 + $0x78] sm:$0xff] %vm2527_vm12, %v3893_v54  ;;  %v3892_v59 = vmax.f32 %v3844_v48, 0.0  ;;  %v3847_v5 = vadd.f32 %v8121_v29, %v3792_v45  ;;  %v3791_v40 = vadd.f32 %v3616_v44, %v3299_v25  ;;  %v3324_v34 = vadd.f32 %v4663_v11, %v8060_v32 }
 0x31b   : > { %v4738_v58 = vpop.f32.mrf.mxu1  ;;  %v3318_v2 = vpop.f32.mrf.mxu0 }
 0x31c   : > { %3940 = vst.msk [vmem:[%s8130_s13 + $0x70] sm:$0xff] %vm2527_vm12, %v3892_v59  ;;  %v3895_v12 = vmax.f32 %v3847_v5, 0.0  ;;  %v3846_v28 = vadd.f32 %v8121_v29, %v3791_v40  ;;  %v3794_v35 = vadd.f32 %v4738_v58, %v3314_v4  ;;  %v3319_v21 = vadd.f32 %v3318_v2, %v8062_v19 }
 0x31d   : > { %v3626_v3 = vpop.f32.mrf.mxu1  ;;  %v4666_v26 = vpop.f32.mrf.mxu0 }
 0x31e   : > { %3943 = vst.msk [vmem:[%s8130_s13 + $0x88] sm:$0xff] %vm2527_vm12, %v3895_v12  ;;  %v3894_v18 = vmax.f32 %v3846_v28, 0.0  ;;  %v3849_v31 = vadd.f32 %v8121_v29, %v3794_v35  ;;  %v3793_v38 = vadd.f32 %v3626_v3, %v3309_v51  ;;  %v3334_v46 = vadd.f32 %v4666_v26, %v8064_v30 }
 0x31f   : > { %v4741_v20 = vpop.f32.mrf.mxu1  ;;  %v3328_v9 = vpop.f32.mrf.mxu0 }
 0x320   : > { %3942 = vst.msk [vmem:[%s8130_s13 + $0x80] sm:$0xff] %vm2527_vm12, %v3894_v18  ;;  %v3897_v13 = vmax.f32 %v3849_v31, 0.0  ;;  %v3848_v55 = vadd.f32 %v8121_v29, %v3793_v38  ;;  %v3796_v61 = vadd.f32 %v4741_v20, %v3324_v34  ;;  %v3329_v48 = vadd.f32 %v3328_v9, %v8066_v49 }
 0x321   : > { %v3636_v63 = vpop.f32.mrf.mxu1  ;;  %v4669_v45 = vpop.f32.mrf.mxu0 }
 0x322   : > { %3945 = vst.msk [vmem:[%s8130_s13 + $0x98] sm:$0xff] %vm2527_vm12, %v3897_v13  ;;  %v3896_v50 = vmax.f32 %v3848_v55, 0.0  ;;  %v3851_v32 = vadd.f32 %v8121_v29, %v3796_v61  ;;  %v3795_v57 = vadd.f32 %v3636_v63, %v3319_v21  ;;  %v3344_v59 = vadd.f32 %v4669_v45, %v8068_v14 }
 0x323   : > { %v4744_v56 = vpop.f32.mrf.mxu1  ;;  %v3338_v4 = vpop.f32.mrf.mxu0 }
 0x324   : > { %3944 = vst.msk [vmem:[%s8130_s13 + $0x90] sm:$0xff] %vm2527_vm12, %v3896_v50  ;;  %v3899_v54 = vmax.f32 %v3851_v32, 0.0  ;;  %v3850_v19 = vadd.f32 %v8121_v29, %v3795_v57  ;;  %v3798_v25 = vadd.f32 %v4744_v56, %v3334_v46  ;;  %v3339_v58 = vadd.f32 %v3338_v4, %v8070_v42 }
 0x325   : > { %v3646_v27 = vpop.f32.mrf.mxu1  ;;  %v4672_v28 = vpop.f32.mrf.mxu0 }
 0x326   : > { %3947 = vst.msk [vmem:[%s8130_s13 + $0xa8] sm:$0xff] %vm2527_vm12, %v3899_v54  ;;  %v3898_v44 = vmax.f32 %v3850_v19, 0.0  ;;  %v3853_v30 = vadd.f32 %v8121_v29, %v3798_v25  ;;  %v3797_v5 = vadd.f32 %v3646_v27, %v3329_v48  ;;  %v3354_v11 = vadd.f32 %v4672_v28, %v8072_v43 }
 0x327   : > { %v4747_v40 = vpop.f32.mrf.mxu1  ;;  %v3348_v18 = vpop.f32.mrf.mxu0 }
 0x328   : > { %3946 = vst.msk [vmem:[%s8130_s13 + $0xa0] sm:$0xff] %vm2527_vm12, %v3898_v44  ;;  %v3901_v7 = vmax.f32 %v3853_v30, 0.0  ;;  %v3852_v49 = vadd.f32 %v8121_v29, %v3797_v5  ;;  %v3800_v12 = vadd.f32 %v4747_v40, %v3344_v59  ;;  %v3349_v38 = vadd.f32 %v3348_v18, %v8074_v52 }
 0x329   : > { %v3656_v51 = vpop.f32.mrf.mxu1  ;;  %v4675_v20 = vpop.f32.mrf.mxu0 }
 0x32a   : > { %3949 = vst.msk [vmem:[%s8130_s13 + $0xb8] sm:$0xff] %vm2527_vm12, %v3901_v7  ;;  %v3900_v35 = vmax.f32 %v3852_v49, 0.0  ;;  %v3855_v14 = vadd.f32 %v8121_v29, %v3800_v12  ;;  %v3799_v3 = vadd.f32 %v3656_v51, %v3339_v58  ;;  %v3364_v21 = vadd.f32 %v4675_v20, %v8076_v62 }
 0x32b   : > { %v4750_v31 = vpop.f32.mrf.mxu1  ;;  %v3358_v26 = vpop.f32.mrf.mxu0 }
 0x32c   : > { %3948 = vst.msk [vmem:[%s8130_s13 + $0xb0] sm:$0xff] %vm2527_vm12, %v3900_v35  ;;  %v3903_v34 = vmax.f32 %v3855_v14, 0.0  ;;  %v3854_v42 = vadd.f32 %v8121_v29, %v3799_v3  ;;  %v3802_v2 = vadd.f32 %v4750_v31, %v3354_v11  ;;  %v3359_v32 = vadd.f32 %v3358_v26, %v8078_v15 }
 0x32d   : > { %v3666_v13 = vpop.f32.mrf.mxu1  ;;  %v4678_v57 = vpop.f32.mrf.mxu0 }
 0x32e   : > { %3951 = vst.msk [vmem:[%s8130_s13 + $0xc8] sm:$0xff] %vm2527_vm12, %v3903_v34  ;;  %v3902_v55 = vmax.f32 %v3854_v42, 0.0  ;;  %v3857_v43 = vadd.f32 %v8121_v29, %v3802_v2  ;;  %v3801_v61 = vadd.f32 %v3666_v13, %v3349_v38  ;;  %v3374_v54 = vadd.f32 %v4678_v57, %v8080_v60 }
 0x32f   : > { %v4753_v63 = vpop.f32.mrf.mxu1  ;;  %v3368_v48 = vpop.f32.mrf.mxu0 }
 0x330   : > { %3950 = vst.msk [vmem:[%s8130_s13 + $0xc0] sm:$0xff] %vm2527_vm12, %v3902_v55  ;;  %v3905_v50 = vmax.f32 %v3857_v43, 0.0  ;;  %v3856_v52 = vadd.f32 %v8121_v29, %v3801_v61  ;;  %v3804_v46 = vadd.f32 %v4753_v63, %v3364_v21  ;;  %v3369_v27 = vadd.f32 %v3368_v48, %v8082_v1 }
 0x331   : > { %v3676_v9 = vpop.f32.mrf.mxu1  ;;  %v4681_v30 = vpop.f32.mrf.mxu0 }
 0x332   : > { %3953 = vst.msk [vmem:[%s8130_s13 + $0xd8] sm:$0xff] %vm2527_vm12, %v3905_v50  ;;  %v3904_v56 = vmax.f32 %v3856_v52, 0.0  ;;  %v3859_v62 = vadd.f32 %v8121_v29, %v3804_v46  ;;  %v3803_v19 = vadd.f32 %v3676_v9, %v3359_v32  ;;  %v3384_v4 = vadd.f32 %v4681_v30, %v8084_v37 }
 0x333   : > { %v4756_v25 = vpop.f32.mrf.mxu1  ;;  %v3378_v7 = vpop.f32.mrf.mxu0 }
 0x334   : > { %3952 = vst.msk [vmem:[%s8130_s13 + $0xd0] sm:$0xff] %vm2527_vm12, %v3904_v56  ;;  %v3907_v45 = vmax.f32 %v3859_v62, 0.0  ;;  %v3858_v15 = vadd.f32 %v8121_v29, %v3803_v19  ;;  %v3806_v44 = vadd.f32 %v4756_v25, %v3374_v54  ;;  %v3379_v12 = vadd.f32 %v3378_v7, %v8086_v8 }
 0x335   : > { %v3686_v59 = vpop.f32.mrf.mxu1  ;;  %v4684_v51 = vpop.f32.mrf.mxu0 }
 0x336   : > { %3955 = vst.msk [vmem:[%s8130_s13 + $0xe8] sm:$0xff] %vm2527_vm12, %v3907_v45  ;;  %v3906_v5 = vmax.f32 %v3858_v15, 0.0  ;;  %v3861_v60 = vadd.f32 %v8121_v29, %v3806_v44  ;;  %v3805_v40 = vadd.f32 %v3686_v59, %v3369_v27  ;;  %v3394_v11 = vadd.f32 %v4684_v51, %v8088_v16 }
 0x337   : > { %v4759_v49 = vpop.f32.mrf.mxu1  ;;  %v3388_v18 = vpop.f32.mrf.mxu0 }
 0x338   : > { %3954 = vst.msk [vmem:[%s8130_s13 + $0xe0] sm:$0xff] %vm2527_vm12, %v3906_v5  ;;  %v3909_v58 = vmax.f32 %v3861_v60, 0.0  ;;  %v3860_v1 = vadd.f32 %v8121_v29, %v3805_v40  ;;  %v3808_v28 = vadd.f32 %v4759_v49, %v3384_v4  ;;  %v3389_v42 = vadd.f32 %v3388_v18, %v8090_v17 }
 0x339   : > { %v3696_v35 = vpop.f32.mrf.mxu1  ;;  %v4687_v2 = vpop.f32.mrf.mxu0 }
 0x33a   : > { %3957 = vst.msk [vmem:[%s8130_s13 + $0xf8] sm:$0xff] %vm2527_vm12, %v3909_v58  ;;  %v3908_v14 = vmax.f32 %v3860_v1, 0.0  ;;  %v3863_v37 = vadd.f32 %v8121_v29, %v3808_v28  ;;  %v3807_v3 = vadd.f32 %v3696_v35, %v3379_v12  ;;  %v3404_v55 = vadd.f32 %v4687_v2, %v8092_v22 }
 0x33b   : > { %v4762_v31 = vpop.f32.mrf.mxu1  ;;  %v3398_v21 = vpop.f32.mrf.mxu0 }
 0x33c   : > { %3956 = vst.msk [vmem:[%s8130_s13 + $0xf0] sm:$0xff] %vm2527_vm12, %v3908_v14  ;;  %v3911_v34 = vmax.f32 %v3863_v37, 0.0  ;;  %v3862_v8 = vadd.f32 %v8121_v29, %v3807_v3  ;;  %v3810_v38 = vadd.f32 %v4762_v31, %v3394_v11  ;;  %v3399_v63 = vadd.f32 %v3398_v21, %v8094_v47 }
 0x33d   : > { %v3706_v20 = vpop.f32.mrf.mxu1  ;;  %v4690_v52 = vpop.f32.mrf.mxu0 }
 0x33e   : > { %3959 = vst.msk [vmem:[%s8130_s13 + $0x108] sm:$0xff] %vm2527_vm12, %v3911_v34  ;;  %v3910_v13 = vmax.f32 %v3862_v8, 0.0  ;;  %v3865_v16 = vadd.f32 %v8121_v29, %v3810_v38  ;;  %v3809_v43 = vadd.f32 %v3706_v20, %v3389_v42  ;;  %v3414_v57 = vadd.f32 %v4690_v52, %v8096_v39 }
 0x33f   : > { %v4765_v61 = vpop.f32.mrf.mxu1  ;;  %v3408_v56 = vpop.f32.mrf.mxu0 }
 0x340   : > { %3958 = vst.msk [vmem:[%s8130_s13 + $0x100] sm:$0xff] %vm2527_vm12, %v3910_v13  ;;  %v3913_v26 = vmax.f32 %v3865_v16, 0.0  ;;  %v3864_v17 = vadd.f32 %v8121_v29, %v3809_v43  ;;  %v3812_v50 = vadd.f32 %v4765_v61, %v3404_v55  ;;  %v3409_v19 = vadd.f32 %v3408_v56, %v8098_v0 }
 0x341   : > { %v3716_v32 = vpop.f32.mrf.mxu1  ;;  %v4693_v25 = vpop.f32.mrf.mxu0 }
 0x342   : > { %3961 = vst.msk [vmem:[%s8130_s13 + $0x118] sm:$0xff] %vm2527_vm12, %v3913_v26  ;;  %v3912_v46 = vmax.f32 %v3864_v17, 0.0  ;;  %v3867_v22 = vadd.f32 %v8121_v29, %v3812_v50  ;;  %v3811_v9 = vadd.f32 %v3716_v32, %v3399_v63  ;;  %v3424_v27 = vadd.f32 %v4693_v25, %v8100_v41 }
 0x343   : > { %v4768_v62 = vpop.f32.mrf.mxu1  ;;  %v3418_v30 = vpop.f32.mrf.mxu0 }
 0x344   : > { %3960 = vst.msk [vmem:[%s8130_s13 + $0x110] sm:$0xff] %vm2527_vm12, %v3912_v46  ;;  %v3915_v54 = vmax.f32 %v3867_v22, 0.0  ;;  %v3866_v47 = vadd.f32 %v8121_v29, %v3811_v9  ;;  %v3814_v48 = vadd.f32 %v4768_v62, %v3414_v57  ;;  %v3419_v60 = vadd.f32 %v3418_v30, %v8102_v23 }
 0x345   : > { %v3726_v45 = vpop.f32.mrf.mxu1  ;;  %v4696_v40 = vpop.f32.mrf.mxu0 }
 0x346   : > { %3963 = vst.msk [vmem:[%s8130_s13 + $0x128] sm:$0xff] %vm2527_vm12, %v3915_v54  ;;  %v3914_v15 = vmax.f32 %v3866_v47, 0.0  ;;  %v3869_v39 = vadd.f32 %v8121_v29, %v3814_v48  ;;  %v3813_v44 = vadd.f32 %v3726_v45, %v3409_v19  ;;  %v3434_v58 = vadd.f32 %v4696_v40, %v8104_v53 }
 0x347   : > { %v4771_v59 = vpop.f32.mrf.mxu1  ;;  %v3428_v12 = vpop.f32.mrf.mxu0 }
 0x348   : > { %3962 = vst.msk [vmem:[%s8130_s13 + $0x120] sm:$0xff] %vm2527_vm12, %v3914_v15  ;;  %v3917_v5 = vmax.f32 %v3869_v39, 0.0  ;;  %v3868_v0 = vadd.f32 %v8121_v29, %v3813_v44  ;;  %v3816_v4 = vadd.f32 %v4771_v59, %v3424_v27  ;;  %v3429_v35 = vadd.f32 %v3428_v12, %v8106_v10 }
 0x349   : > { %v3736_v7 = vpop.f32.mrf.mxu1  ;;  %v4699_v37 = vpop.f32.mrf.mxu0 }
 0x34a   : > { %3965 = vst.msk [vmem:[%s8130_s13 + $0x138] sm:$0xff] %vm2527_vm12, %v3917_v5  ;;  %v3916_v49 = vmax.f32 %v3868_v0, 0.0  ;;  %v3871_v41 = vadd.f32 %v8121_v29, %v3816_v4  ;;  %v3815_v1 = vadd.f32 %v3736_v7, %v3419_v60  ;;  %v3444_v18 = vadd.f32 %v4699_v37, %v8108_v24 }
 0x34b   : > { %v4774_v28 = vpop.f32.mrf.mxu1  ;;  %v3438_v34 = vpop.f32.mrf.mxu0 }
 0x34c   : > { %3964 = vst.msk [vmem:[%s8130_s13 + $0x130] sm:$0xff] %vm2527_vm12, %v3916_v49  ;;  %v3919_v51 = vmax.f32 %v3871_v41, 0.0  ;;  %v3870_v23 = vadd.f32 %v8121_v29, %v3815_v1  ;;  %v3818_v14 = vadd.f32 %v4774_v28, %v3434_v58  ;;  %v3439_v38 = vadd.f32 %v3438_v34, %v8110_v36 }
 0x34d   : > { %v3746_v11 = vpop.f32.mrf.mxu1  ;;  %v4702_v20 = vpop.f32.mrf.mxu0 }
 0x34e   : > { %3967 = vst.msk [vmem:[%s8130_s13 + $0x148] sm:$0xff] %vm2527_vm12, %v3919_v51  ;;  %v3918_v3 = vmax.f32 %v3870_v23, 0.0  ;;  %v3873_v53 = vadd.f32 %v8121_v29, %v3818_v14  ;;  %v3817_v31 = vadd.f32 %v3746_v11, %v3429_v35  ;;  %v3454_v55 = vadd.f32 %v4702_v20, %v8112_v33 }
 0x34f   : > { %v4777_v8 = vpop.f32.mrf.mxu1  ;;  %v3448_v21 = vpop.f32.mrf.mxu0 }
 0x350   : > { %3966 = vst.msk [vmem:[%s8130_s13 + $0x140] sm:$0xff] %vm2527_vm12, %v3918_v3  ;;  %v3921_v42 = vmax.f32 %v3873_v53, 0.0  ;;  %v3872_v10 = vadd.f32 %v8121_v29, %v3817_v31  ;;  %v3820_v2 = vadd.f32 %v4777_v8, %v3444_v18  ;;  %v3449_v17 = vadd.f32 %v3448_v21, %v8115_v6 }
 0x351   : > { %v3756_v13 = vpop.f32.mrf.mxu1 }
 0x352   : > { %3969 = vst.msk [vmem:[%s8130_s13 + $0x158] sm:$0xff] %vm2527_vm12, %v3921_v42  ;;  %v3920_v16 = vmax.f32 %v3872_v10, 0.0  ;;  %v3875_v24 = vadd.f32 %v8121_v29, %v3820_v2  ;;  %v3819_v43 = vadd.f32 %v3756_v13, %v3439_v38 }
 0x353   : > { %v4780_v61 = vpop.f32.mrf.mxu1 }
 0x354   : > { %3968 = vst.msk [vmem:[%s8130_s13 + $0x150] sm:$0xff] %vm2527_vm12, %v3920_v16  ;;  %v3923_v36 = vmax.f32 %v3875_v24, 0.0  ;;  %v3874_v26 = vadd.f32 %v8121_v29, %v3819_v43  ;;  %v3822_v63 = vadd.f32 %v4780_v61, %v3454_v55 }
 0x355   : > { %v3766_v50 = vpop.f32.mrf.mxu1 }
 0x356   : > { %3971 = vst.msk [vmem:[%s8130_s13 + $0x168] sm:$0xff] %vm2527_vm12, %v3923_v36  ;;  %v3922_v52 = vmax.f32 %v3874_v26, 0.0  ;;  %v3877_v32 = vadd.f32 %v8121_v29, %v3822_v63  ;;  %v3821_v33 = vadd.f32 %v3766_v50, %v3449_v17 }
 0x358   : > { %3970 = vst.msk [vmem:[%s8130_s13 + $0x160] sm:$0xff] %vm2527_vm12, %v3922_v52  ;;  %v3925_v46 = vmax.f32 %v3877_v32, 0.0  ;;  %v3876_v22 = vadd.f32 %v8121_v29, %v3821_v33 }
 0x35a   : > { %3973 = vst.msk [vmem:[%s8130_s13 + $0x178] sm:$0xff] %vm2527_vm12, %v3925_v46  ;;  %v3924_v57 = vmax.f32 %v3876_v22, 0.0 }
 0x35c   : > { %3972 = vst.msk [vmem:[%s8130_s13 + $0x170] sm:$0xff] %vm2527_vm12, %v3924_v57 }
 0x35d PF: > { %s15_s20 = sadd.s32 1, %s4933_s20   ;;  %s8819_s18 = smov %s4929_s19 }
 0x35e   : > { %p12_p5 = scmp.ge.s32.totalorder %s15_s20, 4   ;;  %s8820_s19 = smov %s8822_s21 }
 0x360   :  { %14 = sbr.rel (!%p12_p5) target bundleno = 2 (0x2), region = 72 }

</bundles_post_ra>
